<compile_context>
chip_gen: v6e
topology: v6e:2x2x1
jax: 0.10.0
libtpu: 0.0.40
codegen_flags: <defaults>
</compile_context>

<pallas_src>
import functools

import jax
import jax.numpy as jnp
from jax.experimental import pallas as pl
from jax.experimental.pallas import tpu as pltpu


# ---------------------------------------------------------------------------
# Pallas kernel: full stacked_NVP forward chain for one batch tile.
# n, k, d are static Python ints; the per-bijector flip is resolved at trace time.
# ---------------------------------------------------------------------------
def stacked_nvp_kernel(x_ref,
                       w1_ref, b1_ref,     # fused layer-1:  (n, k, 2H), (n, 1, 2H)
                       w2_ref, b2_ref,     # block-diag layer-2: (n, 2H, 2dk), (n, 1, 2dk)
                       z_ref, stats_ref,   # (TB, d), (TB, 2) = [logpz | logjac]
                       *, n, k, d):
    dk = d - k
    mm_dtype = w1_ref.dtype                 # f32 or bf16 (MXU input dtype)

    x = x_ref[...]                          # (TB, d) float32
    a = x[:, :k]                            # first half  (TB, k)
    b = x[:, k:]                            # second half (TB, d-k)
    logjac = jnp.zeros((x.shape[0], 1), jnp.float32)

    for i in range(n):                      # static unrolled bijector chain
        flip = bool(i % 2)
        x1, x2 = (b, a) if flip else (a, b)

        w1 = w1_ref[i]                      # (k, 2H)
        b1 = b1_ref[i]                      # (1, 2H)  f32
        w2 = w2_ref[i]                      # (2H, 2dk)
        b2 = b2_ref[i]                      # (1, 2dk) f32

        # fused sig/mu layer 1: one matmul -> [h_sig | h_mu], LeakyReLU(0.01)
        h = jnp.dot(x1.astype(mm_dtype), w1,
                    preferred_element_type=jnp.float32) + b1
        h = jnp.where(h > 0, h, 0.01 * h)

        # fused layer 2 via block-diagonal weights: [sig | mu] in one matmul
        sm = jnp.dot(h.astype(mm_dtype), w2,
                     preferred_element_type=jnp.float32) + b2
        sig = sm[:, :dk]
        mu = sm[:, dk:]

        # affine coupling (elementwise in f32)
        z2 = x2 * jnp.exp(sig) + mu
        if flip:
            a, b = z2, x1
        else:
            a, b = x1, z2
        logjac = logjac + jnp.sum(sig, axis=-1, keepdims=True)

    z = jnp.concatenate([a, b], axis=-1)    # single concat per tile, not per bijector
    z_ref[...] = z

    # log N(z; 0, I); only the final bijector's log_pz survives (as in torch code)
    logpz = (-0.5 * (jnp.sum(a * a, axis=-1, keepdims=True)
                     + jnp.sum(b * b, axis=-1, keepdims=True))
             - 0.5 * d * jnp.log(2.0 * jnp.pi))
    stats_ref[...] = jnp.concatenate([logpz, logjac], axis=-1)


# ---------------------------------------------------------------------------
# Wrapper: parameter fusion + batch-tiled pallas_call
# ---------------------------------------------------------------------------
def _pack_params(params, mm_dtype):
    """Fuse sig/mu nets: concat layer-1, block-diag layer-2."""
    w1cat = jnp.concatenate([params["ws1"], params["wm1"]], axis=-1)  # (n, k, 2H)
    b1cat = jnp.concatenate([params["bs1"], params["bm1"]], axis=-1)  # (n, 1, 2H)
    n, H, dk = params["ws2"].shape
    zeros = jnp.zeros((n, H, dk), jnp.float32)
    top = jnp.concatenate([params["ws2"], zeros], axis=-1)            # (n, H, 2dk)
    bot = jnp.concatenate([zeros, params["wm2"]], axis=-1)            # (n, H, 2dk)
    w2blk = jnp.concatenate([top, bot], axis=1)                       # (n, 2H, 2dk)
    b2cat = jnp.concatenate([params["bs2"], params["bm2"]], axis=-1)  # (n, 1, 2dk)
    return (w1cat.astype(mm_dtype), b1cat.astype(jnp.float32),
            w2blk.astype(mm_dtype), b2cat.astype(jnp.float32))


def _pick_tile_b(batch):
    for t in (2048, 1024, 512, 256, 128, 64, 32, 16, 8):
        if batch % t == 0:
            return t
    return batch


def _full_spec(shape):
    nd = len(shape)
    return pl.BlockSpec(shape, lambda b, _nd=nd: (0,) * _nd)  # weights stay VMEM-resident


def stacked_nvp_forward(x, params, *, n, k, d, use_bf16_matmul=False):
    # flip swaps the halves, so the coupling only type-checks for an even split
    assert d == 2 * k, "stacked_NVP with alternating flips requires d == 2*k"
    B = x.shape[0]
    mm_dtype = jnp.bfloat16 if use_bf16_matmul else jnp.float32
    w1cat, b1cat, w2blk, b2cat = _pack_params(params, mm_dtype)

    tile_b = _pick_tile_b(B)
    grid = (B // tile_b,)

    z, stats = pl.pallas_call(
        functools.partial(stacked_nvp_kernel, n=n, k=k, d=d),
        grid=grid,
        in_specs=[
            pl.BlockSpec((tile_b, d), lambda b: (b, 0)),   # activations: batch-tiled
            _full_spec(w1cat.shape),
            _full_spec(b1cat.shape),
            _full_spec(w2blk.shape),
            _full_spec(b2cat.shape),
        ],
        out_specs=(
            pl.BlockSpec((tile_b, d), lambda b: (b, 0)),
            pl.BlockSpec((tile_b, 2), lambda b: (b, 0)),
        ),
        out_shape=(
            jax.ShapeDtypeStruct((B, d), jnp.float32),
            jax.ShapeDtypeStruct((B, 2), jnp.float32),
        ),
        compiler_params=pltpu.CompilerParams(
            dimension_semantics=("parallel",)),            # megacore-shardable on v7x
    )(x, w1cat, b1cat, w2blk, b2cat)
    return z, stats[:, 0], stats[:, 1]


# ---------------------------------------------------------------------------
# Deterministic parameter init (PyTorch nn.Linear style: U(-1/sqrt(fan_in), ...))
# ---------------------------------------------------------------------------
def init_params(key, n, d, k, hidden):
    dk = d - k

    def uni(key, shape, fan_in):
        bound = 1.0 / jnp.sqrt(fan_in)
        return jax.random.uniform(key, shape, jnp.float32, -bound, bound)

    keys = jax.random.split(key, 8)
    return {
        "ws1": uni(keys[0], (n, k, hidden), k),
        "bs1": uni(keys[1], (n, 1, hidden), k),
        "ws2": uni(keys[2], (n, hidden, dk), hidden),
        "bs2": uni(keys[3], (n, 1, dk), hidden),
        "wm1": uni(keys[4], (n, k, hidden), k),
        "bm1": uni(keys[5], (n, 1, hidden), k),
        "wm2": uni(keys[6], (n, hidden, dk), hidden),
        "bm2": uni(keys[7], (n, 1, dk), hidden),
    }


# Pure-JAX reference (mirrors the torch forward exactly; mm_dtype selects the
# matmul input precision so both kernel paths can be checked tightly).
def reference_forward(x, params, *, n, k, d, mm_dtype=jnp.float32):
    def mm(a, w):
        return jnp.dot(a.astype(mm_dtype), w.astype(mm_dtype),
                       preferred_element_type=jnp.float32)

    logjac = jnp.zeros((x.shape[0],), jnp.float32)
    logpz = None
    for i in range(n):
        flip = bool(i % 2)
        x1, x2 = x[:, :k], x[:, k:]
        if flip:
            x1, x2 = x2, x1
        h = mm(x1, params["ws1"][i]) + params["bs1"][i]
        h = jnp.where(h > 0, h, 0.01 * h)
        sig = mm(h, params["ws2"][i]) + params["bs2"][i]
        hm = mm(x1, params["wm1"][i]) + params["bm1"][i]
        hm = jnp.where(hm > 0, hm, 0.01 * hm)
        mu = mm(hm, params["wm2"][i]) + params["bm2"][i]
        z1, z2 = x1, x2 * jnp.exp(sig) + mu
        if flip:
            z1, z2 = z2, z1
        x = jnp.concatenate([z1, z2], axis=-1)
        logpz = -0.5 * jnp.sum(x * x, axis=-1) - 0.5 * d * jnp.log(2.0 * jnp.pi)
        logjac = logjac + jnp.sum(sig, axis=-1)
    return x, logpz, logjac


if __name__ == "__main__":
    # small shapes implied by the module: d = 2*k so the alternating flip is consistent
    D, K, HIDDEN, N, BATCH = 8, 4, 32, 4, 256

    key = jax.random.PRNGKey(0)
    kx, kp = jax.random.split(key)
    x = jax.random.normal(kx, (BATCH, D), jnp.float32)
    params = init_params(kp, N, D, K, HIDDEN)

    # f32 MXU-input path (exact-precision check; the path to use on v5e)
    z, log_pz, log_jacob = stacked_nvp_forward(x, params, n=N, k=K, d=D)
    jax.block_until_ready((z, log_pz, log_jacob))

    z_r, log_pz_r, log_jacob_r = reference_forward(x, params, n=N, k=K, d=D)
    assert jnp.allclose(z, z_r, atol=1e-4, rtol=1e-4)
    assert jnp.allclose(log_pz, log_pz_r, atol=1e-4, rtol=1e-4)
    assert jnp.allclose(log_jacob, log_jacob_r, atol=1e-4, rtol=1e-4)

    # bf16 MXU-input path (v6e/v7x); compared against a bf16-matmul reference
    z_b, log_pz_b, log_jacob_b = stacked_nvp_forward(
        x, params, n=N, k=K, d=D, use_bf16_matmul=True)
    jax.block_until_ready((z_b, log_pz_b, log_jacob_b))

    z_rb, log_pz_rb, log_jacob_rb = reference_forward(
        x, params, n=N, k=K, d=D, mm_dtype=jnp.bfloat16)
    assert jnp.allclose(z_b, z_rb, atol=1e-3, rtol=1e-3)
    assert jnp.allclose(log_pz_b, log_pz_rb, atol=1e-3, rtol=1e-3)
    assert jnp.allclose(log_jacob_b, log_jacob_rb, atol=1e-3, rtol=1e-3)

    print("KERNEL_OK")
</pallas_src>

<mosaic_0001>
module attributes {stable_mosaic.version = 11 : i64} {
  func.func @stacked_nvp_kernel(%arg0: i32, %arg1: memref<256x8xf32, #tpu.memory_space<vmem>>, %arg2: memref<4x4x64xf32, #tpu.memory_space<vmem>>, %arg3: memref<4x1x64xf32, #tpu.memory_space<vmem>>, %arg4: memref<4x64x8xf32, #tpu.memory_space<vmem>>, %arg5: memref<4x1x8xf32, #tpu.memory_space<vmem>>, %arg6: memref<256x8xf32, #tpu.memory_space<vmem>>, %arg7: memref<256x2xf32, #tpu.memory_space<vmem>>) attributes {dimension_semantics = [#tpu.dimension_semantics<parallel>], iteration_bounds = array<i64: 1>, scalar_prefetch = 0 : i64, scratch_operands = 0 : i64, tpu.core_type = #tpu.core_type<tc>, window_params = [{transform_indices = @transform_0, window_bounds = array<i64: 256, 8>}, {pipeline_mode = #tpu.pipeline_mode<synchronous>, transform_indices = @transform_1, window_bounds = array<i64: 4, 4, 64>}, {pipeline_mode = #tpu.pipeline_mode<synchronous>, transform_indices = @transform_2, window_bounds = array<i64: 4, 1, 64>}, {pipeline_mode = #tpu.pipeline_mode<synchronous>, transform_indices = @transform_3, window_bounds = array<i64: 4, 64, 8>}, {pipeline_mode = #tpu.pipeline_mode<synchronous>, transform_indices = @transform_4, window_bounds = array<i64: 4, 1, 8>}, {transform_indices = @transform_5, window_bounds = array<i64: 256, 8>}, {transform_indices = @transform_6, window_bounds = array<i64: 256, 2>}]} {
    %c0 = arith.constant 0 : index
    %c0_0 = arith.constant 0 : index
    %0 = vector.load %arg1[%c0, %c0_0] : memref<256x8xf32, #tpu.memory_space<vmem>>, vector<256x8xf32>
    %1 = vector.extract_strided_slice %0 {offsets = [0, 0], sizes = [256, 4], strides = [1, 1]} : vector<256x8xf32> to vector<256x4xf32>
    %2 = vector.extract_strided_slice %0 {offsets = [0, 4], sizes = [256, 4], strides = [1, 1]} : vector<256x8xf32> to vector<256x4xf32>
    %cst = arith.constant 0.000000e+00 : f32
    %3 = vector.broadcast %cst : f32 to vector<256x1xf32>
    %c0_1 = arith.constant 0 : index
    %c0_2 = arith.constant 0 : index
    %c0_3 = arith.constant 0 : index
    %4 = vector.load %arg2[%c0_1, %c0_2, %c0_3] : memref<4x4x64xf32, #tpu.memory_space<vmem>>, vector<1x4x64xf32>
    %5 = vector.shape_cast %4 : vector<1x4x64xf32> to vector<4x64xf32>
    %c0_4 = arith.constant 0 : index
    %c0_5 = arith.constant 0 : index
    %c0_6 = arith.constant 0 : index
    %6 = vector.load %arg3[%c0_4, %c0_5, %c0_6] : memref<4x1x64xf32, #tpu.memory_space<vmem>>, vector<1x1x64xf32>
    %7 = vector.shape_cast %6 : vector<1x1x64xf32> to vector<1x64xf32>
    %c0_7 = arith.constant 0 : index
    %c0_8 = arith.constant 0 : index
    %c0_9 = arith.constant 0 : index
    %8 = vector.load %arg4[%c0_7, %c0_8, %c0_9] : memref<4x64x8xf32, #tpu.memory_space<vmem>>, vector<1x64x8xf32>
    %9 = vector.shape_cast %8 : vector<1x64x8xf32> to vector<64x8xf32>
    %c0_10 = arith.constant 0 : index
    %c0_11 = arith.constant 0 : index
    %c0_12 = arith.constant 0 : index
    %10 = vector.load %arg5[%c0_10, %c0_11, %c0_12] : memref<4x1x8xf32, #tpu.memory_space<vmem>>, vector<1x1x8xf32>
    %11 = vector.shape_cast %10 : vector<1x1x8xf32> to vector<1x8xf32>
    %cst_13 = arith.constant dense<0.000000e+00> : vector<256x64xf32>
    %12 = tpu.matmul %1, %5, %cst_13 {dimension_numbers = #tpu.dot_dimension_numbers<[1], [0], [0], [1], [0, 0, 1, 1], [], []>} : vector<256x4xf32>, vector<4x64xf32>, vector<256x64xf32> -> vector<256x64xf32>
    %13 = vector.broadcast %7 : vector<1x64xf32> to vector<256x64xf32>
    %14 = arith.addf %12, %13 : vector<256x64xf32>
    %cst_14 = arith.constant 0.000000e+00 : f32
    %15 = vector.broadcast %cst_14 : f32 to vector<256x64xf32>
    %16 = arith.cmpf ogt, %14, %15 : vector<256x64xf32>
    %cst_15 = arith.constant 0.00999999977 : f32
    %17 = vector.broadcast %cst_15 : f32 to vector<256x64xf32>
    %18 = arith.mulf %17, %14 : vector<256x64xf32>
    %19 = arith.select %16, %14, %18 : vector<256x64xi1>, vector<256x64xf32>
    %cst_16 = arith.constant dense<0.000000e+00> : vector<256x8xf32>
    %20 = tpu.matmul %19, %9, %cst_16 {dimension_numbers = #tpu.dot_dimension_numbers<[1], [0], [0], [1], [0, 0, 1, 1], [], []>} : vector<256x64xf32>, vector<64x8xf32>, vector<256x8xf32> -> vector<256x8xf32>
    %21 = vector.broadcast %11 : vector<1x8xf32> to vector<256x8xf32>
    %22 = arith.addf %20, %21 : vector<256x8xf32>
    %23 = vector.extract_strided_slice %22 {offsets = [0, 0], sizes = [256, 4], strides = [1, 1]} : vector<256x8xf32> to vector<256x4xf32>
    %24 = vector.extract_strided_slice %22 {offsets = [0, 4], sizes = [256, 4], strides = [1, 1]} : vector<256x8xf32> to vector<256x4xf32>
    %25 = math.exp %23 : vector<256x4xf32>
    %26 = arith.mulf %2, %25 : vector<256x4xf32>
    %27 = arith.addf %26, %24 : vector<256x4xf32>
    %cst_17 = arith.constant dense<0.000000e+00> : vector<256xf32>
    %28 = vector.multi_reduction <add>, %23, %cst_17 [1] : vector<256x4xf32> to vector<256xf32>
    %29 = vector.shape_cast %28 : vector<256xf32> to vector<256x1xf32>
    %30 = arith.addf %3, %29 : vector<256x1xf32>
    %c1 = arith.constant 1 : index
    %c0_18 = arith.constant 0 : index
    %c0_19 = arith.constant 0 : index
    %31 = vector.load %arg2[%c1, %c0_18, %c0_19] : memref<4x4x64xf32, #tpu.memory_space<vmem>>, vector<1x4x64xf32>
    %32 = vector.shape_cast %31 : vector<1x4x64xf32> to vector<4x64xf32>
    %c1_20 = arith.constant 1 : index
    %c0_21 = arith.constant 0 : index
    %c0_22 = arith.constant 0 : index
    %33 = vector.load %arg3[%c1_20, %c0_21, %c0_22] : memref<4x1x64xf32, #tpu.memory_space<vmem>>, vector<1x1x64xf32>
    %34 = vector.shape_cast %33 : vector<1x1x64xf32> to vector<1x64xf32>
    %c1_23 = arith.constant 1 : index
    %c0_24 = arith.constant 0 : index
    %c0_25 = arith.constant 0 : index
    %35 = vector.load %arg4[%c1_23, %c0_24, %c0_25] : memref<4x64x8xf32, #tpu.memory_space<vmem>>, vector<1x64x8xf32>
    %36 = vector.shape_cast %35 : vector<1x64x8xf32> to vector<64x8xf32>
    %c1_26 = arith.constant 1 : index
    %c0_27 = arith.constant 0 : index
    %c0_28 = arith.constant 0 : index
    %37 = vector.load %arg5[%c1_26, %c0_27, %c0_28] : memref<4x1x8xf32, #tpu.memory_space<vmem>>, vector<1x1x8xf32>
    %38 = vector.shape_cast %37 : vector<1x1x8xf32> to vector<1x8xf32>
    %cst_29 = arith.constant dense<0.000000e+00> : vector<256x64xf32>
    %39 = tpu.matmul %27, %32, %cst_29 {dimension_numbers = #tpu.dot_dimension_numbers<[1], [0], [0], [1], [0, 0, 1, 1], [], []>} : vector<256x4xf32>, vector<4x64xf32>, vector<256x64xf32> -> vector<256x64xf32>
    %40 = vector.broadcast %34 : vector<1x64xf32> to vector<256x64xf32>
    %41 = arith.addf %39, %40 : vector<256x64xf32>
    %cst_30 = arith.constant 0.000000e+00 : f32
    %42 = vector.broadcast %cst_30 : f32 to vector<256x64xf32>
    %43 = arith.cmpf ogt, %41, %42 : vector<256x64xf32>
    %cst_31 = arith.constant 0.00999999977 : f32
    %44 = vector.broadcast %cst_31 : f32 to vector<256x64xf32>
    %45 = arith.mulf %44, %41 : vector<256x64xf32>
    %46 = arith.select %43, %41, %45 : vector<256x64xi1>, vector<256x64xf32>
    %cst_32 = arith.constant dense<0.000000e+00> : vector<256x8xf32>
    %47 = tpu.matmul %46, %36, %cst_32 {dimension_numbers = #tpu.dot_dimension_numbers<[1], [0], [0], [1], [0, 0, 1, 1], [], []>} : vector<256x64xf32>, vector<64x8xf32>, vector<256x8xf32> -> vector<256x8xf32>
    %48 = vector.broadcast %38 : vector<1x8xf32> to vector<256x8xf32>
    %49 = arith.addf %47, %48 : vector<256x8xf32>
    %50 = vector.extract_strided_slice %49 {offsets = [0, 0], sizes = [256, 4], strides = [1, 1]} : vector<256x8xf32> to vector<256x4xf32>
    %51 = vector.extract_strided_slice %49 {offsets = [0, 4], sizes = [256, 4], strides = [1, 1]} : vector<256x8xf32> to vector<256x4xf32>
    %52 = math.exp %50 : vector<256x4xf32>
    %53 = arith.mulf %1, %52 : vector<256x4xf32>
    %54 = arith.addf %53, %51 : vector<256x4xf32>
    %cst_33 = arith.constant dense<0.000000e+00> : vector<256xf32>
    %55 = vector.multi_reduction <add>, %50, %cst_33 [1] : vector<256x4xf32> to vector<256xf32>
    %56 = vector.shape_cast %55 : vector<256xf32> to vector<256x1xf32>
    %57 = arith.addf %30, %56 : vector<256x1xf32>
    %c2 = arith.constant 2 : index
    %c0_34 = arith.constant 0 : index
    %c0_35 = arith.constant 0 : index
    %58 = vector.load %arg2[%c2, %c0_34, %c0_35] : memref<4x4x64xf32, #tpu.memory_space<vmem>>, vector<1x4x64xf32>
    %59 = vector.shape_cast %58 : vector<1x4x64xf32> to vector<4x64xf32>
    %c2_36 = arith.constant 2 : index
    %c0_37 = arith.constant 0 : index
    %c0_38 = arith.constant 0 : index
    %60 = vector.load %arg3[%c2_36, %c0_37, %c0_38] : memref<4x1x64xf32, #tpu.memory_space<vmem>>, vector<1x1x64xf32>
    %61 = vector.shape_cast %60 : vector<1x1x64xf32> to vector<1x64xf32>
    %c2_39 = arith.constant 2 : index
    %c0_40 = arith.constant 0 : index
    %c0_41 = arith.constant 0 : index
    %62 = vector.load %arg4[%c2_39, %c0_40, %c0_41] : memref<4x64x8xf32, #tpu.memory_space<vmem>>, vector<1x64x8xf32>
    %63 = vector.shape_cast %62 : vector<1x64x8xf32> to vector<64x8xf32>
    %c2_42 = arith.constant 2 : index
    %c0_43 = arith.constant 0 : index
    %c0_44 = arith.constant 0 : index
    %64 = vector.load %arg5[%c2_42, %c0_43, %c0_44] : memref<4x1x8xf32, #tpu.memory_space<vmem>>, vector<1x1x8xf32>
    %65 = vector.shape_cast %64 : vector<1x1x8xf32> to vector<1x8xf32>
    %cst_45 = arith.constant dense<0.000000e+00> : vector<256x64xf32>
    %66 = tpu.matmul %54, %59, %cst_45 {dimension_numbers = #tpu.dot_dimension_numbers<[1], [0], [0], [1], [0, 0, 1, 1], [], []>} : vector<256x4xf32>, vector<4x64xf32>, vector<256x64xf32> -> vector<256x64xf32>
    %67 = vector.broadcast %61 : vector<1x64xf32> to vector<256x64xf32>
    %68 = arith.addf %66, %67 : vector<256x64xf32>
    %cst_46 = arith.constant 0.000000e+00 : f32
    %69 = vector.broadcast %cst_46 : f32 to vector<256x64xf32>
    %70 = arith.cmpf ogt, %68, %69 : vector<256x64xf32>
    %cst_47 = arith.constant 0.00999999977 : f32
    %71 = vector.broadcast %cst_47 : f32 to vector<256x64xf32>
    %72 = arith.mulf %71, %68 : vector<256x64xf32>
    %73 = arith.select %70, %68, %72 : vector<256x64xi1>, vector<256x64xf32>
    %cst_48 = arith.constant dense<0.000000e+00> : vector<256x8xf32>
    %74 = tpu.matmul %73, %63, %cst_48 {dimension_numbers = #tpu.dot_dimension_numbers<[1], [0], [0], [1], [0, 0, 1, 1], [], []>} : vector<256x64xf32>, vector<64x8xf32>, vector<256x8xf32> -> vector<256x8xf32>
    %75 = vector.broadcast %65 : vector<1x8xf32> to vector<256x8xf32>
    %76 = arith.addf %74, %75 : vector<256x8xf32>
    %77 = vector.extract_strided_slice %76 {offsets = [0, 0], sizes = [256, 4], strides = [1, 1]} : vector<256x8xf32> to vector<256x4xf32>
    %78 = vector.extract_strided_slice %76 {offsets = [0, 4], sizes = [256, 4], strides = [1, 1]} : vector<256x8xf32> to vector<256x4xf32>
    %79 = math.exp %77 : vector<256x4xf32>
    %80 = arith.mulf %27, %79 : vector<256x4xf32>
    %81 = arith.addf %80, %78 : vector<256x4xf32>
    %cst_49 = arith.constant dense<0.000000e+00> : vector<256xf32>
    %82 = vector.multi_reduction <add>, %77, %cst_49 [1] : vector<256x4xf32> to vector<256xf32>
    %83 = vector.shape_cast %82 : vector<256xf32> to vector<256x1xf32>
    %84 = arith.addf %57, %83 : vector<256x1xf32>
    %c3 = arith.constant 3 : index
    %c0_50 = arith.constant 0 : index
    %c0_51 = arith.constant 0 : index
    %85 = vector.load %arg2[%c3, %c0_50, %c0_51] : memref<4x4x64xf32, #tpu.memory_space<vmem>>, vector<1x4x64xf32>
    %86 = vector.shape_cast %85 : vector<1x4x64xf32> to vector<4x64xf32>
    %c3_52 = arith.constant 3 : index
    %c0_53 = arith.constant 0 : index
    %c0_54 = arith.constant 0 : index
    %87 = vector.load %arg3[%c3_52, %c0_53, %c0_54] : memref<4x1x64xf32, #tpu.memory_space<vmem>>, vector<1x1x64xf32>
    %88 = vector.shape_cast %87 : vector<1x1x64xf32> to vector<1x64xf32>
    %c3_55 = arith.constant 3 : index
    %c0_56 = arith.constant 0 : index
    %c0_57 = arith.constant 0 : index
    %89 = vector.load %arg4[%c3_55, %c0_56, %c0_57] : memref<4x64x8xf32, #tpu.memory_space<vmem>>, vector<1x64x8xf32>
    %90 = vector.shape_cast %89 : vector<1x64x8xf32> to vector<64x8xf32>
    %c3_58 = arith.constant 3 : index
    %c0_59 = arith.constant 0 : index
    %c0_60 = arith.constant 0 : index
    %91 = vector.load %arg5[%c3_58, %c0_59, %c0_60] : memref<4x1x8xf32, #tpu.memory_space<vmem>>, vector<1x1x8xf32>
    %92 = vector.shape_cast %91 : vector<1x1x8xf32> to vector<1x8xf32>
    %cst_61 = arith.constant dense<0.000000e+00> : vector<256x64xf32>
    %93 = tpu.matmul %81, %86, %cst_61 {dimension_numbers = #tpu.dot_dimension_numbers<[1], [0], [0], [1], [0, 0, 1, 1], [], []>} : vector<256x4xf32>, vector<4x64xf32>, vector<256x64xf32> -> vector<256x64xf32>
    %94 = vector.broadcast %88 : vector<1x64xf32> to vector<256x64xf32>
    %95 = arith.addf %93, %94 : vector<256x64xf32>
    %cst_62 = arith.constant 0.000000e+00 : f32
    %96 = vector.broadcast %cst_62 : f32 to vector<256x64xf32>
    %97 = arith.cmpf ogt, %95, %96 : vector<256x64xf32>
    %cst_63 = arith.constant 0.00999999977 : f32
    %98 = vector.broadcast %cst_63 : f32 to vector<256x64xf32>
    %99 = arith.mulf %98, %95 : vector<256x64xf32>
    %100 = arith.select %97, %95, %99 : vector<256x64xi1>, vector<256x64xf32>
    %cst_64 = arith.constant dense<0.000000e+00> : vector<256x8xf32>
    %101 = tpu.matmul %100, %90, %cst_64 {dimension_numbers = #tpu.dot_dimension_numbers<[1], [0], [0], [1], [0, 0, 1, 1], [], []>} : vector<256x64xf32>, vector<64x8xf32>, vector<256x8xf32> -> vector<256x8xf32>
    %102 = vector.broadcast %92 : vector<1x8xf32> to vector<256x8xf32>
    %103 = arith.addf %101, %102 : vector<256x8xf32>
    %104 = vector.extract_strided_slice %103 {offsets = [0, 0], sizes = [256, 4], strides = [1, 1]} : vector<256x8xf32> to vector<256x4xf32>
    %105 = vector.extract_strided_slice %103 {offsets = [0, 4], sizes = [256, 4], strides = [1, 1]} : vector<256x8xf32> to vector<256x4xf32>
    %106 = math.exp %104 : vector<256x4xf32>
    %107 = arith.mulf %54, %106 : vector<256x4xf32>
    %108 = arith.addf %107, %105 : vector<256x4xf32>
    %cst_65 = arith.constant dense<0.000000e+00> : vector<256xf32>
    %109 = vector.multi_reduction <add>, %104, %cst_65 [1] : vector<256x4xf32> to vector<256xf32>
    %110 = vector.shape_cast %109 : vector<256xf32> to vector<256x1xf32>
    %111 = arith.addf %84, %110 : vector<256x1xf32>
    %112 = tpu.concatenate %108, %81 in 1 : vector<256x4xf32>, vector<256x4xf32> -> vector<256x8xf32>
    %c0_66 = arith.constant 0 : index
    %c0_67 = arith.constant 0 : index
    %113 = vector.load %arg6[%c0_66, %c0_67] : memref<256x8xf32, #tpu.memory_space<vmem>>, vector<256x8xf32>
    tpu.vector_store %arg6[%c0_66, %c0_67], %112 {strides = array<i32>} : memref<256x8xf32, #tpu.memory_space<vmem>>, vector<256x8xf32>,
    %114 = arith.mulf %108, %108 : vector<256x4xf32>
    %cst_68 = arith.constant dense<0.000000e+00> : vector<256xf32>
    %115 = vector.multi_reduction <add>, %114, %cst_68 [1] : vector<256x4xf32> to vector<256xf32>
    %116 = vector.shape_cast %115 : vector<256xf32> to vector<256x1xf32>
    %117 = arith.mulf %81, %81 : vector<256x4xf32>
    %cst_69 = arith.constant dense<0.000000e+00> : vector<256xf32>
    %118 = vector.multi_reduction <add>, %117, %cst_69 [1] : vector<256x4xf32> to vector<256xf32>
    %119 = vector.shape_cast %118 : vector<256xf32> to vector<256x1xf32>
    %120 = arith.addf %116, %119 : vector<256x1xf32>
    %cst_70 = arith.constant -5.000000e-01 : f32
    %121 = vector.broadcast %cst_70 : f32 to vector<256x1xf32>
    %122 = arith.mulf %121, %120 : vector<256x1xf32>
    %cst_71 = arith.constant 6.28318548 : f32
    %123 = math.log %cst_71 : f32
    %cst_72 = arith.constant 4.000000e+00 : f32
    %124 = arith.mulf %cst_72, %123 : f32
    %125 = vector.broadcast %124 : f32 to vector<256x1xf32>
    %126 = arith.subf %122, %125 : vector<256x1xf32>
    %127 = tpu.concatenate %126, %111 in 1 : vector<256x1xf32>, vector<256x1xf32> -> vector<256x2xf32>
    %c0_73 = arith.constant 0 : index
    %c0_74 = arith.constant 0 : index
    %128 = vector.load %arg7[%c0_73, %c0_74] : memref<256x2xf32, #tpu.memory_space<vmem>>, vector<256x2xf32>
    tpu.vector_store %arg7[%c0_73, %c0_74], %127 {strides = array<i32>} : memref<256x2xf32, #tpu.memory_space<vmem>>, vector<256x2xf32>,
    return
  }
  func.func @transform_0(%arg0: i32) -> (i32, i32) {
    %c0_i32 = arith.constant 0 : i32
    %c0_i32_0 = arith.constant 0 : i32
    return %arg0, %c0_i32 : i32, i32
  }
  func.func @transform_1(%arg0: i32) -> (i32, i32, i32) {
    %c0_i32 = arith.constant 0 : i32
    %c0_i32_0 = arith.constant 0 : i32
    %c0_i32_1 = arith.constant 0 : i32
    %c0_i32_2 = arith.constant 0 : i32
    return %c0_i32, %c0_i32_0, %c0_i32_1 : i32, i32, i32
  }
  func.func @transform_2(%arg0: i32) -> (i32, i32, i32) {
    %c0_i32 = arith.constant 0 : i32
    %c0_i32_0 = arith.constant 0 : i32
    %c0_i32_1 = arith.constant 0 : i32
    %c0_i32_2 = arith.constant 0 : i32
    return %c0_i32, %c0_i32_0, %c0_i32_1 : i32, i32, i32
  }
  func.func @transform_3(%arg0: i32) -> (i32, i32, i32) {
    %c0_i32 = arith.constant 0 : i32
    %c0_i32_0 = arith.constant 0 : i32
    %c0_i32_1 = arith.constant 0 : i32
    %c0_i32_2 = arith.constant 0 : i32
    return %c0_i32, %c0_i32_0, %c0_i32_1 : i32, i32, i32
  }
  func.func @transform_4(%arg0: i32) -> (i32, i32, i32) {
    %c0_i32 = arith.constant 0 : i32
    %c0_i32_0 = arith.constant 0 : i32
    %c0_i32_1 = arith.constant 0 : i32
    %c0_i32_2 = arith.constant 0 : i32
    return %c0_i32, %c0_i32_0, %c0_i32_1 : i32, i32, i32
  }
  func.func @transform_5(%arg0: i32) -> (i32, i32) {
    %c0_i32 = arith.constant 0 : i32
    %c0_i32_0 = arith.constant 0 : i32
    return %arg0, %c0_i32 : i32, i32
  }
  func.func @transform_6(%arg0: i32) -> (i32, i32) {
    %c0_i32 = arith.constant 0 : i32
    %c0_i32_0 = arith.constant 0 : i32
    return %arg0, %c0_i32 : i32, i32
  }
}

</mosaic_0001>

<bundles_post_ra>
// kernel: tpu_custom_call.1
= control target key start
LH: loop header
LB: loop body
LE: loop exit
PB: predicated region body
PF: predicated region fallthrough
CT: control target
= control target key end

     0   :  { %vm168_vm0 = vcmask 1043456   ;;  %vm71_vm1 = vcmask 31744   ;;  %vm499_vm2 = vcmask 523264   ;;  %s6823_s11 = smov 4   ;;  %s6824_s18 = smov 124   ;;  %s10206_s1 = inlined_call_operand.vmem [shape: f32[4,4,64], index: 1, kind: input, shape index: {}]   ;;  %s10207_s0 = inlined_call_operand.vmem [shape: f32[256,8], index: 0, kind: input, shape index: {}]   ;;  %s10208_s3 = inlined_call_operand.vmem [shape: f32[4,64,8], index: 3, kind: input, shape index: {}]   ;;  %s10209_s2 = inlined_call_operand.vmem [shape: f32[4,1,64], index: 2, kind: input, shape index: {}]   ;;  %s10210_s4 = inlined_call_operand.vmem [shape: f32[4,1,8], index: 4, kind: input, shape index: {}]   ;;  %s10211_s5 = inlined_call_operand.vmem [shape: f32[256,8], index: 5, kind: output, shape index: {0}]   ;;  %s10212_s6 = inlined_call_operand.vmem [shape: f32[256,2], index: 6, kind: output, shape index: {1}]  }
   0x1   :  { %v54_v0 = vld [vmem:[%s10206_s1] sm:$0xf]  ;;  %v23_v2 = vld [vmem:[%s10207_s0 + $0x8] sm:$0xff]  ;;  %v24_v3 = vld [vmem:[%s10207_s0 + $0x10] sm:$0xff] }
   0x2   :  { %v22_v1 = vld [vmem:[%s10207_s0] sm:$0xff]  ;;  %6033 = vmatprep.subr.msk.mxu0 %vm168_vm0, %v54_v0  ;;  %v25_v4 = vld [vmem:[%s10207_s0 + $0x18] sm:$0xff]  ;;  %v62_v7 = vld [vmem:[%s10208_s3 + $0x30] sm:$0xff] }
   0x3   :  { %6035 = vmatprep.mubr.msk.f32.mxu0 %vm71_vm1, %v22_v1  ;;  %6034 = vmatpush3.msk.msra.mxu0 %vm168_vm0, %v54_v0  ;;  %v26_v5 = vld [vmem:[%s10207_s0 + $0x20] sm:$0xff]  ;;  %v63_v6 = vld [vmem:[%s10208_s3 + $0x38] sm:$0xff]  ;;  %v27_v8 = vld [vmem:[%s10207_s0 + $0x28] sm:$0xff] }
   0x4   :  { %6036 = vmatmul.mubr.msk.f32.vlgmr.msra.gmra.mxu0 %vm71_vm1, %v23_v2  ;;  %6083 = vmatprep.subr.mxu0 %v63_v6  ;;  %v61_v9 = vld [vmem:[%s10208_s3 + $0x28] sm:$0xff]  ;;  %v28_v10 = vld [vmem:[%s10207_s0 + $0x30] sm:$0xff]  ;;  %v60_v11 = vld [vmem:[%s10208_s3 + $0x20] sm:$0xff] }
   0x5   :  { %6038 = vmatprep.mubr.msk.f32.mxu0 %vm71_vm1, %v24_v3  ;;  %6489 = vmatprep.subr.mxu1 %v63_v6  ;;  %v29_v12 = vld [vmem:[%s10207_s0 + $0x38] sm:$0xff]  ;;  %v30_v14 = vld [vmem:[%s10207_s0 + $0x40] sm:$0xff]  ;;  %v58_v15 = vld [vmem:[%s10208_s3 + $0x10] sm:$0xff] }
   0x6   :  { %6497 = vmatpush3.msra.mxu1 %v63_v6  ;;  %6084 = vmatpush3.msra.mxu0 %v63_v6  ;;  %v59_v13 = vld [vmem:[%s10208_s3 + $0x18] sm:$0xff]  ;;  %v31_v16 = vld [vmem:[%s10207_s0 + $0x48] sm:$0xff]  ;;  %v32_v18 = vld [vmem:[%s10207_s0 + $0x50] sm:$0xff] }
   0x7   :  { %6085 = vmatprep.subr.mxu0 %v62_v7  ;;  %6490 = vmatprep.subr.mxu1 %v62_v7  ;;  %v57_v17 = vld [vmem:[%s10208_s3 + $0x8] sm:$0xff]  ;;  %v33_v19 = vld [vmem:[%s10207_s0 + $0x58] sm:$0xff]  ;;  %v34_v20 = vld [vmem:[%s10207_s0 + $0x60] sm:$0xff] }
   0x8   :  { %6039 = vmatmul.mubr.msk.f32.gmra.mxu0 %vm71_vm1, %v25_v4  ;;  %6498 = vmatpush3.msra.mxu1 %v62_v7  ;;  %v35_v21 = vld [vmem:[%s10207_s0 + $0x68] sm:$0xff]  ;;  %v36_v22 = vld [vmem:[%s10207_s0 + $0x70] sm:$0xff]  ;;  %v37_v23 = vld [vmem:[%s10207_s0 + $0x78] sm:$0xff] }
   0x9   :  { %6041 = vmatprep.mubr.msk.f32.mxu0 %vm71_vm1, %v26_v5  ;;  %6086 = vmatpush3.msra.mxu0 %v62_v7  ;;  %v38_v24 = vld [vmem:[%s10207_s0 + $0x80] sm:$0xff]  ;;  %v39_v25 = vld [vmem:[%s10207_s0 + $0x88] sm:$0xff]  ;;  %v40_v26 = vld [vmem:[%s10207_s0 + $0x90] sm:$0xff] }
   0xa   :  { %6087 = vmatprep.subr.mxu0 %v61_v9  ;;  %6491 = vmatprep.subr.mxu1 %v61_v9  ;;  %v41_v27 = vld [vmem:[%s10207_s0 + $0x98] sm:$0xff]  ;;  %v42_v28 = vld [vmem:[%s10207_s0 + $0xa0] sm:$0xff]  ;;  %v43_v29 = vld [vmem:[%s10207_s0 + $0xa8] sm:$0xff] }
   0xb   :  { %6088 = vmatpush3.msra.mxu0 %v61_v9  ;;  %6499 = vmatpush3.msra.mxu1 %v61_v9  ;;  %v44_v30 = vld [vmem:[%s10207_s0 + $0xb0] sm:$0xff]  ;;  %v45_v31 = vld [vmem:[%s10207_s0 + $0xb8] sm:$0xff]  ;;  %v46_v32 = vld [vmem:[%s10207_s0 + $0xc0] sm:$0xff] }
   0xc   :  { %6042 = vmatmul.mubr.msk.f32.gmra.mxu0 %vm71_vm1, %v27_v8  ;;  %6089 = vmatprep.subr.mxu0 %v60_v11  ;;  %v47_v33 = vld [vmem:[%s10207_s0 + $0xc8] sm:$0xff]  ;;  %v48_v34 = vld [vmem:[%s10207_s0 + $0xd0] sm:$0xff]  ;;  %v49_v35 = vld [vmem:[%s10207_s0 + $0xd8] sm:$0xff] }
   0xd   :  { %6044 = vmatprep.mubr.msk.f32.mxu0 %vm71_vm1, %v28_v10  ;;  %6090 = vmatpush3.msra.mxu0 %v60_v11  ;;  %v50_v36 = vld [vmem:[%s10207_s0 + $0xe0] sm:$0xff]  ;;  %v51_v37 = vld [vmem:[%s10207_s0 + $0xe8] sm:$0xff]  ;;  %v52_v38 = vld [vmem:[%s10207_s0 + $0xf0] sm:$0xff] }
   0xe   :  { %6091 = vmatprep.subr.mxu0 %v59_v13  ;;  %6492 = vmatprep.subr.mxu1 %v60_v11  ;;  %v53_v39 = vld [vmem:[%s10207_s0 + $0xf8] sm:$0xff]  ;;  %v56_v40 = vld [vmem:[%s10208_s3] sm:$0xff] }
   0xf   :  { %6092 = vmatpush3.msra.mxu0 %v59_v13  ;;  %6500 = vmatpush3.msra.mxu1 %v60_v11  ;;  %v7020_v41 = vld [vmem:[%s10209_s2] ss:$0 sm:$0xff] }
  0x10   :  { %6045 = vmatmul.mubr.msk.f32.gmra.mxu0 %vm71_vm1, %v29_v12  ;;  %6093 = vmatprep.subr.mxu0 %v58_v15 }
  0x11   :  { %6047 = vmatprep.mubr.msk.f32.mxu0 %vm71_vm1, %v30_v14  ;;  %6094 = vmatpush3.msra.mxu0 %v58_v15 }
  0x12   :  { %6095 = vmatprep.subr.mxu0 %v57_v17  ;;  %6493 = vmatprep.subr.mxu1 %v59_v13 }
  0x13   :  { %6096 = vmatpush3.msra.mxu0 %v57_v17  ;;  %6501 = vmatpush3.msra.mxu1 %v59_v13 }
  0x14   :  { %6048 = vmatmul.mubr.msk.f32.gmra.mxu0 %vm71_vm1, %v31_v16  ;;  %6494 = vmatprep.subr.mxu1 %v58_v15 }
  0x15   :  { %6050 = vmatprep.mubr.msk.f32.mxu0 %vm71_vm1, %v32_v18  ;;  %6502 = vmatpush3.msra.mxu1 %v58_v15 }
  0x16   :  { %6495 = vmatprep.subr.mxu1 %v57_v17  ;;  %6097 = vmatprep.subr.mxu0 %v56_v40 }
  0x17   :  { %6503 = vmatpush3.msra.mxu1 %v57_v17  ;;  %6098 = vmatpush3.msra.mxu0 %v56_v40 }
  0x18   :  { %6051 = vmatmul.mubr.msk.f32.gmra.mxu0 %vm71_vm1, %v33_v19  ;;  %6496 = vmatprep.subr.mxu1 %v56_v40 }
  0x19   :  { %6053 = vmatprep.mubr.msk.f32.mxu0 %vm71_vm1, %v34_v20  ;;  %6504 = vmatpush3.msra.mxu1 %v56_v40 }
  0x1c   :  { %6054 = vmatmul.mubr.msk.f32.gmra.mxu0 %vm71_vm1, %v35_v21 }
  0x1d   :  { %6056 = vmatprep.mubr.msk.f32.mxu0 %vm71_vm1, %v36_v22 }
  0x20   :  { %6057 = vmatmul.mubr.msk.f32.gmra.mxu0 %vm71_vm1, %v37_v23 }
  0x21   :  { %6059 = vmatprep.mubr.msk.f32.mxu0 %vm71_vm1, %v38_v24 }
  0x24   :  { %6060 = vmatmul.mubr.msk.f32.gmra.mxu0 %vm71_vm1, %v39_v25 }
  0x25   :  { %6062 = vmatprep.mubr.msk.f32.mxu0 %vm71_vm1, %v40_v26 }
  0x28   :  { %6063 = vmatmul.mubr.msk.f32.gmra.mxu0 %vm71_vm1, %v41_v27 }
  0x29   :  { %6065 = vmatprep.mubr.msk.f32.mxu0 %vm71_vm1, %v42_v28 }
  0x2c   :  { %6066 = vmatmul.mubr.msk.f32.gmra.mxu0 %vm71_vm1, %v43_v29 }
  0x2d   :  { %6068 = vmatprep.mubr.msk.f32.mxu0 %vm71_vm1, %v44_v30 }
  0x30   :  { %6069 = vmatmul.mubr.msk.f32.gmra.mxu0 %vm71_vm1, %v45_v31 }
  0x31   :  { %6071 = vmatprep.mubr.msk.f32.mxu0 %vm71_vm1, %v46_v32 }
  0x34   :  { %6072 = vmatmul.mubr.msk.f32.gmra.mxu0 %vm71_vm1, %v47_v33 }
  0x35   :  { %6074 = vmatprep.mubr.msk.f32.mxu0 %vm71_vm1, %v48_v34 }
  0x38   :  { %6075 = vmatmul.mubr.msk.f32.gmra.mxu0 %vm71_vm1, %v49_v35 }
  0x39   :  { %6077 = vmatprep.mubr.msk.f32.mxu0 %vm71_vm1, %v50_v36 }
  0x3c   :  { %6078 = vmatmul.mubr.msk.f32.gmra.mxu0 %vm71_vm1, %v51_v37 }
  0x3d   :  { %6080 = vmatprep.mubr.msk.f32.mxu0 %vm71_vm1, %v52_v38 }
  0x40   :  { %6081 = vmatmul.mubr.msk.f32.gmra.mxu0 %vm71_vm1, %v53_v39 }
  0xc4   :  { %v6037_v42 = vpop.f32.mrf.mxu0 }
  0xc5   :  { %v244_v43 = vadd.f32 %v6037_v42, %v7020_v41 }
  0xc6   :  { %v238_v44 = vpop.f32.mrf.mxu0 }
  0xc7   :  { %v239_v45 = vadd.f32 %v7020_v41, %v238_v44  ;;  %v430_v46 = vmul.f32 0.01, %v244_v43  ;;  %vm398_vm3 = vcmp.gt.f32.partialorder %v244_v43, 0.0 }
  0xc8   :  { %v6040_v47 = vpop.f32.mrf.mxu0 }
  0xc9   :  { %v429_v48 = vmul.f32 0.01, %v239_v45  ;;  %v254_v49 = vadd.f32 %v6040_v47, %v7020_v41  ;;  %vm397_vm4 = vcmp.gt.f32.partialorder %v239_v45, 0.0  ;;  %v462_v53 = vsel %vm398_vm3, %v244_v43, %v430_v46 }
  0xca   :  { %v248_v50 = vpop.f32.mrf.mxu0 }
  0xcb   :  { %v249_v51 = vadd.f32 %v7020_v41, %v248_v50  ;;  %v461_v52 = vsel %vm397_vm4, %v239_v45, %v429_v48  ;;  %v432_v54 = vmul.f32 0.01, %v254_v49  ;;  %vm400_vm5 = vcmp.gt.f32.partialorder %v254_v49, 0.0 }
  0xcc   :  { %v6043_v55 = vpop.f32.mrf.mxu0  ;;  %6099 = vmatprep.mubr.msk.f32.mxu0 %vm499_vm2, %v461_v52 }
  0xcd   :  { %v264_v56 = vadd.f32 %v6043_v55, %v7020_v41  ;;  %6100 = vmatmul.mubr.msk.f32.vlgmr.msra.gmra.mxu0 %vm499_vm2, %v462_v53  ;;  %vm399_vm6 = vcmp.gt.f32.partialorder %v249_v51, 0.0  ;;  %v431_v57 = vmul.f32 0.01, %v249_v51  ;;  %v464_v63 = vsel %vm400_vm5, %v254_v49, %v432_v54 }
  0xce   :  { %v258_v58 = vpop.f32.mrf.mxu0 }
  0xcf   :  { %vm402_vm7 = vcmp.gt.f32.partialorder %v264_v56, 0.0  ;;  %v434_v59 = vmul.f32 0.01, %v264_v56  ;;  %v259_v60 = vadd.f32 %v7020_v41, %v258_v58  ;;  %v463_v61 = vsel %vm399_vm6, %v249_v51, %v431_v57 }
  0xd0   :  { %v6046_v62 = vpop.f32.mrf.mxu0  ;;  %6102 = vmatprep.mubr.msk.f32.mxu1 %vm499_vm2, %v463_v61 }
  0xd1   :  { %v433_v0 = vmul.f32 0.01, %v259_v60  ;;  %v274_v1 = vadd.f32 %v6046_v62, %v7020_v41  ;;  %6103 = vmatmul.mubr.msk.f32.vlgmr.msra.gmra.mxu1 %vm499_vm2, %v464_v63  ;;  %vm401_vm8 = vcmp.gt.f32.partialorder %v259_v60, 0.0  ;;  %v466_v3 = vsel %vm402_vm7, %v264_v56, %v434_v59 }
  0xd2   :  { %v268_v2 = vpop.f32.mrf.mxu0 }
  0xd3   :  { %vm404_vm9 = vcmp.gt.f32.partialorder %v274_v1, 0.0  ;;  %v436_v4 = vmul.f32 0.01, %v274_v1  ;;  %v269_v5 = vadd.f32 %v7020_v41, %v268_v2  ;;  %v465_v6 = vsel %vm401_vm8, %v259_v60, %v433_v0 }
  0xd4   :  { %6105 = vmatprep.mubr.msk.f32.mxu1 %vm499_vm2, %v465_v6  ;;  %v6049_v7 = vpop.f32.mrf.mxu0 }
  0xd5   :  { %v435_v8 = vmul.f32 0.01, %v269_v5  ;;  %6106 = vmatmul.mubr.msk.f32.gmra.mxu1 %vm499_vm2, %v466_v3  ;;  %vm403_vm10 = vcmp.gt.f32.partialorder %v269_v5, 0.0  ;;  %v284_v9 = vadd.f32 %v6049_v7, %v7020_v41  ;;  %v468_v10 = vsel %vm404_vm9, %v274_v1, %v436_v4 }
  0xd6   :  { %v278_v11 = vpop.f32.mrf.mxu0 }
  0xd7   :  { %v467_v12 = vsel %vm403_vm10, %v269_v5, %v435_v8  ;;  %vm406_vm11 = vcmp.gt.f32.partialorder %v284_v9, 0.0  ;;  %v438_v13 = vmul.f32 0.01, %v284_v9  ;;  %v279_v14 = vadd.f32 %v7020_v41, %v278_v11 }
  0xd8   :  { %6108 = vmatprep.mubr.msk.f32.mxu1 %vm499_vm2, %v467_v12  ;;  %v6052_v15 = vpop.f32.mrf.mxu0 }
  0xd9   :  { %6109 = vmatmul.mubr.msk.f32.gmra.mxu1 %vm499_vm2, %v468_v10  ;;  %v437_v16 = vmul.f32 0.01, %v279_v14  ;;  %vm405_vm12 = vcmp.gt.f32.partialorder %v279_v14, 0.0  ;;  %v294_v17 = vadd.f32 %v6052_v15, %v7020_v41  ;;  %v470_v18 = vsel %vm406_vm11, %v284_v9, %v438_v13 }
  0xda   :  { %v288_v19 = vpop.f32.mrf.mxu0 }
  0xdb   :  { %v469_v20 = vsel %vm405_vm12, %v279_v14, %v437_v16  ;;  %vm408_vm13 = vcmp.gt.f32.partialorder %v294_v17, 0.0  ;;  %v440_v21 = vmul.f32 0.01, %v294_v17  ;;  %v289_v22 = vadd.f32 %v7020_v41, %v288_v19 }
  0xdc   :  { %6111 = vmatprep.mubr.msk.f32.mxu1 %vm499_vm2, %v469_v20  ;;  %v6055_v23 = vpop.f32.mrf.mxu0 }
  0xdd   :  { %6112 = vmatmul.mubr.msk.f32.gmra.mxu1 %vm499_vm2, %v470_v18  ;;  %v439_v24 = vmul.f32 0.01, %v289_v22  ;;  %vm407_vm14 = vcmp.gt.f32.partialorder %v289_v22, 0.0  ;;  %v304_v25 = vadd.f32 %v6055_v23, %v7020_v41  ;;  %v472_v26 = vsel %vm408_vm13, %v294_v17, %v440_v21 }
  0xde   :  { %v298_v27 = vpop.f32.mrf.mxu0 }
  0xdf   :  { %v471_v28 = vsel %vm407_vm14, %v289_v22, %v439_v24  ;;  %vm410_vm15 = vcmp.gt.f32.partialorder %v304_v25, 0.0  ;;  %v442_v29 = vmul.f32 0.01, %v304_v25  ;;  %v299_v30 = vadd.f32 %v7020_v41, %v298_v27 }
  0xe0   :  { %6114 = vmatprep.mubr.msk.f32.mxu1 %vm499_vm2, %v471_v28  ;;  %v6058_v31 = vpop.f32.mrf.mxu0 }
  0xe1   :  { %6115 = vmatmul.mubr.msk.f32.gmra.mxu1 %vm499_vm2, %v472_v26  ;;  %v441_v32 = vmul.f32 0.01, %v299_v30  ;;  %vm409_vm3 = vcmp.gt.f32.partialorder %v299_v30, 0.0  ;;  %v314_v33 = vadd.f32 %v6058_v31, %v7020_v41  ;;  %v474_v34 = vsel %vm410_vm15, %v304_v25, %v442_v29 }
  0xe2   :  { %v308_v35 = vpop.f32.mrf.mxu0 }
  0xe3   :  { %v473_v36 = vsel %vm409_vm3, %v299_v30, %v441_v32  ;;  %vm412_vm4 = vcmp.gt.f32.partialorder %v314_v33, 0.0  ;;  %v444_v37 = vmul.f32 0.01, %v314_v33  ;;  %v309_v38 = vadd.f32 %v7020_v41, %v308_v35 }
  0xe4   :  { %6117 = vmatprep.mubr.msk.f32.mxu1 %vm499_vm2, %v473_v36  ;;  %v6061_v39 = vpop.f32.mrf.mxu0 }
  0xe5   :  { %6118 = vmatmul.mubr.msk.f32.gmra.mxu1 %vm499_vm2, %v474_v34  ;;  %v443_v40 = vmul.f32 0.01, %v309_v38  ;;  %v324_v42 = vadd.f32 %v6061_v39, %v7020_v41  ;;  %vm411_vm5 = vcmp.gt.f32.partialorder %v309_v38, 0.0  ;;  %v476_v44 = vsel %vm412_vm4, %v314_v33, %v444_v37 }
  0xe6   :  { %v318_v43 = vpop.f32.mrf.mxu0 }
  0xe7   :  { %vm414_vm6 = vcmp.gt.f32.partialorder %v324_v42, 0.0  ;;  %v446_v45 = vmul.f32 0.01, %v324_v42  ;;  %v319_v46 = vadd.f32 %v7020_v41, %v318_v43  ;;  %v475_v47 = vsel %vm411_vm5, %v309_v38, %v443_v40 }
  0xe8   :  { %v6064_v48 = vpop.f32.mrf.mxu0  ;;  %6120 = vmatprep.mubr.msk.f32.mxu1 %vm499_vm2, %v475_v47 }
  0xe9   :  { %v445_v49 = vmul.f32 0.01, %v319_v46  ;;  %v334_v50 = vadd.f32 %v6064_v48, %v7020_v41  ;;  %6121 = vmatmul.mubr.msk.f32.gmra.mxu1 %vm499_vm2, %v476_v44  ;;  %vm413_vm7 = vcmp.gt.f32.partialorder %v319_v46, 0.0  ;;  %v478_v52 = vsel %vm414_vm6, %v324_v42, %v446_v45  ;;  %v7089_v44 = vld [vmem:[%s10210_s4] ss:$0 sm:$0xff] }
  0xea   :  { %v328_v51 = vpop.f32.mrf.mxu0 }
  0xeb   :  { %vm416_vm8 = vcmp.gt.f32.partialorder %v334_v50, 0.0  ;;  %v448_v53 = vmul.f32 0.01, %v334_v50  ;;  %v329_v54 = vadd.f32 %v7020_v41, %v328_v51  ;;  %v477_v55 = vsel %vm413_vm7, %v319_v46, %v445_v49 }
  0xec   :  { %v6067_v56 = vpop.f32.mrf.mxu0  ;;  %6123 = vmatprep.mubr.msk.f32.mxu1 %vm499_vm2, %v477_v55 }
  0xed   :  { %vm415_vm9 = vcmp.gt.f32.partialorder %v329_v54, 0.0  ;;  %v447_v57 = vmul.f32 0.01, %v329_v54  ;;  %v344_v58 = vadd.f32 %v6067_v56, %v7020_v41  ;;  %6124 = vmatmul.mubr.msk.f32.gmra.mxu1 %vm499_vm2, %v478_v52  ;;  %v480_v60 = vsel %vm416_vm8, %v334_v50, %v448_v53 }
  0xee   :  { %v338_v59 = vpop.f32.mrf.mxu0 }
  0xef   :  { %vm418_vm10 = vcmp.gt.f32.partialorder %v344_v58, 0.0  ;;  %v450_v61 = vmul.f32 0.01, %v344_v58  ;;  %v339_v62 = vadd.f32 %v7020_v41, %v338_v59  ;;  %v479_v63 = vsel %vm415_vm9, %v329_v54, %v447_v57 }
  0xf0   :  { %v6070_v0 = vpop.f32.mrf.mxu0  ;;  %6126 = vmatprep.mubr.msk.f32.mxu1 %vm499_vm2, %v479_v63 }
  0xf1   :  { %vm417_vm11 = vcmp.gt.f32.partialorder %v339_v62, 0.0  ;;  %v449_v1 = vmul.f32 0.01, %v339_v62  ;;  %v354_v2 = vadd.f32 %v6070_v0, %v7020_v41  ;;  %6127 = vmatmul.mubr.msk.f32.gmra.mxu1 %vm499_vm2, %v480_v60  ;;  %v482_v4 = vsel %vm418_vm10, %v344_v58, %v450_v61 }
  0xf2   :  { %v348_v3 = vpop.f32.mrf.mxu0 }
  0xf3   :  { %vm420_vm12 = vcmp.gt.f32.partialorder %v354_v2, 0.0  ;;  %v452_v5 = vmul.f32 0.01, %v354_v2  ;;  %v349_v6 = vadd.f32 %v7020_v41, %v348_v3  ;;  %v481_v7 = vsel %vm417_vm11, %v339_v62, %v449_v1 }
  0xf4   :  { %v6073_v8 = vpop.f32.mrf.mxu0  ;;  %6129 = vmatprep.mubr.msk.f32.mxu1 %vm499_vm2, %v481_v7 }
  0xf5   :  { %vm419_vm13 = vcmp.gt.f32.partialorder %v349_v6, 0.0  ;;  %v451_v9 = vmul.f32 0.01, %v349_v6  ;;  %v364_v10 = vadd.f32 %v6073_v8, %v7020_v41  ;;  %6130 = vmatmul.mubr.msk.f32.gmra.mxu1 %vm499_vm2, %v482_v4  ;;  %v484_v12 = vsel %vm420_vm12, %v354_v2, %v452_v5 }
  0xf6   :  { %v358_v11 = vpop.f32.mrf.mxu0 }
  0xf7   :  { %vm422_vm14 = vcmp.gt.f32.partialorder %v364_v10, 0.0  ;;  %v454_v13 = vmul.f32 0.01, %v364_v10  ;;  %v359_v14 = vadd.f32 %v7020_v41, %v358_v11  ;;  %v483_v15 = vsel %vm419_vm13, %v349_v6, %v451_v9 }
  0xf8   :  { %v6076_v16 = vpop.f32.mrf.mxu0  ;;  %6132 = vmatprep.mubr.msk.f32.mxu1 %vm499_vm2, %v483_v15 }
  0xf9   :  { %vm421_vm15 = vcmp.gt.f32.partialorder %v359_v14, 0.0  ;;  %v453_v17 = vmul.f32 0.01, %v359_v14  ;;  %v374_v18 = vadd.f32 %v6076_v16, %v7020_v41  ;;  %6133 = vmatmul.mubr.msk.f32.gmra.mxu1 %vm499_vm2, %v484_v12  ;;  %v486_v20 = vsel %vm422_vm14, %v364_v10, %v454_v13 }
  0xfa   :  { %v368_v19 = vpop.f32.mrf.mxu0 }
  0xfb   :  { %vm424_vm3 = vcmp.gt.f32.partialorder %v374_v18, 0.0  ;;  %v456_v21 = vmul.f32 0.01, %v374_v18  ;;  %v369_v22 = vadd.f32 %v7020_v41, %v368_v19  ;;  %v485_v23 = vsel %vm421_vm15, %v359_v14, %v453_v17 }
  0xfc   :  { %v6079_v24 = vpop.f32.mrf.mxu0  ;;  %6135 = vmatprep.mubr.msk.f32.mxu1 %vm499_vm2, %v485_v23 }
  0xfd   :  { %vm423_vm4 = vcmp.gt.f32.partialorder %v369_v22, 0.0  ;;  %v455_v25 = vmul.f32 0.01, %v369_v22  ;;  %v384_v26 = vadd.f32 %v6079_v24, %v7020_v41  ;;  %6136 = vmatmul.mubr.msk.f32.gmra.mxu1 %vm499_vm2, %v486_v20  ;;  %v488_v28 = vsel %vm424_vm3, %v374_v18, %v456_v21 }
  0xfe   :  { %v378_v27 = vpop.f32.mrf.mxu0 }
  0xff   :  { %vm426_vm5 = vcmp.gt.f32.partialorder %v384_v26, 0.0  ;;  %v458_v29 = vmul.f32 0.01, %v384_v26  ;;  %v379_v30 = vadd.f32 %v7020_v41, %v378_v27  ;;  %v487_v31 = vsel %vm423_vm4, %v369_v22, %v455_v25 }
 0x100   :  { %v6082_v32 = vpop.f32.mrf.mxu0  ;;  %6138 = vmatprep.mubr.msk.f32.mxu1 %vm499_vm2, %v487_v31 }
 0x101   :  { %vm425_vm6 = vcmp.gt.f32.partialorder %v379_v30, 0.0  ;;  %v457_v33 = vmul.f32 0.01, %v379_v30  ;;  %v394_v34 = vadd.f32 %v6082_v32, %v7020_v41  ;;  %6139 = vmatmul.mubr.msk.f32.gmra.mxu1 %vm499_vm2, %v488_v28  ;;  %v490_v36 = vsel %vm426_vm5, %v384_v26, %v458_v29 }
 0x102   :  { %v388_v35 = vpop.f32.mrf.mxu0 }
 0x103   :  { %vm428_vm7 = vcmp.gt.f32.partialorder %v394_v34, 0.0  ;;  %v460_v37 = vmul.f32 0.01, %v394_v34  ;;  %v389_v38 = vadd.f32 %v7020_v41, %v388_v35  ;;  %v489_v39 = vsel %vm425_vm6, %v379_v30, %v457_v33 }
 0x104   :  { %6141 = vmatprep.mubr.msk.f32.mxu1 %vm499_vm2, %v489_v39 }
 0x105   :  { %vm427_vm8 = vcmp.gt.f32.partialorder %v389_v38, 0.0  ;;  %v459_v40 = vmul.f32 0.01, %v389_v38  ;;  %6142 = vmatmul.mubr.msk.f32.gmra.mxu1 %vm499_vm2, %v490_v36  ;;  %v492_v42 = vsel %vm428_vm7, %v394_v34, %v460_v37 }
 0x107   :  { %v491_v43 = vsel %vm427_vm8, %v389_v38, %v459_v40 }
 0x108   :  { %6144 = vmatprep.mubr.msk.f32.mxu1 %vm499_vm2, %v491_v43 }
 0x109   :  { %6145 = vmatmul.mubr.msk.f32.gmra.mxu1 %vm499_vm2, %v492_v42 }
 0x18d   :  { %v6101_v45 = vpop.f32.mrf.mxu0 }
 0x18e   :  { %v7092_v41 = vadd.f32 %v6101_v45, %v7089_v44 }
 0x18f   :  { %v662_v46 = vpop.f32.mrf.mxu0 }
 0x190   :  { %v7095_v47 = vadd.f32 %v7089_v44, %v662_v46  ;;  %v1080_v48 = vsel %vm71_vm1, %v7092_v41, 0.0  ;;  %v823_v5 = vmul.f32 1.442695, %v7092_v41 }
 0x191   :  { %v6104_v49 = vpop.f32.mrf.mxu1  ;;  %1081 = vadd.xlane.f32.xlu1 %v1080_v48 }
 0x192   :  { %v7100_v50 = vadd.f32 %v6104_v49, %v7089_v44  ;;  %v1077_v51 = vsel %vm71_vm1, %v7095_v47, 0.0  ;;  %v821_v17 = vmul.f32 1.442695, %v7095_v47 }
 0x193   :  { %v672_v52 = vpop.f32.mrf.mxu1  ;;  %1078 = vadd.xlane.f32.xlu0 %v1077_v51 }
 0x194   :  { %v7105_v54 = vadd.f32 %v7089_v44, %v672_v52  ;;  %v1086_v55 = vsel %vm71_vm1, %v7100_v50, 0.0  ;;  %v827_v3 = vmul.f32 1.442695, %v7100_v50 }
 0x195   :  { %v6107_v53 = vpop.f32.mrf.mxu1 }
 0x196   :  { %v7113_v59 = vadd.f32 %v6107_v53, %v7089_v44  ;;  %v1083_v62 = vsel %vm71_vm1, %v7105_v54, 0.0  ;;  %6507 = vpow2.f32 %v827_v3  ;;  %v825_v6 = vmul.f32 1.442695, %v7105_v54 }
 0x197   :  { %v682_v56 = vpop.f32.mrf.mxu1  ;;  %1087 = vadd.xlane.f32.xlu0 %v1086_v55  ;;  %6509 = vpow2.f32 %v823_v5 }
 0x198   :  { %v7110_v57 = vadd.f32 %v7089_v44, %v682_v56  ;;  %v1092_v2 = vsel %vm71_vm1, %v7113_v59, 0.0  ;;  %6511 = vpow2.f32 %v825_v6  ;;  %v831_v18 = vmul.f32 1.442695, %v7113_v59 }
 0x199   :  { %v6110_v58 = vpop.f32.mrf.mxu1  ;;  %6513 = vpow2.f32 %v821_v17 }
 0x19a   :  { %v7116_v60 = vadd.f32 %v6110_v58, %v7089_v44  ;;  %v1089_v61 = vsel %vm71_vm1, %v7110_v57, 0.0  ;;  %6515 = vpow2.f32 %v831_v18  ;;  %v829_v33 = vmul.f32 1.442695, %v7110_v57 }
 0x19b   :  { %v692_v63 = vpop.f32.mrf.mxu1  ;;  %1090 = vadd.xlane.f32.xlu1 %v1089_v61  ;;  %1084 = vadd.xlane.f32.xlu0 %v1083_v62 }
 0x19c   :  { %v1098_v0 = vsel %vm71_vm1, %v7116_v60, 0.0  ;;  %v7125_v1 = vadd.f32 %v7089_v44, %v692_v63  ;;  %v835_v30 = vmul.f32 1.442695, %v7116_v60 }
 0x19d   :  { %v6113_v10 = vpop.f32.mrf.mxu1 }
 0x19e   :  { %v1095_v4 = vsel %vm71_vm1, %v7125_v1, 0.0  ;;  %v7138_v12 = vadd.f32 %v6113_v10, %v7089_v44  ;;  %6517 = vpow2.f32 %v835_v30  ;;  %v833_v45 = vmul.f32 1.442695, %v7125_v1 }
 0x19f   :  { %1099 = vadd.xlane.f32.xlu1 %v1098_v0  ;;  %1093 = vadd.xlane.f32.xlu0 %v1092_v2  ;;  %v702_v11 = vpop.f32.mrf.mxu1  ;;  %6519 = vpow2.f32 %v829_v33 }
 0x1a0   :  { %v1104_v14 = vsel %vm71_vm1, %v7138_v12, 0.0  ;;  %v7152_v22 = vadd.f32 %v7089_v44, %v702_v11  ;;  %v839_v40 = vmul.f32 1.442695, %v7138_v12 }
 0x1a1   :  { %v6116_v13 = vpop.f32.mrf.mxu1 }
 0x1a2   :  { %v7155_v24 = vadd.f32 %v6116_v13, %v7089_v44  ;;  %v1101_v25 = vsel %vm71_vm1, %v7152_v22, 0.0  ;;  %6521 = vpow2.f32 %v839_v40  ;;  %v837_v61 = vmul.f32 1.442695, %v7152_v22 }
 0x1a3   :  { %1096 = vadd.xlane.f32.xlu1 %v1095_v4  ;;  %v6508_v7 = vpop.eup %6507  ;;  %v712_v15 = vpop.f32.mrf.mxu1  ;;  %6523 = vpow2.f32 %v833_v45 }
 0x1a4   :  { %v6510_v8 = vpop.eup %6509  ;;  %v7143_v16 = vadd.f32 %v7089_v44, %v712_v15  ;;  %v1110_v29 = vsel %vm71_vm1, %v7155_v24, 0.0  ;;  %v843_v55 = vmul.f32 1.442695, %v7155_v24 }
 0x1a5   :  { %v6512_v9 = vpop.eup %6511  ;;  %v6119_v23 = vpop.f32.mrf.mxu1 }
 0x1a6   :  { %v1107_v19 = vsel %vm71_vm1, %v7143_v16, 0.0  ;;  %v6514_v20 = vpop.eup %6513  ;;  %v7160_v27 = vadd.f32 %v6119_v23, %v7089_v44  ;;  %6525 = vpow2.f32 %v843_v55 }
 0x1a7   :  { %v6516_v21 = vpop.eup %6515  ;;  %v722_v26 = vpop.f32.mrf.mxu1  ;;  %6527 = vpow2.f32 %v837_v61 }
 0x1a8   :  { %v7163_v28 = vadd.f32 %v7089_v44, %v722_v26  ;;  %v1116_v32 = vsel %vm71_vm1, %v7160_v27, 0.0  ;;  %v847_v5 = vmul.f32 1.442695, %v7160_v27 }
 0x1a9   :  { %v6122_v36 = vpop.f32.mrf.mxu1 }
 0x1aa   :  { %v1113_v31 = vsel %vm71_vm1, %v7163_v28, 0.0  ;;  %v7176_v38 = vadd.f32 %v6122_v36, %v7089_v44  ;;  %6529 = vpow2.f32 %v847_v5 }
 0x1ab   :  { %v6518_v34 = vpop.eup %6517  ;;  %v732_v37 = vpop.f32.mrf.mxu1 }
 0x1ac   :  { %v6520_v35 = vpop.eup %6519  ;;  %v7179_v39 = vadd.f32 %v7089_v44, %v732_v37  ;;  %v1122_v43 = vsel %vm71_vm1, %v7176_v38, 0.0  ;;  %v851_v17 = vmul.f32 1.442695, %v7176_v38 }
 0x1ad   :  { %v6125_v49 = vpop.f32.mrf.mxu1 }
 0x1ae   :  { %v1119_v42 = vsel %vm71_vm1, %v7179_v39, 0.0  ;;  %v7190_v52 = vadd.f32 %v6125_v49, %v7089_v44 }
 0x1af   :  { %v6522_v46 = vpop.eup %6521  ;;  %v742_v51 = vpop.f32.mrf.mxu1 }
 0x1b0   :  { %v6524_v48 = vpop.eup %6523  ;;  %v7193_v53 = vadd.f32 %v7089_v44, %v742_v51  ;;  %v1128_v58 = vsel %vm71_vm1, %v7190_v52, 0.0 }
 0x1b1   :  { %v6128_v0 = vpop.f32.mrf.mxu1 }
 0x1b2   :  { %v1125_v56 = vsel %vm71_vm1, %v7193_v53, 0.0  ;;  %v7204_v3 = vadd.f32 %v6128_v0, %v7089_v44  ;;  %v853_v49 = vmul.f32 1.442695, %v7193_v53 }
 0x1b3   :  { %v6526_v62 = vpop.eup %6525  ;;  %v752_v2 = vpop.f32.mrf.mxu1 }
 0x1b4   :  { %923 = vrot.lane.b32.xlu1 %v6508_v7, %s6823_s11  ;;  %v6528_v63 = vpop.eup %6527  ;;  %v7207_v4 = vadd.f32 %v7089_v44, %v752_v2  ;;  %v1134_v7 = vsel %vm71_vm1, %v7204_v3, 0.0  ;;  %v859_v45 = vmul.f32 1.442695, %v7204_v3 }
 0x1b5   :  { %919 = vrot.lane.b32.xlu0 %v6510_v8, %s6823_s11  ;;  %v841_v8 = vmul.f32 1.442695, %v7143_v16  ;;  %v6131_v11 = vpop.f32.mrf.mxu1 }
 0x1b6   :  { %v1131_v6 = vsel %vm71_vm1, %v7207_v4, 0.0  ;;  %v857_v5 = vmul.f32 1.442695, %v7207_v4 }
 0x1b7   :  { %6531 = vpow2.f32 %v841_v8  ;;  %v762_v13 = vpop.f32.mrf.mxu1 }
 0x1b8   :  { %921 = vrot.lane.b32.xlu1 %v6512_v9, %s6823_s11  ;;  %v6530_v9 = vpop.eup %6529  ;;  %v7221_v15 = vadd.f32 %v7089_v44, %v762_v13  ;;  %6533 = vpow2.f32 %v851_v17 }
 0x1ba   :  { %v1137_v18 = vsel %vm71_vm1, %v7221_v15, 0.0 }
 0x1c4   :  { %v6532_v10 = vpop.eup %6531 }
 0x1d4   :  { %1105 = vadd.xlane.f32.xlu0 %v1104_v14  ;;  %v7218_v14 = vadd.f32 %v6131_v11, %v7089_v44 }
 0x1dc   :  { %1108 = vadd.xlane.f32.xlu1 %v1107_v19  ;;  %v1140_v19 = vsel %vm71_vm1, %v7218_v14, 0.0 }
 0x1ea   :  { %917 = vrot.lane.b32.xlu0 %v6514_v20, %s6823_s11  ;;  %v845_v20 = vmul.f32 1.442695, %v7163_v28 }
 0x1ec   :  { %6535 = vpow2.f32 %v845_v20 }
 0x1ed   :  { %927 = vrot.lane.b32.xlu1 %v6516_v21, %s6823_s11  ;;  %v6534_v21 = vpop.eup %6533 }
 0x1f9   :  { %v6536_v23 = vpop.eup %6535 }
 0x209   :  { %1102 = vadd.xlane.f32.xlu0 %v1101_v25  ;;  %v6134_v25 = vpop.f32.mrf.mxu1 }
 0x20b   :  { %v772_v26 = vpop.f32.mrf.mxu1 }
 0x20c   :  { %v7235_v30 = vadd.f32 %v7089_v44, %v772_v26 }
 0x20d   :  { %1111 = vadd.xlane.f32.xlu0 %v1110_v29  ;;  %v7232_v29 = vadd.f32 %v6134_v25, %v7089_v44  ;;  %v6137_v37 = vpop.f32.mrf.mxu1  ;;  %v861_v25 = vmul.f32 1.442695, %v7221_v15 }
 0x20f   :  { %v1146_v33 = vsel %vm71_vm1, %v7232_v29, 0.0  ;;  %v782_v40 = vpop.f32.mrf.mxu1 }
 0x211   :  { %1114 = vadd.xlane.f32.xlu1 %v1113_v31  ;;  %1117 = vadd.xlane.f32.xlu0 %v1116_v32  ;;  %v855_v31 = vmul.f32 1.442695, %v7190_v52  ;;  %v1143_v32 = vsel %vm71_vm1, %v7235_v30, 0.0 }
 0x213   :  { %6537 = vpow2.f32 %v855_v31 }
 0x21a   :  { %v7281_v17 = vpop.xlane.xlu1 %1081 }
 0x21b   :  { %10262 = vst [vmem:[#allocation3_spill] sm:$0xff] %v7281_v17 }
 0x21c   :  { %v7279_v13 = vpop.xlane.xlu0 %1078 }
 0x21d   :  { %10261 = vst [vmem:[#allocation2_spill] sm:$0xff] %v7279_v13 }
 0x222   :  { %931 = vrot.lane.b32.xlu1 %v6518_v34, %s6823_s11  ;;  %v849_v34 = vmul.f32 1.442695, %v7179_v39 }
 0x224   :  { %6539 = vpow2.f32 %v849_v34 }
 0x225   :  { %6541 = vpow2.f32 %v859_v45 }
 0x226   :  { %6543 = vpow2.f32 %v853_v49 }
 0x227   :  { %925 = vrot.lane.b32.xlu0 %v6520_v35, %s6823_s11  ;;  %v6538_v35 = vpop.eup %6537 }
 0x231   :  { %v6540_v36 = vpop.eup %6539 }
 0x232   :  { %v6542_v51 = vpop.eup %6541 }
 0x233   :  { %v6544_v55 = vpop.eup %6543 }
 0x246   :  { %1120 = vadd.xlane.f32.xlu1 %v1119_v42  ;;  %1123 = vadd.xlane.f32.xlu0 %v1122_v43  ;;  %v7246_v42 = vadd.f32 %v6137_v37, %v7089_v44  ;;  %v7249_v43 = vadd.f32 %v7089_v44, %v782_v40 }
 0x257   :  { %935 = vrot.lane.b32.xlu1 %v6522_v46, %s6823_s11  ;;  %v1149_v46 = vsel %vm71_vm1, %v7249_v43, 0.0 }
 0x25c   :  { %929 = vrot.lane.b32.xlu0 %v6524_v48, %s6823_s11  ;;  %v1152_v48 = vsel %vm71_vm1, %v7246_v42, 0.0 }
 0x27b   :  { %1126 = vadd.xlane.f32.xlu1 %v1125_v56  ;;  %1129 = vadd.xlane.f32.xlu0 %v1128_v58  ;;  %v6140_v56 = vpop.f32.mrf.mxu1 }
 0x27c   :  { %v7260_v61 = vadd.f32 %v6140_v56, %v7089_v44 }
 0x27d   :  { %v792_v58 = vpop.f32.mrf.mxu1 }
 0x27e   :  { %v1158_v2 = vsel %vm71_vm1, %v7260_v61, 0.0 }
 0x27f   :  { %v6143_v8 = vpop.f32.mrf.mxu1 }
 0x28c   :  { %939 = vrot.lane.b32.xlu1 %v6526_v62, %s6823_s11  ;;  %v7263_v62 = vadd.f32 %v7089_v44, %v792_v58 }
 0x28e   :  { %v1155_v0 = vsel %vm71_vm1, %v7263_v62, 0.0 }
 0x291   :  { %933 = vrot.lane.b32.xlu0 %v6528_v63, %s6823_s11  ;;  %v863_v63 = vmul.f32 1.442695, %v7218_v14 }
 0x293   :  { %6545 = vpow2.f32 %v863_v63 }
 0x294   :  { %6547 = vpow2.f32 %v857_v5 }
 0x2b0   :  { %1132 = vadd.xlane.f32.xlu1 %v1131_v6  ;;  %1135 = vadd.xlane.f32.xlu0 %v1134_v7  ;;  %v6546_v6 = vpop.eup %6545 }
 0x2b1   :  { %v6548_v7 = vpop.eup %6547 }
 0x2c1   :  { %943 = vrot.lane.b32.xlu1 %v6530_v9, %s6823_s11  ;;  %v802_v9 = vpop.f32.mrf.mxu1 }
 0x2c2   :  { %v7277_v11 = vadd.f32 %v7089_v44, %v802_v9 }
 0x2c3   :  { %v6146_v56 = vpop.f32.mrf.mxu1 }
 0x2c4   :  { %v7328_v5 = vadd.f32 %v6146_v56, %v7089_v44  ;;  %v869_v56 = vmul.f32 1.442695, %v7249_v43 }
 0x2c5   :  { %v812_v63 = vpop.f32.mrf.mxu1 }
 0x2c6   :  { %937 = vrot.lane.b32.xlu0 %v6532_v10, %s6823_s11  ;;  %v7274_v10 = vadd.f32 %v6143_v8, %v7089_v44  ;;  %v871_v8 = vmul.f32 1.442695, %v7246_v42 }
 0x2c8   :  { %v1164_v20 = vsel %vm71_vm1, %v7274_v10, 0.0 }
 0x2e5   :  { %1138 = vadd.xlane.f32.xlu1 %v1137_v18  ;;  %1141 = vadd.xlane.f32.xlu0 %v1140_v19  ;;  %v867_v18 = vmul.f32 1.442695, %v7232_v29  ;;  %v1161_v19 = vsel %vm71_vm1, %v7277_v11, 0.0 }
 0x2e7   :  { %6549 = vpow2.f32 %v867_v18 }
 0x2e8   :  { %6551 = vpow2.f32 %v861_v25 }
 0x2e9   :  { %6553 = vpow2.f32 %v871_v8  ;;  %v883_v8 = vmul.f32 1.442695, %v7328_v5 }
 0x2f4   :  { %v6550_v34 = vpop.eup %6549 }
 0x2f6   :  { %947 = vrot.lane.b32.xlu1 %v6534_v21, %s6823_s11  ;;  %v7288_v21 = vpop.xlane.xlu0 %1087 }
 0x2f7   :  { %10263 = vst [vmem:[#allocation4_spill] sm:$0xff] %v7288_v21 }
 0x2fa   :  { %v7293_v26 = vpop.xlane.xlu0 %1084 }
 0x2fb   :  { %941 = vrot.lane.b32.xlu0 %v6536_v23, %s6823_s11  ;;  %v7290_v23 = vpop.xlane.xlu1 %1090  ;;  %10265 = vst [vmem:[#allocation6_spill] sm:$0xff] %v7293_v26 }
 0x2fc   :  { %10264 = vst [vmem:[#allocation5_spill] sm:$0xff] %v7290_v23 }
 0x2ff   :  { %v7295_v31 = vpop.xlane.xlu1 %1099 }
 0x300   :  { %10266 = vst [vmem:[#allocation7_spill] sm:$0xff] %v7295_v31 }
 0x31a   :  { %1144 = vadd.xlane.f32.xlu1 %v1143_v32  ;;  %1147 = vadd.xlane.f32.xlu0 %v1146_v33  ;;  %v7297_v32 = vpop.xlane.xlu0 %1093  ;;  %v7299_v33 = vpop.xlane.xlu1 %1096 }
 0x31b   :  { %10267 = vst [vmem:[#allocation8_spill] sm:$0xff] %v7297_v32  ;;  %10268 = vst [vmem:[#allocation9_spill] sm:$0xff] %v7299_v33 }
 0x31e   :  { %v7304_v37 = vpop.permute.xlu1 %923 }
 0x322   :  { %v7309_v45 = vpop.permute.xlu1 %921 }
 0x32b   :  { %951 = vrot.lane.b32.xlu1 %v6538_v35, %s6823_s11  ;;  %v7302_v35 = vpop.permute.xlu0 %919 }
 0x32f   :  { %v7307_v40 = vpop.xlane.xlu0 %1105 }
 0x330   :  { %945 = vrot.lane.b32.xlu0 %v6540_v36, %s6823_s11  ;;  %v6552_v36 = vpop.eup %6551  ;;  %10269 = vst [vmem:[#allocation10_spill] sm:$0xff] %v7307_v40 }
 0x34f   :  { %1150 = vadd.xlane.f32.xlu1 %v1149_v46  ;;  %1153 = vadd.xlane.f32.xlu0 %v1152_v48  ;;  %v7311_v46 = vpop.permute.xlu0 %917  ;;  %v7313_v48 = vpop.xlane.xlu1 %1108 }
 0x350   :  { %10270 = vst [vmem:[#allocation11_spill] sm:$0xff] %v7313_v48 }
 0x353   :  { %v7315_v49 = vpop.xlane.xlu0 %1102 }
 0x354   :  { %10271 = vst [vmem:[#allocation12_spill] sm:$0xff] %v7315_v49 }
 0x360   :  { %955 = vrot.lane.b32.xlu1 %v6542_v51, %s6823_s11  ;;  %v7317_v51 = vpop.permute.xlu1 %927 }
 0x364   :  { %v7321_v58 = vpop.xlane.xlu1 %1114 }
 0x365   :  { %949 = vrot.lane.b32.xlu0 %v6544_v55, %s6823_s11  ;;  %v7319_v55 = vpop.xlane.xlu0 %1111  ;;  %10273 = vst [vmem:[#allocation14_spill] sm:$0xff] %v7321_v58 }
 0x366   :  { %10272 = vst [vmem:[#allocation13_spill] sm:$0xff] %v7319_v55 }
 0x384   :  { %1156 = vadd.xlane.f32.xlu1 %v1155_v0  ;;  %1159 = vadd.xlane.f32.xlu0 %v1158_v2  ;;  %v7323_v0 = vpop.xlane.xlu0 %1117  ;;  %v7325_v2 = vpop.permute.xlu1 %931 }
 0x385   :  { %10274 = vst [vmem:[#allocation15_spill] sm:$0xff] %v7323_v0 }
 0x388   :  { %v7336_v9 = vpop.permute.xlu0 %925 }
 0x38c   :  { %v7343_v25 = vpop.xlane.xlu0 %1123 }
 0x38d   :  { %10276 = vst [vmem:[#allocation17_spill] sm:$0xff] %v7343_v25 }
 0x390   :  { %v7352_v0 = vpop.permute.xlu0 %929 }
 0x395   :  { %959 = vrot.lane.b32.xlu1 %v6546_v6, %s6823_s11  ;;  %v7331_v6 = vadd.f32 %v7089_v44, %v812_v63  ;;  %v865_v44 = vmul.f32 1.442695, %v7235_v30 }
 0x397   :  { %v1167_v18 = vsel %vm71_vm1, %v7331_v6, 0.0 }
 0x39a   :  { %953 = vrot.lane.b32.xlu0 %v6548_v7, %s6823_s11  ;;  %v7333_v7 = vpop.xlane.xlu1 %1120 }
 0x39b   :  { %10275 = vst [vmem:[#allocation16_spill] sm:$0xff] %v7333_v7 }
 0x3b9   :  { %1162 = vadd.xlane.f32.xlu1 %v1161_v19  ;;  %1165 = vadd.xlane.f32.xlu0 %v1164_v20  ;;  %v1170_v19 = vsel %vm71_vm1, %v7328_v5, 0.0  ;;  %v875_v20 = vmul.f32 1.442695, %v7260_v61 }
 0x3bb   :  { %6555 = vpow2.f32 %v875_v20  ;;  %v6554_v20 = vpop.eup %6553 }
 0x3bc   :  { %6557 = vpow2.f32 %v865_v44  ;;  %v877_v44 = vmul.f32 1.442695, %v7277_v11 }
 0x3ca   :  { %963 = vrot.lane.b32.xlu1 %v6550_v34, %s6823_s11  ;;  %v7346_v34 = vpop.permute.xlu1 %935 }
 0x3ce   :  { %v7350_v63 = vpop.xlane.xlu1 %1126 }
 0x3cf   :  { %957 = vrot.lane.b32.xlu0 %v6552_v36, %s6823_s11  ;;  %v879_v36 = vmul.f32 1.442695, %v7274_v10  ;;  %10277 = vst [vmem:[#allocation18_spill] sm:$0xff] %v7350_v63 }
 0x3d1   :  { %6559 = vpow2.f32 %v879_v36  ;;  %v6556_v36 = vpop.eup %6555 }
 0x3d2   :  { %6561 = vpow2.f32 %v869_v56  ;;  %v7358_v25 = vpop.permute.xlu1 %939  ;;  %v881_v56 = vmul.f32 1.442695, %v7331_v6  ;;  %v6558_v31 = vpop.eup %6557 }
 0x3d3   :  { %6563 = vpow2.f32 %v883_v8 }
 0x3d6   :  { %v7362_v55 = vpop.xlane.xlu1 %1132 }
 0x3d7   :  { %10279 = vst [vmem:[#allocation20_spill] sm:$0xff] %v7362_v55 }
 0x3ee   :  { %1168 = vadd.xlane.f32.xlu1 %v1167_v18  ;;  %1171 = vadd.xlane.f32.xlu0 %v1170_v19  ;;  %v873_v18 = vmul.f32 1.442695, %v7263_v62  ;;  %v7356_v19 = vpop.xlane.xlu0 %1129 }
 0x3ef   :  { %10278 = vst [vmem:[#allocation19_spill] sm:$0xff] %v7356_v19  ;;  %v7371_v19 = vpop.permute.xlu1 %943 }
 0x3f0   :  { %6565 = vpow2.f32 %v873_v18  ;;  %v6560_v18 = vpop.eup %6559 }
 0x3f1   :  { %6567 = vpow2.f32 %v877_v44  ;;  %v7378_v44 = vld [vmem:[%s10207_s0 + $0x8] sm:$0xff] }
 0x3f2   :  { %v7364_v40 = vpop.permute.xlu0 %933  ;;  %6569 = vpow2.f32 %v881_v56 }
 0x3f3   :  { %v7382_v55 = vpop.xlane.xlu1 %1138 }
 0x3f4   :  { %10281 = vst [vmem:[#allocation22_spill] sm:$0xff] %v7382_v55  ;;  %v5475_v55 = vld [vmem:[%s10206_s1 + $0x4] sm:$0xf] }
 0x3f5   :  { %6147 = vmatprep.subr.msk.mxu0 %vm168_vm0, %v5475_v55 }
 0x3f6   :  { %v7369_v8 = vpop.xlane.xlu0 %1135  ;;  %6148 = vmatpush3.msk.msra.mxu0 %vm168_vm0, %v5475_v55 }
 0x3f7   :  { %10280 = vst [vmem:[#allocation21_spill] sm:$0xff] %v7369_v8 }
 0x3fa   :  { %v7384_v56 = vpop.permute.xlu0 %937 }
 0x3fe   :  { %v7401_v63 = vpop.xlane.xlu0 %1141 }
 0x3ff   :  { %967 = vrot.lane.b32.xlu1 %v6554_v20, %s6823_s11  ;;  %v6562_v20 = vpop.eup %6561  ;;  %10282 = vst [vmem:[#allocation23_spill] sm:$0xff] %v7401_v63 }
 0x403   :  { %971 = vrot.lane.b32.xlu1 %v6556_v36, %s6823_s11  ;;  %v1014_v36 = vmul.f32 %v7378_v44, %v7302_v35 }
 0x404   :  { %961 = vrot.lane.b32.xlu0 %v6558_v31, %s6823_s11  ;;  %v6564_v31 = vpop.eup %6563 }
 0x405   :  { %v6566_v8 = vpop.eup %6565 }
 0x406   :  { %v6568_v32 = vpop.eup %6567 }
 0x407   :  { %975 = vrot.lane.b32.xlu1 %v6560_v18, %s6823_s11  ;;  %v7389_v18 = vadd.f32 %v1014_v36, %v7092_v41  ;;  %v948_v41 = vpop.permute.xlu1 %947 }
 0x408   :  { %965 = vrot.lane.b32.xlu0 %v6562_v20, %s6823_s11  ;;  %v7394_v20 = vld [vmem:[%s10207_s0 + $0x18] sm:$0xff] }
 0x409   :  { %v1016_v35 = vmul.f32 %v7394_v20, %v7304_v37 }
 0x40b   :  { %979 = vrot.lane.b32.xlu1 %v6564_v31, %s6823_s11  ;;  %v7409_v37 = vadd.f32 %v1016_v35, %v7100_v50  ;;  %v7418_v31 = vld [vmem:[%s10207_s0] sm:$0xff]  ;;  %v7424_v50 = vpop.xlane.xlu1 %1144 }
 0x40c   :  { %969 = vrot.lane.b32.xlu0 %v6566_v8, %s6823_s11  ;;  %v6765_v8 = vld [vmem:[%s10207_s0 + $0x28] sm:$0xff]  ;;  %v1013_v63 = vmul.f32 %v7418_v31, %v7311_v46  ;;  %10283 = vst [vmem:[#allocation24_spill] sm:$0xff] %v7424_v50  ;;  %v7437_v46 = vld [vmem:[%s10207_s0 + $0x10] sm:$0xff] }
 0x40d   :  { %v1018_v36 = vmul.f32 %v6765_v8, %v7317_v51  ;;  %v6767_v51 = vld [vmem:[%s10207_s0 + $0x38] sm:$0xff]  ;;  %v942_v8 = vpop.permute.xlu0 %941  ;;  %v1015_v50 = vmul.f32 %v7437_v46, %v7309_v45  ;;  %v7463_v45 = vld [vmem:[%s10207_s0 + $0x20] sm:$0xff] }
 0x40e   :  { %v1020_v35 = vmul.f32 %v6767_v51, %v7325_v2  ;;  %v6769_v2 = vld [vmem:[%s10207_s0 + $0x48] sm:$0xff] }
 0x40f   :  { %1260 = vrot.lane.b32.xlu1 %v7389_v18, %s6824_s18  ;;  %v7428_v55 = vadd.f32 %v1018_v36, %v7113_v59  ;;  %v1022_v36 = vmul.f32 %v6769_v2, %v7346_v34 }
 0x410   :  { %973 = vrot.lane.b32.xlu0 %v6568_v32, %s6823_s11  ;;  %v6570_v32 = vpop.eup %6569  ;;  %v7449_v59 = vadd.f32 %v1020_v35, %v7116_v60  ;;  %v1017_v60 = vmul.f32 %v7463_v45, %v7336_v9  ;;  %v6772_v9 = vld [vmem:[%s10207_s0 + $0x30] sm:$0xff] }
 0x411   :  { %v7455_v51 = vpop.xlane.xlu0 %1147  ;;  %v7472_v34 = vadd.f32 %v1022_v36, %v7138_v12  ;;  %v1019_v2 = vmul.f32 %v6772_v9, %v7352_v0  ;;  %v6774_v36 = vld [vmem:[%s10207_s0 + $0x40] sm:$0xff] }
 0x412   :  { %10284 = vst [vmem:[#allocation25_spill] sm:$0xff] %v7455_v51  ;;  %v7479_v35 = vadd.f32 %v1017_v60, %v7110_v57  ;;  %v6773_v57 = vld [vmem:[%s10207_s0 + $0x68] sm:$0xff]  ;;  %v1021_v60 = vmul.f32 %v6774_v36, %v7364_v40  ;;  %v6776_v40 = vld [vmem:[%s10207_s0 + $0x50] sm:$0xff] }
 0x413   :  { %1264 = vrot.lane.b32.xlu1 %v7409_v37, %s6824_s18  ;;  %v7499_v0 = vadd.f32 %v1019_v2, %v7125_v1  ;;  %v6775_v1 = vld [vmem:[%s10207_s0 + $0x78] sm:$0xff]  ;;  %v1023_v2 = vmul.f32 %v6776_v40, %v7384_v56  ;;  %v6778_v56 = vld [vmem:[%s10207_s0 + $0x60] sm:$0xff] }
 0x414   :  { %977 = vrot.lane.b32.xlu0 %v6570_v32, %s6823_s11  ;;  %v7442_v32 = vadd.f32 %v1013_v63, %v7095_v47  ;;  %v7458_v47 = vadd.f32 %v1015_v50, %v7105_v54  ;;  %v952_v63 = vpop.permute.xlu1 %951  ;;  %v6771_v54 = vld [vmem:[%s10207_s0 + $0x58] sm:$0xff]  ;;  %v7518_v9 = vadd.f32 %v1021_v60, %v7152_v22  ;;  %v6777_v22 = vld [vmem:[%s10207_s0 + $0x88] sm:$0xff]  ;;  %v1025_v60 = vmul.f32 %v6778_v56, %v942_v8  ;;  %v6780_v8 = vld [vmem:[%s10207_s0 + $0x70] sm:$0xff] }
 0x415   :  { %v1024_v50 = vmul.f32 %v6771_v54, %v7358_v25  ;;  %v946_v21 = vpop.permute.xlu0 %945  ;;  %v1026_v25 = vmul.f32 %v6773_v57, %v7371_v19  ;;  %v7537_v36 = vadd.f32 %v1023_v2, %v7143_v16 }
 0x416   :  { %v1027_v40 = vmul.f32 %v6780_v8, %v946_v21  ;;  %v6782_v21 = vld [vmem:[%s10207_s0 + $0x80] sm:$0xff] }
 0x417   :  { %1268 = vrot.lane.b32.xlu1 %v7428_v55, %s6824_s18  ;;  %v7492_v12 = vadd.f32 %v1024_v50, %v7155_v24  ;;  %v7512_v19 = vadd.f32 %v1026_v25, %v7160_v27  ;;  %v1028_v50 = vmul.f32 %v6775_v1, %v948_v41  ;;  %v1030_v41 = vmul.f32 %v6777_v22, %v952_v63  ;;  %v6779_v63 = vld [vmem:[%s10207_s0 + $0x98] sm:$0xff] }
 0x418   :  { %1258 = vrot.lane.b32.xlu0 %v7442_v32, %s6824_s18  ;;  %v7485_v51 = vpop.xlane.xlu1 %1150  ;;  %v7571_v22 = vadd.f32 %v1027_v40, %v7179_v39  ;;  %v6783_v39 = vld [vmem:[%s10207_s0 + $0x90] sm:$0xff]  ;;  %v6784_v40 = vld [vmem:[%s10207_s0 + $0xb8] sm:$0xff] }
 0x419   :  { %10285 = vst [vmem:[#allocation26_spill] sm:$0xff] %v7485_v51  ;;  %v7505_v54 = vpop.xlane.xlu0 %1153  ;;  %v7531_v27 = vadd.f32 %v1028_v50, %v7176_v38  ;;  %v7547_v38 = vadd.f32 %v1030_v41, %v7190_v52  ;;  %v7555_v50 = vadd.f32 %v1025_v60, %v7163_v28  ;;  %v6781_v28 = vld [vmem:[%s10207_s0 + $0xa8] sm:$0xff] }
 0x41a   :  { %10286 = vst [vmem:[#allocation27_spill] sm:$0xff] %v7505_v54 }
 0x41b   :  { %1272 = vrot.lane.b32.xlu1 %v7449_v59, %s6824_s18 }
 0x41c   :  { %1262 = vrot.lane.b32.xlu0 %v7458_v47, %s6824_s18  ;;  %v956_v24 = vpop.permute.xlu1 %955 }
 0x41d   :  { %v950_v25 = vpop.permute.xlu0 %949  ;;  %v1032_v16 = vmul.f32 %v6779_v63, %v956_v24 }
 0x41e   :  { %v1029_v41 = vmul.f32 %v6782_v21, %v950_v25 }
 0x41f   :  { %1276 = vrot.lane.b32.xlu1 %v7472_v34, %s6824_s18  ;;  %v7565_v52 = vadd.f32 %v1032_v16, %v7204_v3 }
 0x420   :  { %1266 = vrot.lane.b32.xlu0 %v7479_v35, %s6824_s18  ;;  %v7526_v57 = vpop.xlane.xlu1 %1156  ;;  %v7584_v60 = vadd.f32 %v1029_v41, %v7193_v53 }
 0x421   :  { %10287 = vst [vmem:[#allocation28_spill] sm:$0xff] %v7526_v57  ;;  %v7552_v1 = vpop.xlane.xlu0 %1159 }
 0x422   :  { %10288 = vst [vmem:[#allocation29_spill] sm:$0xff] %v7552_v1 }
 0x423   :  { %1280 = vrot.lane.b32.xlu1 %v7492_v12, %s6824_s18 }
 0x424   :  { %1270 = vrot.lane.b32.xlu0 %v7499_v0, %s6824_s18  ;;  %v960_v2 = vpop.permute.xlu1 %959 }
 0x425   :  { %v1034_v24 = vmul.f32 %v6781_v28, %v960_v2  ;;  %v954_v56 = vpop.permute.xlu0 %953  ;;  %v6785_v28 = vld [vmem:[%s10207_s0 + $0xa0] sm:$0xff] }
 0x426   :  { %v1031_v63 = vmul.f32 %v6783_v39, %v954_v56 }
 0x427   :  { %1284 = vrot.lane.b32.xlu1 %v7512_v19, %s6824_s18  ;;  %v7581_v3 = vadd.f32 %v1034_v24, %v7218_v14 }
 0x428   :  { %1274 = vrot.lane.b32.xlu0 %v7518_v9, %s6824_s18  ;;  %v7594_v25 = vadd.f32 %v1031_v63, %v7207_v4 }
 0x42b   :  { %1288 = vrot.lane.b32.xlu1 %v7531_v27, %s6824_s18 }
 0x42c   :  { %1278 = vrot.lane.b32.xlu0 %v7537_v36, %s6824_s18 }
 0x42f   :  { %1292 = vrot.lane.b32.xlu1 %v7547_v38, %s6824_s18 }
 0x430   :  { %1282 = vrot.lane.b32.xlu0 %v7555_v50, %s6824_s18 }
 0x433   :  { %1296 = vrot.lane.b32.xlu1 %v7565_v52, %s6824_s18 }
 0x434   :  { %1286 = vrot.lane.b32.xlu0 %v7571_v22, %s6824_s18 }
 0x437   :  { %1300 = vrot.lane.b32.xlu1 %v7581_v3, %s6824_s18 }
 0x438   :  { %1290 = vrot.lane.b32.xlu0 %v7584_v60, %s6824_s18 }
 0x43c   :  { %1294 = vrot.lane.b32.xlu0 %v7594_v25, %s6824_s18 }
 0x442   :  { %v7598_v14 = vpop.xlane.xlu1 %1162  ;;  %v7600_v53 = vpop.xlane.xlu0 %1165 }
 0x443   :  { %10289 = vst [vmem:[#allocation30_spill] sm:$0xff] %v7598_v14  ;;  %10290 = vst [vmem:[#allocation31_spill] sm:$0xff] %v7600_v53 }
 0x446   :  { %v964_v16 = vpop.permute.xlu1 %963  ;;  %v958_v8 = vpop.permute.xlu0 %957 }
 0x447   :  { %v1036_v2 = vmul.f32 %v6784_v40, %v964_v16  ;;  %v1033_v4 = vmul.f32 %v6785_v28, %v958_v8 }
 0x449   :  { %v7609_v24 = vadd.f32 %v1036_v2, %v7232_v29  ;;  %v7612_v21 = vadd.f32 %v1033_v4, %v7221_v15  ;;  %v6786_v29 = vld [vmem:[%s10207_s0 + $0xc8] sm:$0xff]  ;;  %v6787_v15 = vld [vmem:[%s10207_s0 + $0xb0] sm:$0xff] }
 0x44b   :  { %1304 = vrot.lane.b32.xlu1 %v7609_v24, %s6824_s18  ;;  %1298 = vrot.lane.b32.xlu0 %v7612_v21, %s6824_s18 }
 0x477   :  { %v7618_v41 = vpop.xlane.xlu1 %1168  ;;  %v7620_v56 = vpop.xlane.xlu0 %1171 }
 0x478   :  { %10291 = vst [vmem:[#allocation32_spill] sm:$0xff] %v7618_v41  ;;  %10292 = vst [vmem:[#allocation33_spill] sm:$0xff] %v7620_v56  ;;  %v6788_v41 = vld [vmem:[%s10207_s0 + $0xd8] sm:$0xff] }
 0x47b   :  { %v968_v39 = vpop.permute.xlu1 %967  ;;  %v962_v63 = vpop.permute.xlu0 %961 }
 0x47c   :  { %v1038_v16 = vmul.f32 %v6786_v29, %v968_v39  ;;  %v1035_v8 = vmul.f32 %v6787_v15, %v962_v63  ;;  %v6789_v39 = vld [vmem:[%s10207_s0 + $0xc0] sm:$0xff] }
 0x47e   :  { %v7629_v40 = vadd.f32 %v1038_v16, %v7246_v42  ;;  %v7632_v2 = vadd.f32 %v1035_v8, %v7235_v30  ;;  %v6791_v8 = vld [vmem:[%s10207_s0 + $0xd0] sm:$0xff] }
 0x47f   :  { %v972_v28 = vpop.permute.xlu1 %971  ;;  %v966_v4 = vpop.permute.xlu0 %965 }
 0x480   :  { %10293 = vst [vmem:[#allocation34_spill] sm:$0xff] %v7629_v40  ;;  %10294 = vst [vmem:[#allocation35_spill] sm:$0xff] %v7632_v2  ;;  %v1040_v56 = vmul.f32 %v6788_v41, %v972_v28  ;;  %v1037_v29 = vmul.f32 %v6789_v39, %v966_v4  ;;  %1308 = vrot.lane.b32.xlu1 %v7629_v40, %s6824_s18  ;;  %1302 = vrot.lane.b32.xlu0 %v7632_v2, %s6824_s18  ;;  %v6790_v41 = vld [vmem:[%s10207_s0 + $0xe8] sm:$0xff] }
 0x482   :  { %v7645_v30 = vadd.f32 %v1040_v56, %v7260_v61  ;;  %v7648_v42 = vadd.f32 %v1037_v29, %v7249_v43  ;;  %v5484_v43 = vld [vmem:[%s10208_s3 + $0x78] sm:$0xff]  ;;  %v5483_v61 = vld [vmem:[%s10208_s3 + $0x70] sm:$0xff] }
 0x483   :  { %v976_v63 = vpop.permute.xlu1 %975  ;;  %v970_v16 = vpop.permute.xlu0 %969  ;;  %6197 = vmatprep.subr.mxu1 %v5484_v43 }
 0x484   :  { %10295 = vst [vmem:[#allocation36_spill] sm:$0xff] %v7645_v30  ;;  %10296 = vst [vmem:[#allocation37_spill] sm:$0xff] %v7648_v42  ;;  %v1042_v15 = vmul.f32 %v6790_v41, %v976_v63  ;;  %v1039_v28 = vmul.f32 %v6791_v8, %v970_v16  ;;  %1312 = vrot.lane.b32.xlu1 %v7645_v30, %s6824_s18  ;;  %1306 = vrot.lane.b32.xlu0 %v7648_v42, %s6824_s18  ;;  %v5482_v63 = vld [vmem:[%s10208_s3 + $0x68] sm:$0xff]  ;;  %v6792_v16 = vld [vmem:[%s10207_s0 + $0xf8] sm:$0xff] }
 0x485   :  { %6198 = vmatpush3.msra.mxu1 %v5484_v43 }
 0x486   :  { %v7667_v56 = vadd.f32 %v1042_v15, %v7274_v10  ;;  %v7670_v4 = vadd.f32 %v1039_v28, %v7263_v62  ;;  %6199 = vmatprep.subr.mxu1 %v5483_v61  ;;  %v6793_v10 = vld [vmem:[%s10207_s0 + $0xe0] sm:$0xff] }
 0x487   :  { %v980_v39 = vpop.permute.xlu1 %979  ;;  %v974_v29 = vpop.permute.xlu0 %973  ;;  %6200 = vmatpush3.msra.mxu1 %v5483_v61  ;;  %v5481_v28 = vld [vmem:[%s10208_s3 + $0x60] sm:$0xff] }
 0x488   :  { %10297 = vst [vmem:[#allocation38_spill] sm:$0xff] %v7667_v56  ;;  %10298 = vst [vmem:[#allocation39_spill] sm:$0xff] %v7670_v4  ;;  %v1044_v41 = vmul.f32 %v6792_v16, %v980_v39  ;;  %v1041_v15 = vmul.f32 %v6793_v10, %v974_v29  ;;  %1316 = vrot.lane.b32.xlu1 %v7667_v56, %s6824_s18  ;;  %1310 = vrot.lane.b32.xlu0 %v7670_v4, %s6824_s18  ;;  %v6794_v29 = vld [vmem:[%s10207_s0 + $0xf0] sm:$0xff] }
 0x489   :  { %6201 = vmatprep.subr.mxu1 %v5482_v63 }
 0x48a   :  { %v7686_v62 = vadd.f32 %v1044_v41, %v7328_v5  ;;  %v7689_v8 = vadd.f32 %v1041_v15, %v7277_v11  ;;  %6202 = vmatpush3.msra.mxu1 %v5482_v63  ;;  %v5480_v11 = vld [vmem:[%s10208_s3 + $0x58] sm:$0xff]  ;;  %v5479_v41 = vld [vmem:[%s10208_s3 + $0x50] sm:$0xff] }
 0x48b   :  { %v1261_v43 = vpop.permute.xlu1 %1260  ;;  %v978_v39 = vpop.permute.xlu0 %977  ;;  %6203 = vmatprep.subr.mxu1 %v5481_v28 }
 0x48c   :  { %10299 = vst [vmem:[#allocation40_spill] sm:$0xff] %v7686_v62  ;;  %10300 = vst [vmem:[#allocation41_spill] sm:$0xff] %v7689_v8  ;;  %v1043_v16 = vmul.f32 %v6794_v29, %v978_v39  ;;  %1320 = vrot.lane.b32.xlu1 %v7686_v62, %s6824_s18  ;;  %1314 = vrot.lane.b32.xlu0 %v7689_v8, %s6824_s18 }
 0x48d   :  { %6204 = vmatpush3.msra.mxu1 %v5481_v28 }
 0x48e   :  { %v7705_v5 = vadd.f32 %v1043_v16, %v7331_v6  ;;  %6205 = vmatprep.subr.mxu1 %v5480_v11  ;;  %v5478_v6 = vld [vmem:[%s10208_s3 + $0x48] sm:$0xff] }
 0x48f   :  { %v1265_v61 = vpop.permute.xlu1 %1264  ;;  %v1259_v63 = vpop.permute.xlu0 %1258  ;;  %6206 = vmatpush3.msra.mxu1 %v5480_v11 }
 0x490   :  { %10301 = vst [vmem:[#allocation42_spill] sm:$0xff] %v7705_v5  ;;  %1318 = vrot.lane.b32.xlu0 %v7705_v5, %s6824_s18  ;;  %6149 = vmatprep.mubr.msk.f32.mxu0 %vm71_vm1, %v1259_v63 }
 0x491   :  { %6150 = vmatmul.mubr.msk.f32.vlgmr.msra.gmra.mxu0 %vm71_vm1, %v1261_v43  ;;  %6207 = vmatprep.subr.mxu1 %v5479_v41 }
 0x492   :  { %6208 = vmatpush3.msra.mxu1 %v5479_v41 }
 0x493   :  { %v1269_v10 = vpop.permute.xlu1 %1268  ;;  %v1263_v15 = vpop.permute.xlu0 %1262  ;;  %6209 = vmatprep.subr.mxu1 %v5478_v6 }
 0x494   :  { %6152 = vmatprep.mubr.msk.f32.mxu0 %vm71_vm1, %v1263_v15  ;;  %6210 = vmatpush3.msra.mxu1 %v5478_v6 }
 0x495   :  { %6153 = vmatmul.mubr.msk.f32.gmra.mxu0 %vm71_vm1, %v1265_v61 }
 0x497   :  { %v1273_v28 = vpop.permute.xlu1 %1272  ;;  %v1267_v39 = vpop.permute.xlu0 %1266 }
 0x498   :  { %6155 = vmatprep.mubr.msk.f32.mxu0 %vm71_vm1, %v1267_v39 }
 0x499   :  { %6156 = vmatmul.mubr.msk.f32.gmra.mxu0 %vm71_vm1, %v1269_v10 }
 0x49b   :  { %v1277_v43 = vpop.permute.xlu1 %1276  ;;  %v1271_v29 = vpop.permute.xlu0 %1270 }
 0x49c   :  { %6158 = vmatprep.mubr.msk.f32.mxu0 %vm71_vm1, %v1271_v29 }
 0x49d   :  { %6159 = vmatmul.mubr.msk.f32.gmra.mxu0 %vm71_vm1, %v1273_v28 }
 0x49f   :  { %v1281_v16 = vpop.permute.xlu1 %1280  ;;  %v1275_v11 = vpop.permute.xlu0 %1274 }
 0x4a0   :  { %6161 = vmatprep.mubr.msk.f32.mxu0 %vm71_vm1, %v1275_v11  ;;  %v5477_v11 = vld [vmem:[%s10208_s3 + $0x40] sm:$0xff] }
 0x4a1   :  { %6162 = vmatmul.mubr.msk.f32.gmra.mxu0 %vm71_vm1, %v1277_v43  ;;  %6211 = vmatprep.subr.mxu1 %v5477_v11 }
 0x4a2   :  { %6212 = vmatpush3.msra.mxu1 %v5477_v11 }
 0x4a3   :  { %v1285_v61 = vpop.permute.xlu1 %1284  ;;  %v1279_v63 = vpop.permute.xlu0 %1278 }
 0x4a4   :  { %6164 = vmatprep.mubr.msk.f32.mxu0 %vm71_vm1, %v1279_v63 }
 0x4a5   :  { %6165 = vmatmul.mubr.msk.f32.gmra.mxu0 %vm71_vm1, %v1281_v16 }
 0x4a7   :  { %v1283_v41 = vpop.permute.xlu0 %1282  ;;  %v1289_v6 = vpop.permute.xlu1 %1288 }
 0x4a8   :  { %6167 = vmatprep.mubr.msk.f32.mxu0 %vm71_vm1, %v1283_v41 }
 0x4a9   :  { %6168 = vmatmul.mubr.msk.f32.gmra.mxu0 %vm71_vm1, %v1285_v61 }
 0x4ab   :  { %v1287_v10 = vpop.permute.xlu0 %1286  ;;  %v1293_v15 = vpop.permute.xlu1 %1292 }
 0x4ac   :  { %6170 = vmatprep.mubr.msk.f32.mxu0 %vm71_vm1, %v1287_v10 }
 0x4ad   :  { %6171 = vmatmul.mubr.msk.f32.gmra.mxu0 %vm71_vm1, %v1289_v6 }
 0x4af   :  { %v1291_v28 = vpop.permute.xlu0 %1290  ;;  %v1297_v43 = vpop.permute.xlu1 %1296 }
 0x4b0   :  { %6173 = vmatprep.mubr.msk.f32.mxu0 %vm71_vm1, %v1291_v28 }
 0x4b1   :  { %6174 = vmatmul.mubr.msk.f32.gmra.mxu0 %vm71_vm1, %v1293_v15 }
 0x4b3   :  { %v1295_v39 = vpop.permute.xlu0 %1294  ;;  %v1301_v16 = vpop.permute.xlu1 %1300 }
 0x4b4   :  { %6176 = vmatprep.mubr.msk.f32.mxu0 %vm71_vm1, %v1295_v39 }
 0x4b5   :  { %6177 = vmatmul.mubr.msk.f32.gmra.mxu0 %vm71_vm1, %v1297_v43 }
 0x4bd   :  { %v1299_v29 = vpop.permute.xlu0 %1298  ;;  %v1305_v61 = vpop.permute.xlu1 %1304 }
 0x4be   :  { %6179 = vmatprep.mubr.msk.f32.mxu0 %vm71_vm1, %v1299_v29 }
 0x4bf   :  { %6180 = vmatmul.mubr.msk.f32.gmra.mxu0 %vm71_vm1, %v1301_v16  ;;  %v7753_v16 = vld [vmem:[%s10209_s2 + $0x1] ss:$0 sm:$0xff] }
 0x4f2   :  { %v1309_v63 = vpop.permute.xlu1 %1308  ;;  %v1303_v41 = vpop.permute.xlu0 %1302 }
 0x4f3   :  { %6182 = vmatprep.mubr.msk.f32.mxu0 %vm71_vm1, %v1303_v41 }
 0x4f4   :  { %6183 = vmatmul.mubr.msk.f32.gmra.mxu0 %vm71_vm1, %v1305_v61 }
 0x4f6   :  { %v1307_v6 = vpop.permute.xlu0 %1306  ;;  %v1313_v10 = vpop.permute.xlu1 %1312 }
 0x4f7   :  { %6185 = vmatprep.mubr.msk.f32.mxu0 %vm71_vm1, %v1307_v6 }
 0x4f8   :  { %6186 = vmatmul.mubr.msk.f32.gmra.mxu0 %vm71_vm1, %v1309_v63 }
 0x4fa   :  { %v1311_v15 = vpop.permute.xlu0 %1310  ;;  %v1317_v28 = vpop.permute.xlu1 %1316 }
 0x4fb   :  { %6188 = vmatprep.mubr.msk.f32.mxu0 %vm71_vm1, %v1311_v15 }
 0x4fc   :  { %6189 = vmatmul.mubr.msk.f32.gmra.mxu0 %vm71_vm1, %v1313_v10 }
 0x4fe   :  { %v1315_v39 = vpop.permute.xlu0 %1314  ;;  %v1321_v29 = vpop.permute.xlu1 %1320 }
 0x4ff   :  { %6191 = vmatprep.mubr.msk.f32.mxu0 %vm71_vm1, %v1315_v39 }
 0x500   :  { %6192 = vmatmul.mubr.msk.f32.gmra.mxu0 %vm71_vm1, %v1317_v28 }
 0x502   :  { %v1319_v43 = vpop.permute.xlu0 %1318 }
 0x503   :  { %6194 = vmatprep.mubr.msk.f32.mxu0 %vm71_vm1, %v1319_v43 }
 0x504   :  { %6195 = vmatmul.mubr.msk.f32.gmra.mxu0 %vm71_vm1, %v1321_v29 }
 0x551   :  { %v6151_v11 = vpop.f32.mrf.mxu0 }
 0x552   :  { %v1461_v61 = vadd.f32 %v6151_v11, %v7753_v16 }
 0x553   :  { %v1455_v63 = vpop.f32.mrf.mxu0 }
 0x554   :  { %v1456_v41 = vadd.f32 %v7753_v16, %v1455_v63  ;;  %v1647_v6 = vmul.f32 0.01, %v1461_v61  ;;  %vm1615_vm9 = vcmp.gt.f32.partialorder %v1461_v61, 0.0 }
 0x555   :  { %v6154_v10 = vpop.f32.mrf.mxu0 }
 0x556   :  { %vm1614_vm10 = vcmp.gt.f32.partialorder %v1456_v41, 0.0  ;;  %v1646_v15 = vmul.f32 0.01, %v1456_v41  ;;  %v1471_v28 = vadd.f32 %v6154_v10, %v7753_v16  ;;  %v1679_v53 = vsel %vm1615_vm9, %v1461_v61, %v1647_v6 }
 0x557   :  { %v1465_v39 = vpop.f32.mrf.mxu0 }
 0x558   :  { %v1466_v43 = vadd.f32 %v7753_v16, %v1465_v39  ;;  %v1678_v29 = vsel %vm1614_vm10, %v1456_v41, %v1646_v15  ;;  %v1649_v1 = vmul.f32 0.01, %v1471_v28  ;;  %vm1617_vm11 = vcmp.gt.f32.partialorder %v1471_v28, 0.0 }
 0x559   :  { %v6157_v54 = vpop.f32.mrf.mxu0  ;;  %6213 = vmatprep.mubr.msk.f32.mxu1 %vm499_vm2, %v1678_v29 }
 0x55a   :  { %vm1616_vm12 = vcmp.gt.f32.partialorder %v1466_v43, 0.0  ;;  %v1648_v11 = vmul.f32 0.01, %v1466_v43  ;;  %v1481_v63 = vadd.f32 %v6157_v54, %v7753_v16  ;;  %6214 = vmatmul.mubr.msk.f32.vlgmr.msra.gmra.mxu1 %vm499_vm2, %v1679_v53  ;;  %v1681_v61 = vsel %vm1617_vm11, %v1471_v28, %v1649_v1 }
 0x55b   :  { %v1475_v14 = vpop.f32.mrf.mxu0 }
 0x55c   :  { %v1476_v57 = vadd.f32 %v7753_v16, %v1475_v14  ;;  %v1680_v10 = vsel %vm1616_vm12, %v1466_v43, %v1648_v11  ;;  %v1651_v51 = vmul.f32 0.01, %v1481_v63  ;;  %vm1619_vm13 = vcmp.gt.f32.partialorder %v1481_v63, 0.0 }
 0x55d   :  { %v6160_v7 = vpop.f32.mrf.mxu0  ;;  %6216 = vmatprep.mubr.msk.f32.mxu1 %vm499_vm2, %v1680_v10 }
 0x55e   :  { %vm1618_vm14 = vcmp.gt.f32.partialorder %v1476_v57, 0.0  ;;  %v1650_v41 = vmul.f32 0.01, %v1476_v57  ;;  %v1491_v6 = vadd.f32 %v6160_v7, %v7753_v16  ;;  %6217 = vmatmul.mubr.msk.f32.gmra.mxu1 %vm499_vm2, %v1681_v61  ;;  %v1683_v14 = vsel %vm1619_vm13, %v1481_v63, %v1651_v51 }
 0x55f   :  { %v1485_v15 = vpop.f32.mrf.mxu0 }
 0x560   :  { %v1486_v54 = vadd.f32 %v7753_v16, %v1485_v15  ;;  %v1682_v53 = vsel %vm1618_vm14, %v1476_v57, %v1650_v41  ;;  %v1653_v39 = vmul.f32 0.01, %v1491_v6  ;;  %vm1621_vm15 = vcmp.gt.f32.partialorder %v1491_v6, 0.0 }
 0x561   :  { %v6163_v29 = vpop.f32.mrf.mxu0  ;;  %6219 = vmatprep.mubr.msk.f32.mxu1 %vm499_vm2, %v1682_v53 }
 0x562   :  { %vm1620_vm3 = vcmp.gt.f32.partialorder %v1486_v54, 0.0  ;;  %v1652_v43 = vmul.f32 0.01, %v1486_v54  ;;  %v1501_v1 = vadd.f32 %v6163_v29, %v7753_v16  ;;  %6220 = vmatmul.mubr.msk.f32.gmra.mxu1 %vm499_vm2, %v1683_v14  ;;  %v1685_v57 = vsel %vm1621_vm15, %v1491_v6, %v1653_v39 }
 0x563   :  { %v1495_v28 = vpop.f32.mrf.mxu0 }
 0x564   :  { %v1496_v7 = vadd.f32 %v7753_v16, %v1495_v28  ;;  %v1684_v11 = vsel %vm1620_vm3, %v1486_v54, %v1652_v43  ;;  %v1655_v10 = vmul.f32 0.01, %v1501_v1  ;;  %vm1623_vm4 = vcmp.gt.f32.partialorder %v1501_v1, 0.0 }
 0x565   :  { %v6166_v61 = vpop.f32.mrf.mxu0  ;;  %6222 = vmatprep.mubr.msk.f32.mxu1 %vm499_vm2, %v1684_v11 }
 0x566   :  { %vm1622_vm5 = vcmp.gt.f32.partialorder %v1496_v7, 0.0  ;;  %v1654_v41 = vmul.f32 0.01, %v1496_v7  ;;  %v1511_v51 = vadd.f32 %v6166_v61, %v7753_v16  ;;  %6223 = vmatmul.mubr.msk.f32.gmra.mxu1 %vm499_vm2, %v1685_v57  ;;  %v1687_v54 = vsel %vm1623_vm4, %v1501_v1, %v1655_v10 }
 0x567   :  { %v1505_v63 = vpop.f32.mrf.mxu0 }
 0x568   :  { %v1506_v15 = vadd.f32 %v7753_v16, %v1505_v63  ;;  %v1686_v53 = vsel %vm1622_vm5, %v1496_v7, %v1654_v41  ;;  %v1657_v29 = vmul.f32 0.01, %v1511_v51  ;;  %vm1625_vm6 = vcmp.gt.f32.partialorder %v1511_v51, 0.0 }
 0x569   :  { %v6169_v14 = vpop.f32.mrf.mxu0  ;;  %6225 = vmatprep.mubr.msk.f32.mxu1 %vm499_vm2, %v1686_v53 }
 0x56a   :  { %vm1624_vm7 = vcmp.gt.f32.partialorder %v1506_v15, 0.0  ;;  %v1656_v43 = vmul.f32 0.01, %v1506_v15  ;;  %v1521_v6 = vadd.f32 %v6169_v14, %v7753_v16  ;;  %6226 = vmatmul.mubr.msk.f32.gmra.mxu1 %vm499_vm2, %v1687_v54  ;;  %v1689_v7 = vsel %vm1625_vm6, %v1511_v51, %v1657_v29 }
 0x56b   :  { %v1515_v39 = vpop.f32.mrf.mxu0 }
 0x56c   :  { %v1516_v28 = vadd.f32 %v7753_v16, %v1515_v39  ;;  %v1688_v11 = vsel %vm1624_vm7, %v1506_v15, %v1656_v43  ;;  %v1659_v61 = vmul.f32 0.01, %v1521_v6  ;;  %vm1627_vm8 = vcmp.gt.f32.partialorder %v1521_v6, 0.0 }
 0x56d   :  { %v6172_v57 = vpop.f32.mrf.mxu0  ;;  %6228 = vmatprep.mubr.msk.f32.mxu1 %vm499_vm2, %v1688_v11 }
 0x56e   :  { %vm1626_vm9 = vcmp.gt.f32.partialorder %v1516_v28, 0.0  ;;  %v1658_v41 = vmul.f32 0.01, %v1516_v28  ;;  %v1531_v1 = vadd.f32 %v6172_v57, %v7753_v16  ;;  %6229 = vmatmul.mubr.msk.f32.gmra.mxu1 %vm499_vm2, %v1689_v7  ;;  %v1691_v15 = vsel %vm1627_vm8, %v1521_v6, %v1659_v61 }
 0x56f   :  { %v1525_v10 = vpop.f32.mrf.mxu0 }
 0x570   :  { %v1526_v63 = vadd.f32 %v7753_v16, %v1525_v10  ;;  %v1690_v53 = vsel %vm1626_vm9, %v1516_v28, %v1658_v41  ;;  %v1661_v14 = vmul.f32 0.01, %v1531_v1  ;;  %vm1629_vm10 = vcmp.gt.f32.partialorder %v1531_v1, 0.0 }
 0x571   :  { %v6175_v54 = vpop.f32.mrf.mxu0  ;;  %6231 = vmatprep.mubr.msk.f32.mxu1 %vm499_vm2, %v1690_v53 }
 0x572   :  { %vm1628_vm11 = vcmp.gt.f32.partialorder %v1526_v63, 0.0  ;;  %v1660_v43 = vmul.f32 0.01, %v1526_v63  ;;  %v1541_v51 = vadd.f32 %v6175_v54, %v7753_v16  ;;  %6232 = vmatmul.mubr.msk.f32.gmra.mxu1 %vm499_vm2, %v1691_v15  ;;  %v1693_v28 = vsel %vm1629_vm10, %v1531_v1, %v1661_v14 }
 0x573   :  { %v1535_v29 = vpop.f32.mrf.mxu0 }
 0x574   :  { %v1536_v39 = vadd.f32 %v7753_v16, %v1535_v29  ;;  %v1692_v11 = vsel %vm1628_vm11, %v1526_v63, %v1660_v43  ;;  %v1663_v57 = vmul.f32 0.01, %v1541_v51  ;;  %vm1631_vm12 = vcmp.gt.f32.partialorder %v1541_v51, 0.0 }
 0x575   :  { %v6178_v7 = vpop.f32.mrf.mxu0  ;;  %6234 = vmatprep.mubr.msk.f32.mxu1 %vm499_vm2, %v1692_v11 }
 0x576   :  { %vm1630_vm13 = vcmp.gt.f32.partialorder %v1536_v39, 0.0  ;;  %v1662_v41 = vmul.f32 0.01, %v1536_v39  ;;  %v1551_v6 = vadd.f32 %v6178_v7, %v7753_v16  ;;  %6235 = vmatmul.mubr.msk.f32.gmra.mxu1 %vm499_vm2, %v1693_v28  ;;  %v1695_v63 = vsel %vm1631_vm12, %v1541_v51, %v1663_v57 }
 0x577   :  { %v1545_v61 = vpop.f32.mrf.mxu0 }
 0x578   :  { %v1546_v10 = vadd.f32 %v7753_v16, %v1545_v61  ;;  %v1694_v53 = vsel %vm1630_vm13, %v1536_v39, %v1662_v41  ;;  %v1665_v54 = vmul.f32 0.01, %v1551_v6  ;;  %vm1633_vm14 = vcmp.gt.f32.partialorder %v1551_v6, 0.0 }
 0x579   :  { %6237 = vmatprep.mubr.msk.f32.mxu1 %vm499_vm2, %v1694_v53 }
 0x57a   :  { %vm1632_vm15 = vcmp.gt.f32.partialorder %v1546_v10, 0.0  ;;  %v1664_v15 = vmul.f32 0.01, %v1546_v10  ;;  %6238 = vmatmul.mubr.msk.f32.gmra.mxu1 %vm499_vm2, %v1695_v63  ;;  %v1697_v14 = vsel %vm1633_vm14, %v1551_v6, %v1665_v54 }
 0x57c   :  { %v1696_v1 = vsel %vm1632_vm15, %v1546_v10, %v1664_v15 }
 0x57d   :  { %6240 = vmatprep.mubr.msk.f32.mxu1 %vm499_vm2, %v1696_v1 }
 0x57e   :  { %6241 = vmatmul.mubr.msk.f32.gmra.mxu1 %vm499_vm2, %v1697_v14 }
 0x57f   :  { %v6181_v43 = vpop.f32.mrf.mxu0 }
 0x580   :  { %v1561_v29 = vadd.f32 %v6181_v43, %v7753_v16 }
 0x581   :  { %v1555_v11 = vpop.f32.mrf.mxu0 }
 0x582   :  { %v1556_v39 = vadd.f32 %v7753_v16, %v1555_v11  ;;  %v1667_v7 = vmul.f32 0.01, %v1561_v29  ;;  %vm1635_vm3 = vcmp.gt.f32.partialorder %v1561_v29, 0.0 }
 0x584   :  { %vm1634_vm4 = vcmp.gt.f32.partialorder %v1556_v39, 0.0  ;;  %v1666_v51 = vmul.f32 0.01, %v1556_v39  ;;  %v1699_v28 = vsel %vm1635_vm3, %v1561_v29, %v1667_v7 }
 0x586   :  { %v1698_v57 = vsel %vm1634_vm4, %v1556_v39, %v1666_v51 }
 0x587   :  { %6243 = vmatprep.mubr.msk.f32.mxu1 %vm499_vm2, %v1698_v57 }
 0x588   :  { %6244 = vmatmul.mubr.msk.f32.gmra.mxu1 %vm499_vm2, %v1699_v28 }
 0x5b4   :  { %v6184_v41 = vpop.f32.mrf.mxu0 }
 0x5b5   :  { %v1571_v6 = vadd.f32 %v6184_v41, %v7753_v16 }
 0x5b6   :  { %v1565_v61 = vpop.f32.mrf.mxu0 }
 0x5b7   :  { %v1566_v10 = vadd.f32 %v7753_v16, %v1565_v61  ;;  %v1669_v53 = vmul.f32 0.01, %v1571_v6  ;;  %vm1637_vm5 = vcmp.gt.f32.partialorder %v1571_v6, 0.0 }
 0x5b8   :  { %v6187_v54 = vpop.f32.mrf.mxu0 }
 0x5b9   :  { %vm1636_vm6 = vcmp.gt.f32.partialorder %v1566_v10, 0.0  ;;  %v1668_v63 = vmul.f32 0.01, %v1566_v10  ;;  %v1581_v15 = vadd.f32 %v6187_v54, %v7753_v16  ;;  %v1701_v39 = vsel %vm1637_vm5, %v1571_v6, %v1669_v53 }
 0x5ba   :  { %v1575_v1 = vpop.f32.mrf.mxu0 }
 0x5bb   :  { %v1576_v14 = vadd.f32 %v7753_v16, %v1575_v1  ;;  %v1700_v43 = vsel %vm1636_vm6, %v1566_v10, %v1668_v63  ;;  %v1671_v29 = vmul.f32 0.01, %v1581_v15  ;;  %vm1639_vm7 = vcmp.gt.f32.partialorder %v1581_v15, 0.0 }
 0x5bc   :  { %v6190_v11 = vpop.f32.mrf.mxu0  ;;  %6246 = vmatprep.mubr.msk.f32.mxu1 %vm499_vm2, %v1700_v43 }
 0x5bd   :  { %vm1638_vm8 = vcmp.gt.f32.partialorder %v1576_v14, 0.0  ;;  %v1670_v7 = vmul.f32 0.01, %v1576_v14  ;;  %v1591_v51 = vadd.f32 %v6190_v11, %v7753_v16  ;;  %6247 = vmatmul.mubr.msk.f32.gmra.mxu1 %vm499_vm2, %v1701_v39  ;;  %v1703_v10 = vsel %vm1639_vm7, %v1581_v15, %v1671_v29 }
 0x5be   :  { %v1585_v57 = vpop.f32.mrf.mxu0 }
 0x5bf   :  { %v1586_v28 = vadd.f32 %v7753_v16, %v1585_v57  ;;  %v1702_v41 = vsel %vm1638_vm8, %v1576_v14, %v1670_v7  ;;  %v1673_v61 = vmul.f32 0.01, %v1591_v51  ;;  %vm1641_vm9 = vcmp.gt.f32.partialorder %v1591_v51, 0.0 }
 0x5c0   :  { %v6193_v54 = vpop.f32.mrf.mxu0  ;;  %6249 = vmatprep.mubr.msk.f32.mxu1 %vm499_vm2, %v1702_v41 }
 0x5c1   :  { %vm1640_vm10 = vcmp.gt.f32.partialorder %v1586_v28, 0.0  ;;  %v1672_v63 = vmul.f32 0.01, %v1586_v28  ;;  %v1601_v6 = vadd.f32 %v6193_v54, %v7753_v16  ;;  %6250 = vmatmul.mubr.msk.f32.gmra.mxu1 %vm499_vm2, %v1703_v10  ;;  %v1705_v14 = vsel %vm1641_vm9, %v1591_v51, %v1673_v61 }
 0x5c2   :  { %v1595_v53 = vpop.f32.mrf.mxu0 }
 0x5c3   :  { %v1596_v1 = vadd.f32 %v7753_v16, %v1595_v53  ;;  %v1704_v43 = vsel %vm1640_vm10, %v1586_v28, %v1672_v63  ;;  %v1675_v11 = vmul.f32 0.01, %v1601_v6  ;;  %vm1643_vm11 = vcmp.gt.f32.partialorder %v1601_v6, 0.0 }
 0x5c4   :  { %v6196_v39 = vpop.f32.mrf.mxu0  ;;  %6252 = vmatprep.mubr.msk.f32.mxu1 %vm499_vm2, %v1704_v43 }
 0x5c5   :  { %vm1642_vm12 = vcmp.gt.f32.partialorder %v1596_v1, 0.0  ;;  %v1674_v7 = vmul.f32 0.01, %v1596_v1  ;;  %v1611_v15 = vadd.f32 %v6196_v39, %v7753_v16  ;;  %6253 = vmatmul.mubr.msk.f32.gmra.mxu1 %vm499_vm2, %v1705_v14  ;;  %v1707_v28 = vsel %vm1643_vm11, %v1601_v6, %v1675_v11 }
 0x5c6   :  { %v1605_v29 = vpop.f32.mrf.mxu0 }
 0x5c7   :  { %v1606_v57 = vadd.f32 %v7753_v16, %v1605_v29  ;;  %v1706_v41 = vsel %vm1642_vm12, %v1596_v1, %v1674_v7  ;;  %v1677_v54 = vmul.f32 0.01, %v1611_v15  ;;  %vm1645_vm13 = vcmp.gt.f32.partialorder %v1611_v15, 0.0  ;;  %v7822_v16 = vld [vmem:[%s10210_s4 + $0x1] ss:$0 sm:$0xff] }
 0x5c8   :  { %6255 = vmatprep.mubr.msk.f32.mxu1 %vm499_vm2, %v1706_v41  ;;  %v5553_v1 = vld [vmem:[%s10206_s1 + $0x8] sm:$0xf] }
 0x5c9   :  { %vm1644_vm14 = vcmp.gt.f32.partialorder %v1606_v57, 0.0  ;;  %v1676_v10 = vmul.f32 0.01, %v1606_v57  ;;  %6256 = vmatmul.mubr.msk.f32.gmra.mxu1 %vm499_vm2, %v1707_v28  ;;  %v1709_v61 = vsel %vm1645_vm13, %v1611_v15, %v1677_v54  ;;  %6261 = vmatprep.subr.msk.mxu0 %vm168_vm0, %v5553_v1 }
 0x5ca   :  { %6262 = vmatpush3.msk.msra.mxu0 %vm168_vm0, %v5553_v1 }
 0x5cb   :  { %v1708_v51 = vsel %vm1644_vm14, %v1606_v57, %v1676_v10 }
 0x5cc   :  { %6258 = vmatprep.mubr.msk.f32.mxu1 %vm499_vm2, %v1708_v51 }
 0x5cd   :  { %6259 = vmatmul.mubr.msk.f32.gmra.mxu1 %vm499_vm2, %v1709_v61 }
 0x61a   :  { %v6215_v63 = vpop.f32.mrf.mxu1 }
 0x61b   :  { %v1884_v53 = vadd.f32 %v6215_v63, %v7822_v16 }
 0x61c   :  { %v1878_v43 = vpop.f32.mrf.mxu1 }
 0x61d   :  { %2167 = vrot.lane.b32.xlu1 %v1884_v53, %s6824_s18  ;;  %v2296_v6 = vsel %vm71_vm1, %v1884_v53, 0.0  ;;  %v1879_v11 = vadd.f32 %v7822_v16, %v1878_v43  ;;  %v2039_v61 = vmul.f32 1.442695, %v1884_v53 }
 0x61e   :  { %2297 = vadd.xlane.f32.xlu0 %v2296_v6  ;;  %v6218_v14 = vpop.f32.mrf.mxu1 }
 0x61f   :  { %v2293_v39 = vsel %vm71_vm1, %v1879_v11, 0.0  ;;  %v1894_v7 = vadd.f32 %v6218_v14, %v7822_v16  ;;  %v2037_v51 = vmul.f32 1.442695, %v1879_v11 }
 0x620   :  { %v1888_v29 = vpop.f32.mrf.mxu1 }
 0x621   :  { %v2302_v15 = vsel %vm71_vm1, %v1894_v7, 0.0  ;;  %v1889_v57 = vadd.f32 %v7822_v16, %v1888_v29  ;;  %6571 = vpow2.f32 %v2037_v51 }
 0x622   :  { %v6221_v54 = vpop.f32.mrf.mxu1  ;;  %6573 = vpow2.f32 %v2039_v61  ;;  %v2043_v61 = vmul.f32 1.442695, %v1894_v7 }
 0x623   :  { %v2299_v41 = vsel %vm71_vm1, %v1889_v57, 0.0  ;;  %v7842_v28 = vadd.f32 %v6221_v54, %v7822_v16 }
 0x624   :  { %v1898_v63 = vpop.f32.mrf.mxu1 }
 0x625   :  { %v2308_v10 = vsel %vm71_vm1, %v7842_v28, 0.0  ;;  %v7849_v6 = vadd.f32 %v7822_v16, %v1898_v63 }
 0x62e   :  { %v6572_v1 = vpop.eup %6571 }
 0x634   :  { %2165 = vrot.lane.b32.xlu0 %v1879_v11, %s6824_s18  ;;  %v2101_v11 = vmul.f32 %v7418_v31, %v6572_v1  ;;  %v2041_v31 = vmul.f32 1.442695, %v1889_v57 }
 0x636   :  { %6575 = vpow2.f32 %v2041_v31 }
 0x637   :  { %6577 = vpow2.f32 %v2043_v61 }
 0x641   :  { %2294 = vadd.xlane.f32.xlu1 %v2293_v39  ;;  %v6574_v39 = vpop.eup %6573 }
 0x642   :  { %v2102_v53 = vmul.f32 %v7378_v44, %v6574_v39 }
 0x652   :  { %2171 = vrot.lane.b32.xlu1 %v1894_v7, %s6824_s18 }
 0x653   :  { %2303 = vadd.xlane.f32.xlu0 %v2302_v15  ;;  %v2305_v15 = vsel %vm71_vm1, %v7849_v6, 0.0 }
 0x669   :  { %2169 = vrot.lane.b32.xlu0 %v1889_v57, %s6824_s18 }
 0x676   :  { %2300 = vadd.xlane.f32.xlu1 %v2299_v41 }
 0x687   :  { %2175 = vrot.lane.b32.xlu1 %v7842_v28, %s6824_s18 }
 0x688   :  { %2309 = vadd.xlane.f32.xlu0 %v2308_v10  ;;  %v6224_v10 = vpop.f32.mrf.mxu1 }
 0x689   :  { %v7868_v51 = vadd.f32 %v6224_v10, %v7822_v16 }
 0x68a   :  { %v1908_v63 = vpop.f32.mrf.mxu1 }
 0x68b   :  { %v2314_v44 = vsel %vm71_vm1, %v7868_v51, 0.0  ;;  %v7875_v1 = vadd.f32 %v7822_v16, %v1908_v63 }
 0x68c   :  { %v6227_v63 = vpop.f32.mrf.mxu1 }
 0x68f   :  { %v2168_v14 = vpop.permute.xlu1 %2167 }
 0x690   :  { %v7861_v54 = vadd.f32 %v2168_v14, %v2102_v53  ;;  %v6576_v14 = vpop.eup %6575  ;;  %v2311_v53 = vsel %vm71_vm1, %v7875_v1, 0.0 }
 0x691   :  { %v6578_v57 = vpop.eup %6577 }
 0x692   :  { %10304 = vst [vmem:[#allocation45_spill] sm:$0xff] %v7861_v54  ;;  %v2104_v10 = vmul.f32 %v7394_v20, %v6578_v57  ;;  %v5560_v20 = vld [vmem:[%s10208_s3 + $0xa8] sm:$0xff]  ;;  %v5558_v57 = vld [vmem:[%s10208_s3 + $0x98] sm:$0xff] }
 0x69e   :  { %2173 = vrot.lane.b32.xlu0 %v7849_v6, %s6824_s18 }
 0x6a7   :  { %v7853_v43 = vpop.xlane.xlu0 %2297 }
 0x6a8   :  { %10302 = vst [vmem:[#allocation43_spill] sm:$0xff] %v7853_v43 }
 0x6ab   :  { %2306 = vadd.xlane.f32.xlu1 %v2305_v15  ;;  %v2166_v29 = vpop.permute.xlu0 %2165 }
 0x6ac   :  { %v7859_v41 = vadd.f32 %v2166_v29, %v2101_v11  ;;  %v5562_v11 = vld [vmem:[%s10208_s3 + $0xb8] sm:$0xff]  ;;  %v2103_v29 = vmul.f32 %v7437_v46, %v6576_v14  ;;  %v7905_v46 = vadd.f32 %v6227_v63, %v7822_v16  ;;  %v5559_v14 = vld [vmem:[%s10208_s3 + $0xa0] sm:$0xff]  ;;  %v2047_v63 = vmul.f32 1.442695, %v7842_v28  ;;  %v6795_v28 = vld [vmem:[%s10207_s0 + $0x28] sm:$0xff] }
 0x6ad   :  { %6311 = vmatprep.subr.mxu1 %v5562_v11 }
 0x6ae   :  { %10303 = vst [vmem:[#allocation44_spill] sm:$0xff] %v7859_v41  ;;  %6263 = vmatprep.mubr.msk.f32.mxu0 %vm71_vm1, %v7859_v41  ;;  %6312 = vmatpush3.msra.mxu1 %v5562_v11  ;;  %v5561_v11 = vld [vmem:[%s10208_s3 + $0xb0] sm:$0xff] }
 0x6af   :  { %6264 = vmatmul.mubr.msk.f32.vlgmr.msra.gmra.mxu0 %vm71_vm1, %v7861_v54  ;;  %6313 = vmatprep.subr.mxu1 %v5561_v11 }
 0x6b0   :  { %6314 = vmatpush3.msra.mxu1 %v5561_v11  ;;  %v1918_v11 = vpop.f32.mrf.mxu1 }
 0x6b1   :  { %6315 = vmatprep.subr.mxu1 %v5560_v20 }
 0x6b2   :  { %6316 = vmatpush3.msra.mxu1 %v5560_v20  ;;  %v1919_v20 = vadd.f32 %v7822_v16, %v1918_v11 }
 0x6b3   :  { %6317 = vmatprep.subr.mxu1 %v5559_v14 }
 0x6b4   :  { %6318 = vmatpush3.msra.mxu1 %v5559_v14 }
 0x6b5   :  { %6319 = vmatprep.subr.mxu1 %v5558_v57 }
 0x6b6   :  { %6320 = vmatpush3.msra.mxu1 %v5558_v57 }
 0x6bc   :  { %2179 = vrot.lane.b32.xlu1 %v7868_v51, %s6824_s18 }
 0x6bd   :  { %2315 = vadd.xlane.f32.xlu0 %v2314_v44 }
 0x6ca   :  { %v7879_v39 = vpop.xlane.xlu1 %2294 }
 0x6cb   :  { %10305 = vst [vmem:[#allocation46_spill] sm:$0xff] %v7879_v39  ;;  %v6802_v39 = vld [vmem:[%s10207_s0 + $0x60] sm:$0xff] }
 0x6ce   :  { %v2172_v7 = vpop.permute.xlu1 %2171 }
 0x6cf   :  { %v7892_v61 = vadd.f32 %v2172_v7, %v2104_v10  ;;  %v2320_v7 = vsel %vm71_vm1, %v7905_v46, 0.0  ;;  %v5555_v10 = vld [vmem:[%s10208_s3 + $0x80] sm:$0xff] }
 0x6d1   :  { %10308 = vst [vmem:[#allocation49_spill] sm:$0xff] %v7892_v61 }
 0x6d3   :  { %2177 = vrot.lane.b32.xlu0 %v7875_v1, %s6824_s18 }
 0x6dc   :  { %v7881_v15 = vpop.xlane.xlu0 %2303 }
 0x6dd   :  { %10306 = vst [vmem:[#allocation47_spill] sm:$0xff] %v7881_v15 }
 0x6e0   :  { %2312 = vadd.xlane.f32.xlu1 %v2311_v53  ;;  %v2170_v44 = vpop.permute.xlu0 %2169  ;;  %v5557_v53 = vld [vmem:[%s10208_s3 + $0x90] sm:$0xff] }
 0x6e1   :  { %v7890_v31 = vadd.f32 %v2170_v44, %v2103_v29  ;;  %6321 = vmatprep.subr.mxu1 %v5557_v53  ;;  %v5556_v29 = vld [vmem:[%s10208_s3 + $0x88] sm:$0xff]  ;;  %v2045_v44 = vmul.f32 1.442695, %v7849_v6 }
 0x6e2   :  { %6322 = vmatpush3.msra.mxu1 %v5557_v53 }
 0x6e3   :  { %10307 = vst [vmem:[#allocation48_spill] sm:$0xff] %v7890_v31  ;;  %6266 = vmatprep.mubr.msk.f32.mxu0 %vm71_vm1, %v7890_v31  ;;  %6323 = vmatprep.subr.mxu1 %v5556_v29  ;;  %6579 = vpow2.f32 %v2045_v44 }
 0x6e4   :  { %6267 = vmatmul.mubr.msk.f32.gmra.mxu0 %vm71_vm1, %v7892_v61  ;;  %6324 = vmatpush3.msra.mxu1 %v5556_v29  ;;  %6581 = vpow2.f32 %v2047_v63 }
 0x6e5   :  { %6325 = vmatprep.subr.mxu1 %v5555_v10 }
 0x6e6   :  { %6326 = vmatpush3.msra.mxu1 %v5555_v10  ;;  %v2317_v10 = vsel %vm71_vm1, %v1919_v20, 0.0 }
 0x6f0   :  { %v6580_v57 = vpop.eup %6579 }
 0x6f1   :  { %2183 = vrot.lane.b32.xlu1 %v7905_v46, %s6824_s18  ;;  %v6582_v53 = vpop.eup %6581  ;;  %v2105_v6 = vmul.f32 %v7463_v45, %v6580_v57 }
 0x6f2   :  { %2321 = vadd.xlane.f32.xlu0 %v2320_v7  ;;  %v2106_v44 = vmul.f32 %v6795_v28, %v6582_v53  ;;  %v2049_v53 = vmul.f32 1.442695, %v7875_v1 }
 0x6f4   :  { %6583 = vpow2.f32 %v2049_v53 }
 0x6ff   :  { %v7930_v14 = vpop.xlane.xlu1 %2300 }
 0x700   :  { %10309 = vst [vmem:[#allocation50_spill] sm:$0xff] %v7930_v14  ;;  %v6800_v14 = vld [vmem:[%s10207_s0 + $0x50] sm:$0xff] }
 0x701   :  { %v6584_v28 = vpop.eup %6583 }
 0x703   :  { %v2176_v29 = vpop.permute.xlu1 %2175 }
 0x704   :  { %v7941_v15 = vadd.f32 %v2176_v29, %v2106_v44  ;;  %v2051_v29 = vmul.f32 1.442695, %v7868_v51  ;;  %v6796_v51 = vld [vmem:[%s10207_s0 + $0x30] sm:$0xff] }
 0x705   :  { %v2107_v53 = vmul.f32 %v6796_v51, %v6584_v28  ;;  %v7992_v51 = vld [vmem:[%s10209_s2 + $0x2] ss:$0 sm:$0xff] }
 0x706   :  { %10312 = vst [vmem:[#allocation53_spill] sm:$0xff] %v7941_v15  ;;  %6585 = vpow2.f32 %v2051_v29  ;;  %v6797_v29 = vld [vmem:[%s10207_s0 + $0x38] sm:$0xff] }
 0x708   :  { %2181 = vrot.lane.b32.xlu0 %v1919_v20, %s6824_s18 }
 0x711   :  { %v7932_v7 = vpop.xlane.xlu0 %2309 }
 0x712   :  { %10310 = vst [vmem:[#allocation51_spill] sm:$0xff] %v7932_v7  ;;  %v6230_v7 = vpop.f32.mrf.mxu1 }
 0x713   :  { %v7948_v45 = vadd.f32 %v6230_v7, %v7822_v16 }
 0x715   :  { %2318 = vadd.xlane.f32.xlu1 %v2317_v10  ;;  %v2174_v63 = vpop.permute.xlu0 %2173  ;;  %v2326_v57 = vsel %vm71_vm1, %v7948_v45, 0.0  ;;  %v1928_v10 = vpop.f32.mrf.mxu1 }
 0x716   :  { %v7939_v11 = vadd.f32 %v2174_v63, %v2105_v6  ;;  %v7957_v6 = vadd.f32 %v7822_v16, %v1928_v10  ;;  %v6586_v63 = vpop.eup %6585 }
 0x717   :  { %v2108_v10 = vmul.f32 %v6797_v29, %v6586_v63  ;;  %v6233_v58 = vpop.f32.mrf.mxu1 }
 0x718   :  { %10311 = vst [vmem:[#allocation52_spill] sm:$0xff] %v7939_v11  ;;  %6269 = vmatprep.mubr.msk.f32.mxu0 %vm71_vm1, %v7939_v11  ;;  %v2323_v1 = vsel %vm71_vm1, %v7957_v6, 0.0  ;;  %v7982_v28 = vadd.f32 %v6233_v58, %v7822_v16 }
 0x719   :  { %6270 = vmatmul.mubr.msk.f32.gmra.mxu0 %vm71_vm1, %v7941_v15 }
 0x71a   :  { %v2332_v63 = vsel %vm71_vm1, %v7982_v28, 0.0 }
 0x726   :  { %2187 = vrot.lane.b32.xlu1 %v7948_v45, %s6824_s18 }
 0x727   :  { %2327 = vadd.xlane.f32.xlu0 %v2326_v57 }
 0x734   :  { %v7961_v7 = vpop.xlane.xlu1 %2306 }
 0x735   :  { %10313 = vst [vmem:[#allocation54_spill] sm:$0xff] %v7961_v7  ;;  %v6798_v7 = vld [vmem:[%s10207_s0 + $0x40] sm:$0xff] }
 0x738   :  { %v2180_v57 = vpop.permute.xlu1 %2179 }
 0x73d   :  { %2185 = vrot.lane.b32.xlu0 %v7957_v6, %s6824_s18 }
 0x746   :  { %v7963_v44 = vpop.xlane.xlu0 %2315 }
 0x747   :  { %10314 = vst [vmem:[#allocation55_spill] sm:$0xff] %v7963_v44  ;;  %v7975_v44 = vadd.f32 %v2180_v57, %v2108_v10  ;;  %v2055_v57 = vmul.f32 1.442695, %v7905_v46 }
 0x749   :  { %10316 = vst [vmem:[#allocation57_spill] sm:$0xff] %v7975_v44 }
 0x74a   :  { %2324 = vadd.xlane.f32.xlu1 %v2323_v1  ;;  %v2178_v43 = vpop.permute.xlu0 %2177  ;;  %v1938_v1 = vpop.f32.mrf.mxu1 }
 0x74b   :  { %v7973_v17 = vadd.f32 %v2178_v43, %v2107_v53  ;;  %v2053_v43 = vmul.f32 1.442695, %v1919_v20  ;;  %v7995_v53 = vadd.f32 %v7822_v16, %v1938_v1 }
 0x74d   :  { %10315 = vst [vmem:[#allocation56_spill] sm:$0xff] %v7973_v17  ;;  %6272 = vmatprep.mubr.msk.f32.mxu0 %vm71_vm1, %v7973_v17  ;;  %6587 = vpow2.f32 %v2053_v43  ;;  %v2329_v33 = vsel %vm71_vm1, %v7995_v53, 0.0 }
 0x74e   :  { %6273 = vmatmul.mubr.msk.f32.gmra.mxu0 %vm71_vm1, %v7975_v44  ;;  %6589 = vpow2.f32 %v2055_v57  ;;  %v6818_v44 = vld [vmem:[%s10207_s0 + $0xe0] sm:$0xff] }
 0x75a   :  { %v6588_v57 = vpop.eup %6587 }
 0x75b   :  { %2191 = vrot.lane.b32.xlu1 %v7982_v28, %s6824_s18 }
 0x75c   :  { %2333 = vadd.xlane.f32.xlu0 %v2332_v63 }
 0x769   :  { %v8002_v43 = vpop.xlane.xlu1 %2312 }
 0x76a   :  { %10317 = vst [vmem:[#allocation58_spill] sm:$0xff] %v8002_v43 }
 0x76f   :  { %v6265_v58 = vpop.f32.mrf.mxu0 }
 0x770   :  { %v2613_v29 = vadd.f32 %v6265_v58, %v7992_v51  ;;  %v6590_v58 = vpop.eup %6589 }
 0x771   :  { %v2607_v10 = vpop.f32.mrf.mxu0 }
 0x772   :  { %v2608_v63 = vadd.f32 %v7992_v51, %v2607_v10  ;;  %2189 = vrot.lane.b32.xlu0 %v7995_v53, %s6824_s18  ;;  %v2799_v46 = vmul.f32 0.01, %v2613_v29  ;;  %vm2767_vm15 = vcmp.gt.f32.partialorder %v2613_v29, 0.0  ;;  %v2184_v10 = vpop.permute.xlu1 %2183 }
 0x774   :  { %vm2766_vm3 = vcmp.gt.f32.partialorder %v2608_v63, 0.0  ;;  %v2798_v20 = vmul.f32 0.01, %v2608_v63  ;;  %v2831_v49 = vsel %vm2767_vm15, %v2613_v29, %v2799_v46 }
 0x776   :  { %v2830_v48 = vsel %vm2766_vm3, %v2608_v63, %v2798_v20  ;;  %v2109_v63 = vmul.f32 %v6798_v7, %v6588_v57  ;;  %v2057_v57 = vmul.f32 1.442695, %v7957_v6 }
 0x777   :  { %6327 = vmatprep.mubr.msk.f32.mxu1 %vm499_vm2, %v2830_v48  ;;  %v6799_v48 = vld [vmem:[%s10207_s0 + $0x48] sm:$0xff] }
 0x778   :  { %6328 = vmatmul.mubr.msk.f32.vlgmr.msra.gmra.mxu1 %vm499_vm2, %v2831_v49  ;;  %v2110_v29 = vmul.f32 %v6799_v48, %v6590_v58  ;;  %v2059_v58 = vmul.f32 1.442695, %v7948_v45  ;;  %6591 = vpow2.f32 %v2057_v57 }
 0x77a   :  { %v8017_v20 = vadd.f32 %v2184_v10, %v2110_v29  ;;  %6593 = vpow2.f32 %v2059_v58 }
 0x77b   :  { %v8005_v1 = vpop.xlane.xlu0 %2321 }
 0x77c   :  { %10318 = vst [vmem:[#allocation59_spill] sm:$0xff] %v8005_v1  ;;  %10320 = vst [vmem:[#allocation61_spill] sm:$0xff] %v8017_v20  ;;  %v6236_v1 = vpop.f32.mrf.mxu1 }
 0x77d   :  { %v8024_v7 = vadd.f32 %v6236_v1, %v7822_v16 }
 0x77e   :  { %v1948_v10 = vpop.f32.mrf.mxu1 }
 0x77f   :  { %2330 = vadd.xlane.f32.xlu1 %v2329_v33  ;;  %v2182_v49 = vpop.permute.xlu0 %2181  ;;  %v2338_v33 = vsel %vm71_vm1, %v8024_v7, 0.0  ;;  %v8033_v48 = vadd.f32 %v7822_v16, %v1948_v10 }
 0x780   :  { %v8015_v46 = vadd.f32 %v2182_v49, %v2109_v63 }
 0x781   :  { %v2335_v23 = vsel %vm71_vm1, %v8033_v48, 0.0 }
 0x782   :  { %10319 = vst [vmem:[#allocation60_spill] sm:$0xff] %v8015_v46  ;;  %6275 = vmatprep.mubr.msk.f32.mxu0 %vm71_vm1, %v8015_v46 }
 0x783   :  { %6276 = vmatmul.mubr.msk.f32.gmra.mxu0 %vm71_vm1, %v8017_v20 }
 0x785   :  { %v6592_v10 = vpop.eup %6591 }
 0x787   :  { %v6594_v43 = vpop.eup %6593 }
 0x790   :  { %2195 = vrot.lane.b32.xlu1 %v8024_v7, %s6824_s18 }
 0x791   :  { %2339 = vadd.xlane.f32.xlu0 %v2338_v33 }
 0x79e   :  { %v8040_v58 = vpop.xlane.xlu1 %2318 }
 0x79f   :  { %10321 = vst [vmem:[#allocation62_spill] sm:$0xff] %v8040_v58 }
 0x7a4   :  { %v6268_v63 = vpop.f32.mrf.mxu0 }
 0x7a5   :  { %v2623_v1 = vadd.f32 %v6268_v63, %v7992_v51 }
 0x7a6   :  { %v2617_v29 = vpop.f32.mrf.mxu0 }
 0x7a7   :  { %v2618_v49 = vadd.f32 %v7992_v51, %v2617_v29  ;;  %2193 = vrot.lane.b32.xlu0 %v8033_v48, %s6824_s18  ;;  %v2801_v33 = vmul.f32 0.01, %v2623_v1  ;;  %vm2769_vm4 = vcmp.gt.f32.partialorder %v2623_v1, 0.0  ;;  %v2188_v29 = vpop.permute.xlu1 %2187 }
 0x7a9   :  { %vm2768_vm5 = vcmp.gt.f32.partialorder %v2618_v49, 0.0  ;;  %v2800_v6 = vmul.f32 0.01, %v2618_v49  ;;  %v2833_v57 = vsel %vm2769_vm4, %v2623_v1, %v2801_v33  ;;  %v6801_v1 = vld [vmem:[%s10207_s0 + $0x58] sm:$0xff] }
 0x7aa   :  { %v2112_v33 = vmul.f32 %v6801_v1, %v6594_v43  ;;  %v2061_v43 = vmul.f32 1.442695, %v7995_v53 }
 0x7ab   :  { %v2832_v45 = vsel %vm2768_vm5, %v2618_v49, %v2800_v6  ;;  %v2111_v49 = vmul.f32 %v6800_v14, %v6592_v10  ;;  %v2063_v10 = vmul.f32 1.442695, %v7982_v28 }
 0x7ac   :  { %6330 = vmatprep.mubr.msk.f32.mxu1 %vm499_vm2, %v2832_v45  ;;  %6595 = vpow2.f32 %v2061_v43 }
 0x7ad   :  { %6331 = vmatmul.mubr.msk.f32.gmra.mxu1 %vm499_vm2, %v2833_v57  ;;  %v8055_v57 = vadd.f32 %v2188_v29, %v2112_v33  ;;  %6597 = vpow2.f32 %v2063_v10 }
 0x7af   :  { %10324 = vst [vmem:[#allocation65_spill] sm:$0xff] %v8055_v57 }
 0x7b0   :  { %v8043_v63 = vpop.xlane.xlu0 %2327 }
 0x7b1   :  { %10322 = vst [vmem:[#allocation63_spill] sm:$0xff] %v8043_v63  ;;  %v6239_v63 = vpop.f32.mrf.mxu1 }
 0x7b2   :  { %v8062_v14 = vadd.f32 %v6239_v63, %v7822_v16 }
 0x7b3   :  { %v1958_v29 = vpop.f32.mrf.mxu1 }
 0x7b4   :  { %2336 = vadd.xlane.f32.xlu1 %v2335_v23  ;;  %v2186_v6 = vpop.permute.xlu0 %2185  ;;  %v2344_v23 = vsel %vm71_vm1, %v8062_v14, 0.0  ;;  %v8071_v1 = vadd.f32 %v7822_v16, %v1958_v29 }
 0x7b5   :  { %v8053_v45 = vadd.f32 %v2186_v6, %v2111_v49 }
 0x7b6   :  { %v2341_v26 = vsel %vm71_vm1, %v8071_v1, 0.0 }
 0x7b7   :  { %10323 = vst [vmem:[#allocation64_spill] sm:$0xff] %v8053_v45  ;;  %6278 = vmatprep.mubr.msk.f32.mxu0 %vm71_vm1, %v8053_v45 }
 0x7b8   :  { %6279 = vmatmul.mubr.msk.f32.gmra.mxu0 %vm71_vm1, %v8055_v57 }
 0x7b9   :  { %v6596_v29 = vpop.eup %6595 }
 0x7ba   :  { %v6598_v58 = vpop.eup %6597 }
 0x7c5   :  { %2199 = vrot.lane.b32.xlu1 %v8062_v14, %s6824_s18 }
 0x7c6   :  { %2345 = vadd.xlane.f32.xlu0 %v2344_v23 }
 0x7d3   :  { %v8078_v10 = vpop.xlane.xlu1 %2324 }
 0x7d4   :  { %10325 = vst [vmem:[#allocation66_spill] sm:$0xff] %v8078_v10 }
 0x7d9   :  { %v6271_v49 = vpop.f32.mrf.mxu0 }
 0x7da   :  { %v2633_v63 = vadd.f32 %v6271_v49, %v7992_v51 }
 0x7db   :  { %v2627_v33 = vpop.f32.mrf.mxu0 }
 0x7dc   :  { %v2628_v6 = vadd.f32 %v7992_v51, %v2627_v33  ;;  %2197 = vrot.lane.b32.xlu0 %v8071_v1, %s6824_s18  ;;  %v2803_v23 = vmul.f32 0.01, %v2633_v63  ;;  %vm2771_vm6 = vcmp.gt.f32.partialorder %v2633_v63, 0.0  ;;  %v2192_v33 = vpop.permute.xlu1 %2191 }
 0x7de   :  { %vm2770_vm7 = vcmp.gt.f32.partialorder %v2628_v6, 0.0  ;;  %v2802_v53 = vmul.f32 0.01, %v2628_v6  ;;  %v2835_v43 = vsel %vm2771_vm6, %v2633_v63, %v2803_v23  ;;  %v6803_v63 = vld [vmem:[%s10207_s0 + $0x68] sm:$0xff] }
 0x7df   :  { %v2114_v23 = vmul.f32 %v6803_v63, %v6598_v58  ;;  %v2065_v58 = vmul.f32 1.442695, %v8033_v48 }
 0x7e0   :  { %v2834_v28 = vsel %vm2770_vm7, %v2628_v6, %v2802_v53  ;;  %v2113_v6 = vmul.f32 %v6802_v39, %v6596_v29  ;;  %v2067_v29 = vmul.f32 1.442695, %v8024_v7 }
 0x7e1   :  { %6333 = vmatprep.mubr.msk.f32.mxu1 %vm499_vm2, %v2834_v28  ;;  %6599 = vpow2.f32 %v2065_v58 }
 0x7e2   :  { %6334 = vmatmul.mubr.msk.f32.gmra.mxu1 %vm499_vm2, %v2835_v43  ;;  %v8093_v43 = vadd.f32 %v2192_v33, %v2114_v23  ;;  %6601 = vpow2.f32 %v2067_v29 }
 0x7e4   :  { %10328 = vst [vmem:[#allocation69_spill] sm:$0xff] %v8093_v43 }
 0x7e5   :  { %v8081_v49 = vpop.xlane.xlu0 %2333 }
 0x7e6   :  { %10326 = vst [vmem:[#allocation67_spill] sm:$0xff] %v8081_v49  ;;  %v6242_v49 = vpop.f32.mrf.mxu1 }
 0x7e7   :  { %v8100_v39 = vadd.f32 %v6242_v49, %v7822_v16 }
 0x7e8   :  { %v1968_v33 = vpop.f32.mrf.mxu1 }
 0x7e9   :  { %2342 = vadd.xlane.f32.xlu1 %v2341_v26  ;;  %v2190_v53 = vpop.permute.xlu0 %2189  ;;  %v2350_v26 = vsel %vm71_vm1, %v8100_v39, 0.0  ;;  %v8109_v63 = vadd.f32 %v7822_v16, %v1968_v33 }
 0x7ea   :  { %v8091_v28 = vadd.f32 %v2190_v53, %v2113_v6 }
 0x7eb   :  { %v2347_v13 = vsel %vm71_vm1, %v8109_v63, 0.0 }
 0x7ec   :  { %10327 = vst [vmem:[#allocation68_spill] sm:$0xff] %v8091_v28  ;;  %6281 = vmatprep.mubr.msk.f32.mxu0 %vm71_vm1, %v8091_v28  ;;  %v6804_v28 = vld [vmem:[%s10207_s0 + $0x70] sm:$0xff] }
 0x7ed   :  { %6282 = vmatmul.mubr.msk.f32.gmra.mxu0 %vm71_vm1, %v8093_v43  ;;  %v8352_v43 = vld [vmem:[%s10210_s4 + $0x2] ss:$0 sm:$0xff] }
 0x7ee   :  { %v6600_v33 = vpop.eup %6599 }
 0x7ef   :  { %v6602_v10 = vpop.eup %6601 }
 0x7fa   :  { %2203 = vrot.lane.b32.xlu1 %v8100_v39, %s6824_s18 }
 0x7fb   :  { %2351 = vadd.xlane.f32.xlu0 %v2350_v26 }
 0x808   :  { %v8116_v29 = vpop.xlane.xlu1 %2330 }
 0x809   :  { %10329 = vst [vmem:[#allocation70_spill] sm:$0xff] %v8116_v29 }
 0x80e   :  { %v6274_v6 = vpop.f32.mrf.mxu0 }
 0x80f   :  { %v2643_v49 = vadd.f32 %v6274_v6, %v7992_v51 }
 0x810   :  { %v2637_v23 = vpop.f32.mrf.mxu0 }
 0x811   :  { %v2638_v53 = vadd.f32 %v7992_v51, %v2637_v23  ;;  %2201 = vrot.lane.b32.xlu0 %v8109_v63, %s6824_s18  ;;  %v2805_v26 = vmul.f32 0.01, %v2643_v49  ;;  %vm2773_vm8 = vcmp.gt.f32.partialorder %v2643_v49, 0.0  ;;  %v2196_v23 = vpop.permute.xlu1 %2195 }
 0x813   :  { %vm2772_vm9 = vcmp.gt.f32.partialorder %v2638_v53, 0.0  ;;  %v2804_v48 = vmul.f32 0.01, %v2638_v53  ;;  %v2837_v58 = vsel %vm2773_vm8, %v2643_v49, %v2805_v26  ;;  %v6805_v49 = vld [vmem:[%s10207_s0 + $0x78] sm:$0xff] }
 0x814   :  { %v2116_v26 = vmul.f32 %v6805_v49, %v6602_v10  ;;  %v2069_v10 = vmul.f32 1.442695, %v8071_v1 }
 0x815   :  { %v2836_v7 = vsel %vm2772_vm9, %v2638_v53, %v2804_v48  ;;  %v2115_v53 = vmul.f32 %v6804_v28, %v6600_v33  ;;  %v2071_v33 = vmul.f32 1.442695, %v8062_v14 }
 0x816   :  { %6336 = vmatprep.mubr.msk.f32.mxu1 %vm499_vm2, %v2836_v7  ;;  %6603 = vpow2.f32 %v2069_v10 }
 0x817   :  { %6337 = vmatmul.mubr.msk.f32.gmra.mxu1 %vm499_vm2, %v2837_v58  ;;  %v8131_v58 = vadd.f32 %v2196_v23, %v2116_v26  ;;  %6605 = vpow2.f32 %v2071_v33 }
 0x819   :  { %10332 = vst [vmem:[#allocation73_spill] sm:$0xff] %v8131_v58 }
 0x81a   :  { %v8119_v6 = vpop.xlane.xlu0 %2339 }
 0x81b   :  { %10330 = vst [vmem:[#allocation71_spill] sm:$0xff] %v8119_v6  ;;  %v6245_v6 = vpop.f32.mrf.mxu1 }
 0x81c   :  { %v8138_v28 = vadd.f32 %v6245_v6, %v7822_v16 }
 0x81d   :  { %v1978_v23 = vpop.f32.mrf.mxu1 }
 0x81e   :  { %2348 = vadd.xlane.f32.xlu1 %v2347_v13  ;;  %v2194_v48 = vpop.permute.xlu0 %2193  ;;  %v2356_v13 = vsel %vm71_vm1, %v8138_v28, 0.0  ;;  %v8147_v49 = vadd.f32 %v7822_v16, %v1978_v23 }
 0x81f   :  { %v8129_v7 = vadd.f32 %v2194_v48, %v2115_v53 }
 0x821   :  { %10331 = vst [vmem:[#allocation72_spill] sm:$0xff] %v8129_v7  ;;  %6284 = vmatprep.mubr.msk.f32.mxu0 %vm71_vm1, %v8129_v7  ;;  %v2353_v7 = vsel %vm71_vm1, %v8147_v49, 0.0 }
 0x822   :  { %6285 = vmatmul.mubr.msk.f32.gmra.mxu0 %vm71_vm1, %v8131_v58  ;;  %v6806_v58 = vld [vmem:[%s10207_s0 + $0x80] sm:$0xff] }
 0x823   :  { %v6604_v23 = vpop.eup %6603 }
 0x824   :  { %v6606_v29 = vpop.eup %6605 }
 0x82f   :  { %2207 = vrot.lane.b32.xlu1 %v8138_v28, %s6824_s18 }
 0x830   :  { %2357 = vadd.xlane.f32.xlu0 %v2356_v13 }
 0x83d   :  { %v8154_v33 = vpop.xlane.xlu1 %2336 }
 0x83e   :  { %10333 = vst [vmem:[#allocation74_spill] sm:$0xff] %v8154_v33 }
 0x843   :  { %v6277_v53 = vpop.f32.mrf.mxu0 }
 0x844   :  { %v2653_v6 = vadd.f32 %v6277_v53, %v7992_v51 }
 0x845   :  { %v2647_v26 = vpop.f32.mrf.mxu0 }
 0x846   :  { %v2648_v48 = vadd.f32 %v7992_v51, %v2647_v26  ;;  %2205 = vrot.lane.b32.xlu0 %v8147_v49, %s6824_s18  ;;  %v2807_v13 = vmul.f32 0.01, %v2653_v6  ;;  %vm2775_vm10 = vcmp.gt.f32.partialorder %v2653_v6, 0.0  ;;  %v2200_v26 = vpop.permute.xlu1 %2199 }
 0x848   :  { %vm2774_vm11 = vcmp.gt.f32.partialorder %v2648_v48, 0.0  ;;  %v2806_v1 = vmul.f32 0.01, %v2648_v48  ;;  %v2839_v10 = vsel %vm2775_vm10, %v2653_v6, %v2807_v13  ;;  %v6807_v6 = vld [vmem:[%s10207_s0 + $0x88] sm:$0xff] }
 0x849   :  { %v2118_v13 = vmul.f32 %v6807_v6, %v6606_v29 }
 0x84a   :  { %v2838_v14 = vsel %vm2774_vm11, %v2648_v48, %v2806_v1  ;;  %v2117_v48 = vmul.f32 %v6806_v58, %v6604_v23  ;;  %v2075_v23 = vmul.f32 1.442695, %v8100_v39 }
 0x84b   :  { %6339 = vmatprep.mubr.msk.f32.mxu1 %vm499_vm2, %v2838_v14 }
 0x84c   :  { %6340 = vmatmul.mubr.msk.f32.gmra.mxu1 %vm499_vm2, %v2839_v10  ;;  %v8169_v10 = vadd.f32 %v2200_v26, %v2118_v13 }
 0x84e   :  { %10336 = vst [vmem:[#allocation77_spill] sm:$0xff] %v8169_v10 }
 0x84f   :  { %v8157_v53 = vpop.xlane.xlu0 %2345 }
 0x850   :  { %10334 = vst [vmem:[#allocation75_spill] sm:$0xff] %v8157_v53  ;;  %v6248_v53 = vpop.f32.mrf.mxu1 }
 0x851   :  { %v8176_v58 = vadd.f32 %v6248_v53, %v7822_v16 }
 0x852   :  { %v1988_v26 = vpop.f32.mrf.mxu1 }
 0x853   :  { %2354 = vadd.xlane.f32.xlu1 %v2353_v7  ;;  %v2198_v1 = vpop.permute.xlu0 %2197  ;;  %v2362_v29 = vsel %vm71_vm1, %v8176_v58, 0.0  ;;  %v2073_v7 = vmul.f32 1.442695, %v8109_v63  ;;  %v8185_v6 = vadd.f32 %v7822_v16, %v1988_v26 }
 0x854   :  { %v8167_v14 = vadd.f32 %v2198_v1, %v2117_v48 }
 0x855   :  { %6607 = vpow2.f32 %v2073_v7 }
 0x856   :  { %10335 = vst [vmem:[#allocation76_spill] sm:$0xff] %v8167_v14  ;;  %6287 = vmatprep.mubr.msk.f32.mxu0 %vm71_vm1, %v8167_v14  ;;  %6609 = vpow2.f32 %v2075_v23  ;;  %v2359_v14 = vsel %vm71_vm1, %v8185_v6, 0.0 }
 0x857   :  { %6288 = vmatmul.mubr.msk.f32.gmra.mxu0 %vm71_vm1, %v8169_v10  ;;  %v6808_v10 = vld [vmem:[%s10207_s0 + $0x90] sm:$0xff] }
 0x862   :  { %v6608_v26 = vpop.eup %6607 }
 0x863   :  { %v6610_v33 = vpop.eup %6609 }
 0x864   :  { %2211 = vrot.lane.b32.xlu1 %v8176_v58, %s6824_s18 }
 0x865   :  { %2363 = vadd.xlane.f32.xlu0 %v2362_v29 }
 0x872   :  { %v8192_v23 = vpop.xlane.xlu1 %2342 }
 0x873   :  { %10337 = vst [vmem:[#allocation78_spill] sm:$0xff] %v8192_v23 }
 0x878   :  { %v6280_v48 = vpop.f32.mrf.mxu0 }
 0x879   :  { %v2663_v53 = vadd.f32 %v6280_v48, %v7992_v51 }
 0x87a   :  { %v2657_v13 = vpop.f32.mrf.mxu0 }
 0x87b   :  { %v2658_v1 = vadd.f32 %v7992_v51, %v2657_v13  ;;  %2209 = vrot.lane.b32.xlu0 %v8185_v6, %s6824_s18  ;;  %v2809_v29 = vmul.f32 0.01, %v2663_v53  ;;  %vm2777_vm12 = vcmp.gt.f32.partialorder %v2663_v53, 0.0  ;;  %v2204_v13 = vpop.permute.xlu1 %2203 }
 0x87d   :  { %vm2776_vm13 = vcmp.gt.f32.partialorder %v2658_v1, 0.0  ;;  %v2808_v63 = vmul.f32 0.01, %v2658_v1  ;;  %v2841_v7 = vsel %vm2777_vm12, %v2663_v53, %v2809_v29  ;;  %v6809_v53 = vld [vmem:[%s10207_s0 + $0x98] sm:$0xff] }
 0x87e   :  { %v2120_v29 = vmul.f32 %v6809_v53, %v6610_v33 }
 0x87f   :  { %v2840_v39 = vsel %vm2776_vm13, %v2658_v1, %v2808_v63  ;;  %v2119_v1 = vmul.f32 %v6808_v10, %v6608_v26  ;;  %v2079_v26 = vmul.f32 1.442695, %v8138_v28 }
 0x880   :  { %6342 = vmatprep.mubr.msk.f32.mxu1 %vm499_vm2, %v2840_v39 }
 0x881   :  { %6343 = vmatmul.mubr.msk.f32.gmra.mxu1 %vm499_vm2, %v2841_v7  ;;  %v8207_v7 = vadd.f32 %v2204_v13, %v2120_v29 }
 0x883   :  { %10340 = vst [vmem:[#allocation81_spill] sm:$0xff] %v8207_v7 }
 0x884   :  { %v8195_v48 = vpop.xlane.xlu0 %2351 }
 0x885   :  { %10338 = vst [vmem:[#allocation79_spill] sm:$0xff] %v8195_v48  ;;  %v6251_v48 = vpop.f32.mrf.mxu1 }
 0x886   :  { %v8214_v10 = vadd.f32 %v6251_v48, %v7822_v16 }
 0x887   :  { %v1998_v13 = vpop.f32.mrf.mxu1 }
 0x888   :  { %2360 = vadd.xlane.f32.xlu1 %v2359_v14  ;;  %v2202_v63 = vpop.permute.xlu0 %2201  ;;  %v2368_v33 = vsel %vm71_vm1, %v8214_v10, 0.0  ;;  %v2077_v14 = vmul.f32 1.442695, %v8147_v49  ;;  %v8223_v53 = vadd.f32 %v7822_v16, %v1998_v13 }
 0x889   :  { %v8205_v39 = vadd.f32 %v2202_v63, %v2119_v1 }
 0x88a   :  { %6611 = vpow2.f32 %v2077_v14 }
 0x88b   :  { %10339 = vst [vmem:[#allocation80_spill] sm:$0xff] %v8205_v39  ;;  %6290 = vmatprep.mubr.msk.f32.mxu0 %vm71_vm1, %v8205_v39  ;;  %6613 = vpow2.f32 %v2079_v26  ;;  %v2365_v39 = vsel %vm71_vm1, %v8223_v53, 0.0 }
 0x88c   :  { %6291 = vmatmul.mubr.msk.f32.gmra.mxu0 %vm71_vm1, %v8207_v7  ;;  %v6810_v7 = vld [vmem:[%s10207_s0 + $0xa0] sm:$0xff] }
 0x897   :  { %v6612_v13 = vpop.eup %6611 }
 0x898   :  { %v6614_v23 = vpop.eup %6613 }
 0x899   :  { %2215 = vrot.lane.b32.xlu1 %v8214_v10, %s6824_s18 }
 0x89a   :  { %2369 = vadd.xlane.f32.xlu0 %v2368_v33 }
 0x8a7   :  { %v8230_v26 = vpop.xlane.xlu1 %2348 }
 0x8a8   :  { %10341 = vst [vmem:[#allocation82_spill] sm:$0xff] %v8230_v26 }
 0x8ad   :  { %v6283_v1 = vpop.f32.mrf.mxu0 }
 0x8ae   :  { %v2673_v48 = vadd.f32 %v6283_v1, %v7992_v51 }
 0x8af   :  { %v2667_v29 = vpop.f32.mrf.mxu0 }
 0x8b0   :  { %v2668_v63 = vadd.f32 %v7992_v51, %v2667_v29  ;;  %2213 = vrot.lane.b32.xlu0 %v8223_v53, %s6824_s18  ;;  %v2811_v33 = vmul.f32 0.01, %v2673_v48  ;;  %vm2779_vm14 = vcmp.gt.f32.partialorder %v2673_v48, 0.0  ;;  %v2208_v29 = vpop.permute.xlu1 %2207 }
 0x8b2   :  { %vm2778_vm15 = vcmp.gt.f32.partialorder %v2668_v63, 0.0  ;;  %v2810_v49 = vmul.f32 0.01, %v2668_v63  ;;  %v2843_v14 = vsel %vm2779_vm14, %v2673_v48, %v2811_v33  ;;  %v6811_v48 = vld [vmem:[%s10207_s0 + $0xa8] sm:$0xff] }
 0x8b3   :  { %v2122_v33 = vmul.f32 %v6811_v48, %v6614_v23 }
 0x8b4   :  { %v2842_v28 = vsel %vm2778_vm15, %v2668_v63, %v2810_v49  ;;  %v2121_v63 = vmul.f32 %v6810_v7, %v6612_v13  ;;  %v2083_v13 = vmul.f32 1.442695, %v8176_v58 }
 0x8b5   :  { %6345 = vmatprep.mubr.msk.f32.mxu1 %vm499_vm2, %v2842_v28 }
 0x8b6   :  { %6346 = vmatmul.mubr.msk.f32.gmra.mxu1 %vm499_vm2, %v2843_v14  ;;  %v8245_v14 = vadd.f32 %v2208_v29, %v2122_v33 }
 0x8b8   :  { %10344 = vst [vmem:[#allocation85_spill] sm:$0xff] %v8245_v14 }
 0x8b9   :  { %v8233_v1 = vpop.xlane.xlu0 %2357 }
 0x8ba   :  { %10342 = vst [vmem:[#allocation83_spill] sm:$0xff] %v8233_v1  ;;  %v6254_v1 = vpop.f32.mrf.mxu1 }
 0x8bb   :  { %v8252_v7 = vadd.f32 %v6254_v1, %v7822_v16 }
 0x8bc   :  { %v2008_v29 = vpop.f32.mrf.mxu1 }
 0x8bd   :  { %2366 = vadd.xlane.f32.xlu1 %v2365_v39  ;;  %v2206_v49 = vpop.permute.xlu0 %2205  ;;  %v2374_v23 = vsel %vm71_vm1, %v8252_v7, 0.0  ;;  %v2081_v39 = vmul.f32 1.442695, %v8185_v6  ;;  %v8261_v48 = vadd.f32 %v7822_v16, %v2008_v29 }
 0x8be   :  { %v8243_v28 = vadd.f32 %v2206_v49, %v2121_v63 }
 0x8bf   :  { %6615 = vpow2.f32 %v2081_v39 }
 0x8c0   :  { %10343 = vst [vmem:[#allocation84_spill] sm:$0xff] %v8243_v28  ;;  %6293 = vmatprep.mubr.msk.f32.mxu0 %vm71_vm1, %v8243_v28  ;;  %6617 = vpow2.f32 %v2083_v13  ;;  %v2371_v28 = vsel %vm71_vm1, %v8261_v48, 0.0 }
 0x8c1   :  { %6294 = vmatmul.mubr.msk.f32.gmra.mxu0 %vm71_vm1, %v8245_v14  ;;  %v6812_v14 = vld [vmem:[%s10207_s0 + $0xb0] sm:$0xff] }
 0x8cc   :  { %v6616_v29 = vpop.eup %6615 }
 0x8cd   :  { %v6618_v26 = vpop.eup %6617 }
 0x8ce   :  { %2219 = vrot.lane.b32.xlu1 %v8252_v7, %s6824_s18 }
 0x8cf   :  { %2375 = vadd.xlane.f32.xlu0 %v2374_v23 }
 0x8dc   :  { %v8268_v13 = vpop.xlane.xlu1 %2354 }
 0x8dd   :  { %10345 = vst [vmem:[#allocation86_spill] sm:$0xff] %v8268_v13 }
 0x8e2   :  { %v6286_v63 = vpop.f32.mrf.mxu0 }
 0x8e3   :  { %v2683_v1 = vadd.f32 %v6286_v63, %v7992_v51 }
 0x8e4   :  { %v2677_v33 = vpop.f32.mrf.mxu0 }
 0x8e5   :  { %v2678_v49 = vadd.f32 %v7992_v51, %v2677_v33  ;;  %2217 = vrot.lane.b32.xlu0 %v8261_v48, %s6824_s18  ;;  %v2813_v23 = vmul.f32 0.01, %v2683_v1  ;;  %vm2781_vm3 = vcmp.gt.f32.partialorder %v2683_v1, 0.0  ;;  %v2212_v33 = vpop.permute.xlu1 %2211 }
 0x8e7   :  { %vm2780_vm4 = vcmp.gt.f32.partialorder %v2678_v49, 0.0  ;;  %v2812_v6 = vmul.f32 0.01, %v2678_v49  ;;  %v2845_v39 = vsel %vm2781_vm3, %v2683_v1, %v2813_v23  ;;  %v6813_v1 = vld [vmem:[%s10207_s0 + $0xb8] sm:$0xff] }
 0x8e8   :  { %v2124_v23 = vmul.f32 %v6813_v1, %v6618_v26 }
 0x8e9   :  { %v2844_v58 = vsel %vm2780_vm4, %v2678_v49, %v2812_v6  ;;  %v2123_v49 = vmul.f32 %v6812_v14, %v6616_v29  ;;  %v2087_v29 = vmul.f32 1.442695, %v8214_v10 }
 0x8ea   :  { %6348 = vmatprep.mubr.msk.f32.mxu1 %vm499_vm2, %v2844_v58 }
 0x8eb   :  { %6349 = vmatmul.mubr.msk.f32.gmra.mxu1 %vm499_vm2, %v2845_v39  ;;  %v8283_v39 = vadd.f32 %v2212_v33, %v2124_v23 }
 0x8ed   :  { %10348 = vst [vmem:[#allocation89_spill] sm:$0xff] %v8283_v39 }
 0x8ee   :  { %v8271_v63 = vpop.xlane.xlu0 %2363 }
 0x8ef   :  { %10346 = vst [vmem:[#allocation87_spill] sm:$0xff] %v8271_v63  ;;  %v6257_v63 = vpop.f32.mrf.mxu1 }
 0x8f0   :  { %v8290_v14 = vadd.f32 %v6257_v63, %v7822_v16 }
 0x8f1   :  { %v2018_v33 = vpop.f32.mrf.mxu1 }
 0x8f2   :  { %2372 = vadd.xlane.f32.xlu1 %v2371_v28  ;;  %v2210_v6 = vpop.permute.xlu0 %2209  ;;  %v2380_v26 = vsel %vm71_vm1, %v8290_v14, 0.0  ;;  %v2085_v28 = vmul.f32 1.442695, %v8223_v53  ;;  %v8299_v1 = vadd.f32 %v7822_v16, %v2018_v33 }
 0x8f3   :  { %v8281_v58 = vadd.f32 %v2210_v6, %v2123_v49 }
 0x8f4   :  { %6619 = vpow2.f32 %v2085_v28 }
 0x8f5   :  { %10347 = vst [vmem:[#allocation88_spill] sm:$0xff] %v8281_v58  ;;  %6296 = vmatprep.mubr.msk.f32.mxu0 %vm71_vm1, %v8281_v58  ;;  %6621 = vpow2.f32 %v2087_v29  ;;  %v2377_v58 = vsel %vm71_vm1, %v8299_v1, 0.0 }
 0x8f6   :  { %6297 = vmatmul.mubr.msk.f32.gmra.mxu0 %vm71_vm1, %v8283_v39  ;;  %v6814_v39 = vld [vmem:[%s10207_s0 + $0xc0] sm:$0xff] }
 0x901   :  { %v6620_v33 = vpop.eup %6619 }
 0x902   :  { %v6622_v13 = vpop.eup %6621 }
 0x903   :  { %2223 = vrot.lane.b32.xlu1 %v8290_v14, %s6824_s18 }
 0x904   :  { %2381 = vadd.xlane.f32.xlu0 %v2380_v26 }
 0x911   :  { %v8306_v29 = vpop.xlane.xlu1 %2360 }
 0x912   :  { %10349 = vst [vmem:[#allocation90_spill] sm:$0xff] %v8306_v29 }
 0x917   :  { %v6289_v49 = vpop.f32.mrf.mxu0 }
 0x918   :  { %v2693_v63 = vadd.f32 %v6289_v49, %v7992_v51 }
 0x919   :  { %v2687_v23 = vpop.f32.mrf.mxu0 }
 0x91a   :  { %v2688_v6 = vadd.f32 %v7992_v51, %v2687_v23  ;;  %2221 = vrot.lane.b32.xlu0 %v8299_v1, %s6824_s18  ;;  %v2815_v26 = vmul.f32 0.01, %v2693_v63  ;;  %vm2783_vm5 = vcmp.gt.f32.partialorder %v2693_v63, 0.0  ;;  %v2216_v23 = vpop.permute.xlu1 %2215 }
 0x91c   :  { %vm2782_vm6 = vcmp.gt.f32.partialorder %v2688_v6, 0.0  ;;  %v2814_v53 = vmul.f32 0.01, %v2688_v6  ;;  %v2847_v28 = vsel %vm2783_vm5, %v2693_v63, %v2815_v26  ;;  %v6815_v63 = vld [vmem:[%s10207_s0 + $0xc8] sm:$0xff] }
 0x91d   :  { %v2126_v26 = vmul.f32 %v6815_v63, %v6622_v13 }
 0x91e   :  { %v2846_v10 = vsel %vm2782_vm6, %v2688_v6, %v2814_v53  ;;  %v2125_v6 = vmul.f32 %v6814_v39, %v6620_v33  ;;  %v2091_v33 = vmul.f32 1.442695, %v8252_v7 }
 0x91f   :  { %6351 = vmatprep.mubr.msk.f32.mxu1 %vm499_vm2, %v2846_v10 }
 0x920   :  { %6352 = vmatmul.mubr.msk.f32.gmra.mxu1 %vm499_vm2, %v2847_v28  ;;  %v8321_v28 = vadd.f32 %v2216_v23, %v2126_v26 }
 0x922   :  { %10352 = vst [vmem:[#allocation93_spill] sm:$0xff] %v8321_v28 }
 0x923   :  { %v8309_v49 = vpop.xlane.xlu0 %2369 }
 0x924   :  { %10350 = vst [vmem:[#allocation91_spill] sm:$0xff] %v8309_v49  ;;  %v6260_v49 = vpop.f32.mrf.mxu1 }
 0x925   :  { %v8328_v39 = vadd.f32 %v6260_v49, %v7822_v16 }
 0x926   :  { %v2028_v23 = vpop.f32.mrf.mxu1 }
 0x927   :  { %2378 = vadd.xlane.f32.xlu1 %v2377_v58  ;;  %v2214_v53 = vpop.permute.xlu0 %2213  ;;  %v2386_v13 = vsel %vm71_vm1, %v8328_v39, 0.0  ;;  %v2089_v58 = vmul.f32 1.442695, %v8261_v48  ;;  %v8337_v63 = vadd.f32 %v7822_v16, %v2028_v23 }
 0x928   :  { %v8319_v10 = vadd.f32 %v2214_v53, %v2125_v6  ;;  %v6329_v26 = vpop.f32.mrf.mxu1 }
 0x929   :  { %6623 = vpow2.f32 %v2089_v58 }
 0x92a   :  { %10351 = vst [vmem:[#allocation92_spill] sm:$0xff] %v8319_v10  ;;  %6299 = vmatprep.mubr.msk.f32.mxu0 %vm71_vm1, %v8319_v10  ;;  %6625 = vpow2.f32 %v2091_v33  ;;  %v3030_v48 = vpop.f32.mrf.mxu1 }
 0x92b   :  { %6300 = vmatmul.mubr.msk.f32.gmra.mxu0 %vm71_vm1, %v8321_v28 }
 0x92c   :  { %v6332_v33 = vpop.f32.mrf.mxu1 }
 0x92e   :  { %v3040_v10 = vpop.f32.mrf.mxu1 }
 0x92f   :  { %v8370_v20 = vadd.f32 %v8352_v43, %v3040_v10  ;;  %v8384_v10 = vadd.f32 %v6329_v26, %v8352_v43 }
 0x930   :  { %v6335_v45 = vpop.f32.mrf.mxu1 }
 0x931   :  { %v3448_v26 = vsel %vm71_vm1, %v8384_v10, 0.0 }
 0x938   :  { %2227 = vrot.lane.b32.xlu1 %v8328_v39, %s6824_s18 }
 0x939   :  { %2387 = vadd.xlane.f32.xlu0 %v2386_v13 }
 0x946   :  { %v8344_v23 = vpop.xlane.xlu1 %2366 }
 0x947   :  { %10353 = vst [vmem:[#allocation94_spill] sm:$0xff] %v8344_v23 }
 0x94c   :  { %v6292_v6 = vpop.f32.mrf.mxu0 }
 0x94d   :  { %v2703_v49 = vadd.f32 %v6292_v6, %v7992_v51  ;;  %v6624_v6 = vpop.eup %6623 }
 0x94e   :  { %v2697_v53 = vpop.f32.mrf.mxu0  ;;  %v6626_v28 = vpop.eup %6625 }
 0x94f   :  { %v2698_v29 = vadd.f32 %v7992_v51, %v2697_v53  ;;  %2225 = vrot.lane.b32.xlu0 %v8337_v63, %s6824_s18  ;;  %v2817_v13 = vmul.f32 0.01, %v2703_v49  ;;  %vm2785_vm7 = vcmp.gt.f32.partialorder %v2703_v49, 0.0 }
 0x951   :  { %vm2784_vm8 = vcmp.gt.f32.partialorder %v2698_v29, 0.0  ;;  %v2816_v7 = vmul.f32 0.01, %v2698_v29  ;;  %v2849_v16 = vsel %vm2785_vm7, %v2703_v49, %v2817_v13  ;;  %v2383_v49 = vsel %vm71_vm1, %v8337_v63, 0.0  ;;  %v6816_v13 = vld [vmem:[%s10207_s0 + $0xd0] sm:$0xff] }
 0x953   :  { %v2848_v58 = vsel %vm2784_vm8, %v2698_v29, %v2816_v7  ;;  %v8355_v29 = vadd.f32 %v8352_v43, %v3030_v48  ;;  %v2220_v7 = vpop.permute.xlu1 %2219  ;;  %v3050_v48 = vpop.f32.mrf.mxu1 }
 0x954   :  { %6354 = vmatprep.mubr.msk.f32.mxu1 %vm499_vm2, %v2848_v58  ;;  %v2127_v58 = vmul.f32 %v6816_v13, %v6624_v6 }
 0x955   :  { %6355 = vmatmul.mubr.msk.f32.gmra.mxu1 %vm499_vm2, %v2849_v16  ;;  %v6817_v16 = vld [vmem:[%s10207_s0 + $0xd8] sm:$0xff]  ;;  %v3445_v6 = vsel %vm71_vm1, %v8355_v29, 0.0  ;;  %v6338_v13 = vpop.f32.mrf.mxu1 }
 0x958   :  { %v8347_v53 = vpop.xlane.xlu0 %2375 }
 0x959   :  { %10354 = vst [vmem:[#allocation95_spill] sm:$0xff] %v8347_v53  ;;  %v2128_v53 = vmul.f32 %v6817_v16, %v6626_v28  ;;  %v8379_v28 = vadd.f32 %v8352_v43, %v3050_v48  ;;  %v8395_v48 = vadd.f32 %v6332_v33, %v8352_v43 }
 0x95b   :  { %v8367_v46 = vadd.f32 %v2220_v7, %v2128_v53  ;;  %v3060_v53 = vpop.f32.mrf.mxu1 }
 0x95c   :  { %2384 = vadd.xlane.f32.xlu1 %v2383_v49  ;;  %v2218_v23 = vpop.permute.xlu0 %2217  ;;  %v8387_v7 = vadd.f32 %v8352_v43, %v3060_v53  ;;  %v3457_v49 = vsel %vm71_vm1, %v8379_v28, 0.0  ;;  %v8405_v53 = vadd.f32 %v6338_v13, %v8352_v43 }
 0x95d   :  { %v8365_v57 = vadd.f32 %v2218_v23, %v2127_v58  ;;  %10356 = vst [vmem:[#allocation97_spill] sm:$0xff] %v8367_v46  ;;  %v3451_v23 = vsel %vm71_vm1, %v8370_v20, 0.0  ;;  %v3191_v58 = vmul.f32 1.442695, %v8384_v10  ;;  %v6341_v33 = vpop.f32.mrf.mxu1 }
 0x95e   :  { %v3463_v16 = vsel %vm71_vm1, %v8387_v7, 0.0 }
 0x95f   :  { %10355 = vst [vmem:[#allocation96_spill] sm:$0xff] %v8365_v57  ;;  %6302 = vmatprep.mubr.msk.f32.mxu0 %vm71_vm1, %v8365_v57  ;;  %6627 = vpow2.f32 %v3191_v58  ;;  %v3466_v58 = vsel %vm71_vm1, %v8405_v53, 0.0 }
 0x960   :  { %3446 = vadd.xlane.f32.xlu1 %v3445_v6  ;;  %6303 = vmatmul.mubr.msk.f32.gmra.mxu0 %vm71_vm1, %v8367_v46  ;;  %v8400_v6 = vadd.f32 %v6335_v45, %v8352_v43 }
 0x964   :  { %3452 = vadd.xlane.f32.xlu1 %v3451_v23  ;;  %v3454_v23 = vsel %vm71_vm1, %v8395_v48, 0.0 }
 0x968   :  { %3458 = vadd.xlane.f32.xlu1 %v3457_v49  ;;  %v3460_v49 = vsel %vm71_vm1, %v8400_v6, 0.0 }
 0x96c   :  { %3464 = vadd.xlane.f32.xlu1 %v3463_v16  ;;  %v8410_v16 = vadd.f32 %v6341_v33, %v8352_v43  ;;  %v6628_v45 = vpop.eup %6627 }
 0x96e   :  { %3449 = vadd.xlane.f32.xlu0 %v3448_v26  ;;  %v2093_v26 = vmul.f32 1.442695, %v8299_v1  ;;  %v3472_v13 = vsel %vm71_vm1, %v8410_v16, 0.0 }
 0x970   :  { %6629 = vpow2.f32 %v2093_v26 }
 0x972   :  { %3455 = vadd.xlane.f32.xlu0 %v3454_v23  ;;  %v2095_v23 = vmul.f32 1.442695, %v8290_v14  ;;  %v3195_v14 = vmul.f32 1.442695, %v8395_v48 }
 0x974   :  { %6631 = vpow2.f32 %v2095_v23 }
 0x976   :  { %3461 = vadd.xlane.f32.xlu0 %v3460_v49  ;;  %v3189_v49 = vmul.f32 1.442695, %v8355_v29 }
 0x978   :  { %6633 = vpow2.f32 %v3189_v49 }
 0x979   :  { %6635 = vpow2.f32 %v3195_v14 }
 0x97a   :  { %3467 = vadd.xlane.f32.xlu0 %v3466_v58 }
 0x97b   :  { %v8424_v23 = vpop.xlane.xlu1 %2372 }
 0x97c   :  { %10357 = vst [vmem:[#allocation98_spill] sm:$0xff] %v8424_v23 }
 0x97d   :  { %3287 = vrot.lane.b32.xlu1 %v6628_v45, %s6823_s11 }
 0x97e   :  { %3473 = vadd.xlane.f32.xlu0 %v3472_v13  ;;  %v6630_v13 = vpop.eup %6629 }
 0x97f   :  { %v2224_v49 = vpop.permute.xlu1 %2223  ;;  %v2129_v11 = vmul.f32 %v6818_v44, %v6630_v13 }
 0x981   :  { %v6295_v33 = vpop.f32.mrf.mxu0 }
 0x982   :  { %v2713_v57 = vadd.f32 %v6295_v33, %v7992_v51 }
 0x983   :  { %v2707_v46 = vpop.f32.mrf.mxu0 }
 0x984   :  { %v2708_v58 = vadd.f32 %v7992_v51, %v2707_v46  ;;  %v2819_v1 = vmul.f32 0.01, %v2713_v57  ;;  %vm2787_vm9 = vcmp.gt.f32.partialorder %v2713_v57, 0.0  ;;  %v6632_v46 = vpop.eup %6631 }
 0x986   :  { %vm2786_vm10 = vcmp.gt.f32.partialorder %v2708_v58, 0.0  ;;  %v2818_v45 = vmul.f32 0.01, %v2708_v58  ;;  %v2851_v26 = vsel %vm2787_vm9, %v2713_v57, %v2819_v1  ;;  %v6634_v1 = vpop.eup %6633 }
 0x987   :  { %v6636_v44 = vpop.eup %6635 }
 0x988   :  { %v2850_v17 = vsel %vm2786_vm10, %v2708_v58, %v2818_v45 }
 0x989   :  { %6357 = vmatprep.mubr.msk.f32.mxu1 %vm499_vm2, %v2850_v17  ;;  %v6819_v17 = vld [vmem:[%s10207_s0 + $0xe8] sm:$0xff] }
 0x98a   :  { %6358 = vmatmul.mubr.msk.f32.gmra.mxu1 %vm499_vm2, %v2851_v26  ;;  %v2130_v57 = vmul.f32 %v6819_v17, %v6632_v46  ;;  %v3070_v26 = vpop.f32.mrf.mxu1 }
 0x98b   :  { %v8446_v13 = vadd.f32 %v8352_v43, %v3070_v26 }
 0x98c   :  { %v8437_v45 = vadd.f32 %v2224_v49, %v2130_v57  ;;  %v6344_v49 = vpop.f32.mrf.mxu1  ;;  %v2097_v57 = vmul.f32 1.442695, %v8337_v63 }
 0x98d   :  { %v8427_v33 = vpop.xlane.xlu0 %2381  ;;  %v3469_v46 = vsel %vm71_vm1, %v8446_v13, 0.0 }
 0x98e   :  { %10358 = vst [vmem:[#allocation99_spill] sm:$0xff] %v8427_v33  ;;  %10360 = vst [vmem:[#allocation101_spill] sm:$0xff] %v8437_v45 }
 0x991   :  { %v2222_v58 = vpop.permute.xlu0 %2221 }
 0x992   :  { %v8435_v14 = vadd.f32 %v2222_v58, %v2129_v11  ;;  %v3193_v11 = vmul.f32 1.442695, %v8370_v20  ;;  %v2099_v58 = vmul.f32 1.442695, %v8328_v39  ;;  %v3199_v39 = vmul.f32 1.442695, %v8400_v6 }
 0x994   :  { %10359 = vst [vmem:[#allocation100_spill] sm:$0xff] %v8435_v14  ;;  %3285 = vrot.lane.b32.xlu0 %v6634_v1, %s6823_s11  ;;  %6305 = vmatprep.mubr.msk.f32.mxu0 %vm71_vm1, %v8435_v14  ;;  %6637 = vpow2.f32 %v3193_v11  ;;  %v8454_v1 = vadd.f32 %v6344_v49, %v8352_v43  ;;  %v6820_v14 = vld [vmem:[%s10207_s0 + $0xf0] sm:$0xff] }
 0x995   :  { %6306 = vmatmul.mubr.msk.f32.gmra.mxu0 %vm71_vm1, %v8437_v45  ;;  %6639 = vpow2.f32 %v2097_v57 }
 0x996   :  { %6641 = vpow2.f32 %v2099_v58  ;;  %v3478_v26 = vsel %vm71_vm1, %v8454_v1, 0.0  ;;  %v3211_v61 = vmul.f32 1.442695, %v8454_v1 }
 0x997   :  { %6643 = vpow2.f32 %v3199_v39 }
 0x998   :  { %3291 = vrot.lane.b32.xlu0 %v6636_v44, %s6823_s11 }
 0x9a1   :  { %3470 = vadd.xlane.f32.xlu1 %v3469_v46  ;;  %v6638_v17 = vpop.eup %6637 }
 0x9a2   :  { %v6640_v58 = vpop.eup %6639 }
 0x9a3   :  { %v2131_v45 = vmul.f32 %v6820_v14, %v6640_v58  ;;  %v3080_v14 = vpop.f32.mrf.mxu1  ;;  %v3197_v58 = vmul.f32 1.442695, %v8379_v28 }
 0x9a5   :  { %6645 = vpow2.f32 %v3197_v58  ;;  %v3203_v58 = vmul.f32 1.442695, %v8405_v53 }
 0x9a7   :  { %6647 = vpow2.f32 %v3203_v58  ;;  %v6822_v58 = vld [vmem:[%s10209_s2 + $0x2] ss:$0 sm:$0xff] }
 0x9b0   :  { %v8463_v57 = vpop.xlane.xlu1 %2378 }
 0x9b1   :  { %10361 = vst [vmem:[#allocation102_spill] sm:$0xff] %v8463_v57 }
 0x9b2   :  { %3289 = vrot.lane.b32.xlu1 %v6638_v17, %s6823_s11 }
 0x9b6   :  { %v6298_v44 = vpop.f32.mrf.mxu0 }
 0x9b7   :  { %v2723_v46 = vadd.f32 %v6298_v44, %v7992_v51  ;;  %3479 = vadd.xlane.f32.xlu0 %v3478_v26  ;;  %v6642_v26 = vpop.eup %6641 }
 0x9b8   :  { %v2717_v11 = vpop.f32.mrf.mxu0 }
 0x9b9   :  { %v2718_v33 = vadd.f32 %v7992_v51, %v2717_v11  ;;  %v2821_v63 = vmul.f32 0.01, %v2723_v46  ;;  %vm2789_vm11 = vcmp.gt.f32.partialorder %v2723_v46, 0.0  ;;  %v2228_v11 = vpop.permute.xlu1 %2227 }
 0x9bb   :  { %vm2788_vm12 = vcmp.gt.f32.partialorder %v2718_v33, 0.0  ;;  %v2820_v49 = vmul.f32 0.01, %v2718_v33  ;;  %v2853_v17 = vsel %vm2789_vm11, %v2723_v46, %v2821_v63 }
 0x9bd   :  { %v2852_v23 = vsel %vm2788_vm12, %v2718_v33, %v2820_v49  ;;  %v6644_v49 = vpop.eup %6643 }
 0x9be   :  { %6360 = vmatprep.mubr.msk.f32.mxu1 %vm499_vm2, %v2852_v23  ;;  %v6821_v23 = vld [vmem:[%s10207_s0 + $0xf8] sm:$0xff] }
 0x9bf   :  { %6361 = vmatmul.mubr.msk.f32.gmra.mxu1 %vm499_vm2, %v2853_v17  ;;  %v2132_v33 = vmul.f32 %v6821_v23, %v6642_v26  ;;  %v8484_v17 = vadd.f32 %v8352_v43, %v3080_v14  ;;  %v6347_v26 = vpop.f32.mrf.mxu1 }
 0x9c0   :  { %v8490_v23 = vadd.f32 %v6347_v26, %v8352_v43 }
 0x9c1   :  { %v8476_v39 = vadd.f32 %v2228_v11, %v2132_v33  ;;  %v6646_v11 = vpop.eup %6645 }
 0x9c2   :  { %v8466_v44 = vpop.xlane.xlu0 %2387  ;;  %v3215_v54 = vmul.f32 1.442695, %v8490_v23 }
 0x9c3   :  { %10362 = vst [vmem:[#allocation103_spill] sm:$0xff] %v8466_v44  ;;  %10364 = vst [vmem:[#allocation105_spill] sm:$0xff] %v8476_v39 }
 0x9c6   :  { %v2226_v46 = vpop.permute.xlu0 %2225 }
 0x9c7   :  { %v8474_v63 = vadd.f32 %v2226_v46, %v2131_v45  ;;  %v3475_v45 = vsel %vm71_vm1, %v8484_v17, 0.0  ;;  %v3484_v46 = vsel %vm71_vm1, %v8490_v23, 0.0 }
 0x9c9   :  { %10363 = vst [vmem:[#allocation104_spill] sm:$0xff] %v8474_v63  ;;  %6308 = vmatprep.mubr.msk.f32.mxu0 %vm71_vm1, %v8474_v63  ;;  %v6648_v63 = vpop.eup %6647 }
 0x9ca   :  { %6309 = vmatmul.mubr.msk.f32.gmra.mxu0 %vm71_vm1, %v8476_v39 }
 0x9cd   :  { %3295 = vrot.lane.b32.xlu0 %v6644_v49, %s6823_s11 }
 0x9d6   :  { %3476 = vadd.xlane.f32.xlu1 %v3475_v45 }
 0x9e5   :  { %v8630_v30 = vpop.xlane.xlu1 %2384 }
 0x9e6   :  { %10372 = vst [vmem:[#allocation113_spill] sm:$0xff] %v8630_v30 }
 0x9e7   :  { %3293 = vrot.lane.b32.xlu1 %v6646_v11, %s6823_s11 }
 0x9eb   :  { %v6301_v33 = vpop.f32.mrf.mxu0 }
 0x9ec   :  { %v2733_v49 = vadd.f32 %v6301_v33, %v7992_v51  ;;  %3485 = vadd.xlane.f32.xlu0 %v3484_v46  ;;  %v3090_v33 = vpop.f32.mrf.mxu1 }
 0x9ed   :  { %v2727_v14 = vpop.f32.mrf.mxu0  ;;  %v8502_v46 = vadd.f32 %v8352_v43, %v3090_v33 }
 0x9ee   :  { %v2728_v44 = vadd.f32 %v7992_v51, %v2727_v14  ;;  %v2823_v57 = vmul.f32 0.01, %v2733_v49  ;;  %vm2791_vm13 = vcmp.gt.f32.partialorder %v2733_v49, 0.0  ;;  %v3201_v51 = vmul.f32 1.442695, %v8387_v7 }
 0x9ef   :  { %v3481_v14 = vsel %vm71_vm1, %v8502_v46, 0.0 }
 0x9f0   :  { %vm2790_vm14 = vcmp.gt.f32.partialorder %v2728_v44, 0.0  ;;  %v2822_v45 = vmul.f32 0.01, %v2728_v44  ;;  %v2855_v11 = vsel %vm2791_vm13, %v2733_v49, %v2823_v57  ;;  %6649 = vpow2.f32 %v3201_v51 }
 0x9f2   :  { %v2854_v26 = vsel %vm2790_vm14, %v2728_v44, %v2822_v45  ;;  %v6350_v44 = vpop.f32.mrf.mxu1 }
 0x9f3   :  { %6363 = vmatprep.mubr.msk.f32.mxu1 %vm499_vm2, %v2854_v26  ;;  %v8508_v57 = vadd.f32 %v6350_v44, %v8352_v43 }
 0x9f4   :  { %6364 = vmatmul.mubr.msk.f32.gmra.mxu1 %vm499_vm2, %v2855_v11 }
 0x9fd   :  { %v6650_v45 = vpop.eup %6649 }
 0xa02   :  { %3299 = vrot.lane.b32.xlu0 %v6648_v63, %s6823_s11  ;;  %v3490_v63 = vsel %vm71_vm1, %v8508_v57, 0.0 }
 0xa0b   :  { %3482 = vadd.xlane.f32.xlu1 %v3481_v14  ;;  %v3207_v14 = vmul.f32 1.442695, %v8410_v16 }
 0xa0d   :  { %6651 = vpow2.f32 %v3207_v14 }
 0xa1a   :  { %v6652_v15 = vpop.eup %6651 }
 0xa1c   :  { %3297 = vrot.lane.b32.xlu1 %v6650_v45, %s6823_s11 }
 0xa20   :  { %v6304_v49 = vpop.f32.mrf.mxu0 }
 0xa21   :  { %v2743_v26 = vadd.f32 %v6822_v58, %v6304_v49  ;;  %3491 = vadd.xlane.f32.xlu0 %v3490_v63  ;;  %v3100_v49 = vpop.f32.mrf.mxu1 }
 0xa22   :  { %v2737_v11 = vpop.f32.mrf.mxu0  ;;  %v8521_v63 = vadd.f32 %v8352_v43, %v3100_v49 }
 0xa23   :  { %v2738_v33 = vadd.f32 %v6822_v58, %v2737_v11  ;;  %v2825_v51 = vmul.f32 0.01, %v2743_v26  ;;  %vm2793_vm15 = vcmp.gt.f32.partialorder %v2743_v26, 0.0  ;;  %v3205_v11 = vmul.f32 1.442695, %v8446_v13 }
 0xa24   :  { %v3487_v31 = vsel %vm71_vm1, %v8521_v63, 0.0 }
 0xa25   :  { %vm2792_vm3 = vcmp.gt.f32.partialorder %v2738_v33, 0.0  ;;  %v2824_v44 = vmul.f32 0.01, %v2738_v33  ;;  %v2857_v45 = vsel %vm2793_vm15, %v2743_v26, %v2825_v51  ;;  %6653 = vpow2.f32 %v3205_v11 }
 0xa26   :  { %6655 = vpow2.f32 %v3211_v61 }
 0xa27   :  { %v2856_v39 = vsel %vm2792_vm3, %v2738_v33, %v2824_v44  ;;  %v6353_v33 = vpop.f32.mrf.mxu1 }
 0xa28   :  { %6366 = vmatprep.mubr.msk.f32.mxu1 %vm499_vm2, %v2856_v39  ;;  %v8527_v26 = vadd.f32 %v6353_v33, %v8352_v43 }
 0xa29   :  { %6367 = vmatmul.mubr.msk.f32.gmra.mxu1 %vm499_vm2, %v2857_v45 }
 0xa32   :  { %v6654_v39 = vpop.eup %6653 }
 0xa37   :  { %3303 = vrot.lane.b32.xlu0 %v6652_v15, %s6823_s11  ;;  %v3496_v15 = vsel %vm71_vm1, %v8527_v26, 0.0 }
 0xa40   :  { %3488 = vadd.xlane.f32.xlu1 %v3487_v31 }
 0xa51   :  { %3301 = vrot.lane.b32.xlu1 %v6654_v39, %s6823_s11  ;;  %v6656_v39 = vpop.eup %6655 }
 0xa55   :  { %v6307_v51 = vpop.f32.mrf.mxu0 }
 0xa56   :  { %v2753_v14 = vadd.f32 %v6822_v58, %v6307_v51  ;;  %3497 = vadd.xlane.f32.xlu0 %v3496_v15  ;;  %v3110_v51 = vpop.f32.mrf.mxu1 }
 0xa57   :  { %v2747_v44 = vpop.f32.mrf.mxu0  ;;  %v8537_v15 = vadd.f32 %v8352_v43, %v3110_v51 }
 0xa58   :  { %v2748_v45 = vadd.f32 %v6822_v58, %v2747_v44  ;;  %v2827_v49 = vmul.f32 0.01, %v2753_v14  ;;  %vm2795_vm4 = vcmp.gt.f32.partialorder %v2753_v14, 0.0  ;;  %v3209_v44 = vmul.f32 1.442695, %v8484_v17 }
 0xa59   :  { %v3493_v41 = vsel %vm71_vm1, %v8537_v15, 0.0 }
 0xa5a   :  { %vm2794_vm5 = vcmp.gt.f32.partialorder %v2748_v45, 0.0  ;;  %v2826_v31 = vmul.f32 0.01, %v2748_v45  ;;  %v2859_v33 = vsel %vm2795_vm4, %v2753_v14, %v2827_v49  ;;  %6657 = vpow2.f32 %v3209_v44 }
 0xa5b   :  { %6659 = vpow2.f32 %v3215_v54 }
 0xa5c   :  { %v2858_v11 = vsel %vm2794_vm5, %v2748_v45, %v2826_v31  ;;  %v6356_v45 = vpop.f32.mrf.mxu1 }
 0xa5d   :  { %6369 = vmatprep.mubr.msk.f32.mxu1 %vm499_vm2, %v2858_v11  ;;  %v8543_v61 = vadd.f32 %v6356_v45, %v8352_v43 }
 0xa5e   :  { %6370 = vmatmul.mubr.msk.f32.gmra.mxu1 %vm499_vm2, %v2859_v33 }
 0xa5f   :  { %v3502_v49 = vsel %vm71_vm1, %v8543_v61, 0.0 }
 0xa67   :  { %v6658_v31 = vpop.eup %6657 }
 0xa6c   :  { %3307 = vrot.lane.b32.xlu0 %v6656_v39, %s6823_s11 }
 0xa75   :  { %3494 = vadd.xlane.f32.xlu1 %v3493_v41 }
 0xa86   :  { %3305 = vrot.lane.b32.xlu1 %v6658_v31, %s6823_s11  ;;  %v6660_v31 = vpop.eup %6659 }
 0xa8a   :  { %v6310_v14 = vpop.f32.mrf.mxu0 }
 0xa8b   :  { %v2763_v11 = vadd.f32 %v6822_v58, %v6310_v14  ;;  %3503 = vadd.xlane.f32.xlu0 %v3502_v49  ;;  %v3120_v14 = vpop.f32.mrf.mxu1 }
 0xa8c   :  { %v2757_v33 = vpop.f32.mrf.mxu0  ;;  %v8553_v49 = vadd.f32 %v8352_v43, %v3120_v14  ;;  %v3217_v14 = vmul.f32 1.442695, %v8521_v63 }
 0xa8d   :  { %v2758_v39 = vadd.f32 %v6822_v58, %v2757_v33  ;;  %v2829_v51 = vmul.f32 0.01, %v2763_v11  ;;  %vm2797_vm6 = vcmp.gt.f32.partialorder %v2763_v11, 0.0  ;;  %v3213_v58 = vmul.f32 1.442695, %v8502_v46 }
 0xa8e   :  { %v3499_v33 = vsel %vm71_vm1, %v8553_v49, 0.0 }
 0xa8f   :  { %vm2796_vm7 = vcmp.gt.f32.partialorder %v2758_v39, 0.0  ;;  %v2828_v41 = vmul.f32 0.01, %v2758_v39  ;;  %v2861_v45 = vsel %vm2797_vm6, %v2763_v11, %v2829_v51  ;;  %6661 = vpow2.f32 %v3213_v58 }
 0xa90   :  { %v3219_v51 = vmul.f32 1.442695, %v8508_v57 }
 0xa91   :  { %v2860_v44 = vsel %vm2796_vm7, %v2758_v39, %v2828_v41  ;;  %v6359_v39 = vpop.f32.mrf.mxu1 }
 0xa92   :  { %6372 = vmatprep.mubr.msk.f32.mxu1 %vm499_vm2, %v2860_v44  ;;  %v8559_v54 = vadd.f32 %v6359_v39, %v8352_v43  ;;  %6663 = vpow2.f32 %v3219_v51  ;;  %v3223_v51 = vmul.f32 1.442695, %v8527_v26 }
 0xa93   :  { %6373 = vmatmul.mubr.msk.f32.gmra.mxu1 %vm499_vm2, %v2861_v45  ;;  %v3130_v45 = vpop.f32.mrf.mxu1  ;;  %6665 = vpow2.f32 %v3217_v14 }
 0xa94   :  { %v3508_v11 = vsel %vm71_vm1, %v8559_v54, 0.0  ;;  %6667 = vpow2.f32 %v3223_v51 }
 0xa9c   :  { %v6662_v41 = vpop.eup %6661 }
 0xa9f   :  { %v6664_v44 = vpop.eup %6663 }
 0xaa0   :  { %v6666_v39 = vpop.eup %6665 }
 0xaa1   :  { %3311 = vrot.lane.b32.xlu0 %v6660_v31, %s6823_s11  ;;  %v8567_v31 = vadd.f32 %v8352_v43, %v3130_v45 }
 0xaa3   :  { %10365 = vst [vmem:[#allocation106_spill] sm:$0xff] %v8567_v31  ;;  %v3505_v58 = vsel %vm71_vm1, %v8567_v31, 0.0 }
 0xaaa   :  { %3500 = vadd.xlane.f32.xlu1 %v3499_v33  ;;  %v6362_v33 = vpop.f32.mrf.mxu1 }
 0xaac   :  { %v3140_v45 = vpop.f32.mrf.mxu1 }
 0xaad   :  { %v8581_v14 = vadd.f32 %v8352_v43, %v3140_v45 }
 0xaaf   :  { %10367 = vst [vmem:[#allocation108_spill] sm:$0xff] %v8581_v14 }
 0xabb   :  { %3309 = vrot.lane.b32.xlu1 %v6662_v41, %s6823_s11  ;;  %v8573_v41 = vadd.f32 %v6362_v33, %v8352_v43  ;;  %v3511_v33 = vsel %vm71_vm1, %v8581_v14, 0.0 }
 0xabd   :  { %10366 = vst [vmem:[#allocation107_spill] sm:$0xff] %v8573_v41 }
 0xac0   :  { %3509 = vadd.xlane.f32.xlu0 %v3508_v11  ;;  %v3514_v11 = vsel %vm71_vm1, %v8573_v41, 0.0 }
 0xad6   :  { %3315 = vrot.lane.b32.xlu0 %v6664_v44, %s6823_s11  ;;  %v6668_v44 = vpop.eup %6667 }
 0xadf   :  { %3506 = vadd.xlane.f32.xlu1 %v3505_v58  ;;  %v3221_v58 = vmul.f32 1.442695, %v8537_v15 }
 0xae1   :  { %6669 = vpow2.f32 %v3221_v58 }
 0xaee   :  { %v6670_v5 = vpop.eup %6669 }
 0xaf0   :  { %3313 = vrot.lane.b32.xlu1 %v6666_v39, %s6823_s11  ;;  %v6365_v39 = vpop.f32.mrf.mxu1 }
 0xaf2   :  { %v3150_v8 = vpop.f32.mrf.mxu1 }
 0xaf3   :  { %v8595_v58 = vadd.f32 %v8352_v43, %v3150_v8  ;;  %v3231_v8 = vmul.f32 1.442695, %v8559_v54 }
 0xaf5   :  { %3515 = vadd.xlane.f32.xlu0 %v3514_v11  ;;  %v8587_v11 = vadd.f32 %v6365_v39, %v8352_v43  ;;  %v3517_v39 = vsel %vm71_vm1, %v8595_v58, 0.0 }
 0xaf7   :  { %10368 = vst [vmem:[#allocation109_spill] sm:$0xff] %v8587_v11  ;;  %v3520_v51 = vsel %vm71_vm1, %v8587_v11, 0.0 }
 0xb0b   :  { %3319 = vrot.lane.b32.xlu0 %v6668_v44, %s6823_s11  ;;  %v3227_v44 = vmul.f32 1.442695, %v8543_v61 }
 0xb0d   :  { %6671 = vpow2.f32 %v3227_v44 }
 0xb14   :  { %3512 = vadd.xlane.f32.xlu1 %v3511_v33  ;;  %v3225_v33 = vmul.f32 1.442695, %v8553_v49 }
 0xb16   :  { %6673 = vpow2.f32 %v3225_v33 }
 0xb17   :  { %6675 = vpow2.f32 %v3231_v8 }
 0xb1a   :  { %v6672_v45 = vpop.eup %6671 }
 0xb23   :  { %v6674_v62 = vpop.eup %6673 }
 0xb25   :  { %3317 = vrot.lane.b32.xlu1 %v6670_v5, %s6823_s11  ;;  %v6368_v5 = vpop.f32.mrf.mxu1 }
 0xb27   :  { %v3160_v4 = vpop.f32.mrf.mxu1 }
 0xb28   :  { %v8609_v33 = vadd.f32 %v8352_v43, %v3160_v4  ;;  %v3235_v4 = vmul.f32 1.442695, %v8573_v41 }
 0xb2a   :  { %3521 = vadd.xlane.f32.xlu0 %v3520_v51  ;;  %v8601_v51 = vadd.f32 %v6368_v5, %v8352_v43  ;;  %v3523_v5 = vsel %vm71_vm1, %v8609_v33, 0.0 }
 0xb2c   :  { %10369 = vst [vmem:[#allocation110_spill] sm:$0xff] %v8601_v51  ;;  %v3526_v44 = vsel %vm71_vm1, %v8601_v51, 0.0 }
 0xb40   :  { %3323 = vrot.lane.b32.xlu0 %v6672_v45, %s6823_s11  ;;  %v6676_v45 = vpop.eup %6675 }
 0xb49   :  { %3518 = vadd.xlane.f32.xlu1 %v3517_v39  ;;  %v3229_v39 = vmul.f32 1.442695, %v8567_v31 }
 0xb4b   :  { %6677 = vpow2.f32 %v3229_v39 }
 0xb4c   :  { %6679 = vpow2.f32 %v3235_v4  ;;  %v8634_v4 = vpop.xlane.xlu1 %3446 }
 0xb4d   :  { %10374 = vst [vmem:[#allocation115_spill] sm:$0xff] %v8634_v4 }
 0xb50   :  { %v8638_v40 = vpop.xlane.xlu1 %3452 }
 0xb51   :  { %10376 = vst [vmem:[#allocation117_spill] sm:$0xff] %v8638_v40 }
 0xb54   :  { %v8646_v30 = vpop.xlane.xlu1 %3458 }
 0xb55   :  { %10379 = vst [vmem:[#allocation120_spill] sm:$0xff] %v8646_v30  ;;  %v3243_v30 = vmul.f32 1.442695, %v8601_v51  ;;  %v3237_v51 = vmul.f32 1.442695, %v8595_v58 }
 0xb58   :  { %v6678_v56 = vpop.eup %6677 }
 0xb5a   :  { %3321 = vrot.lane.b32.xlu1 %v6674_v62, %s6823_s11  ;;  %v6371_v62 = vpop.f32.mrf.mxu1 }
 0xb5c   :  { %v3170_v42 = vpop.f32.mrf.mxu1 }
 0xb5d   :  { %v8625_v39 = vadd.f32 %v8352_v43, %v3170_v42 }
 0xb5e   :  { %v6374_v42 = vpop.f32.mrf.mxu1 }
 0xb5f   :  { %3527 = vadd.xlane.f32.xlu0 %v3526_v44  ;;  %v8615_v44 = vadd.f32 %v6371_v62, %v8352_v43  ;;  %v3233_v62 = vmul.f32 1.442695, %v8581_v14  ;;  %v8643_v14 = vadd.f32 %v6374_v42, %v8352_v43  ;;  %v8657_v42 = vpop.xlane.xlu1 %3464 }
 0xb60   :  { %10381 = vst [vmem:[#allocation122_spill] sm:$0xff] %v8657_v42 }
 0xb61   :  { %10370 = vst [vmem:[#allocation111_spill] sm:$0xff] %v8615_v44  ;;  %v3532_v8 = vsel %vm71_vm1, %v8615_v44, 0.0  ;;  %6681 = vpow2.f32 %v3233_v62  ;;  %10378 = vst [vmem:[#allocation119_spill] sm:$0xff] %v8643_v14  ;;  %v5631_v62 = vld [vmem:[%s10206_s1 + $0xc] sm:$0xf] }
 0xb62   :  { %6375 = vmatprep.subr.msk.mxu0 %vm168_vm0, %v5631_v62 }
 0xb63   :  { %6376 = vmatpush3.msk.msra.mxu0 %vm168_vm0, %v5631_v62  ;;  %v3247_v62 = vmul.f32 1.442695, %v8615_v44 }
 0xb75   :  { %3327 = vrot.lane.b32.xlu0 %v6676_v45, %s6823_s11  ;;  %v6680_v45 = vpop.eup %6679 }
 0xb76   :  { %v6682_v2 = vpop.eup %6681 }
 0xb7e   :  { %3524 = vadd.xlane.f32.xlu1 %v3523_v5  ;;  %v8622_v5 = vpop.xlane.xlu0 %3449 }
 0xb7f   :  { %10371 = vst [vmem:[#allocation112_spill] sm:$0xff] %v8622_v5 }
 0xb8f   :  { %3325 = vrot.lane.b32.xlu1 %v6678_v56, %s6823_s11  ;;  %v3529_v56 = vsel %vm71_vm1, %v8625_v39, 0.0 }
 0xb94   :  { %3533 = vadd.xlane.f32.xlu0 %v3532_v8  ;;  %v8632_v8 = vpop.xlane.xlu0 %3455 }
 0xb95   :  { %10373 = vst [vmem:[#allocation114_spill] sm:$0xff] %v8632_v8  ;;  %v3288_v8 = vpop.permute.xlu1 %3287 }
 0xbaa   :  { %3331 = vrot.lane.b32.xlu0 %v6680_v45, %s6823_s11  ;;  %v8636_v45 = vpop.xlane.xlu0 %3461 }
 0xbab   :  { %10375 = vst [vmem:[#allocation116_spill] sm:$0xff] %v8636_v45 }
 0xbae   :  { %v8640_v5 = vpop.xlane.xlu0 %3467 }
 0xbaf   :  { %10377 = vst [vmem:[#allocation118_spill] sm:$0xff] %v8640_v5  ;;  %v3538_v5 = vsel %vm71_vm1, %v8643_v14, 0.0 }
 0xbb3   :  { %3530 = vadd.xlane.f32.xlu1 %v3529_v56  ;;  %v8651_v56 = vpop.xlane.xlu0 %3473 }
 0xbb4   :  { %10380 = vst [vmem:[#allocation121_spill] sm:$0xff] %v8651_v56  ;;  %v8663_v56 = vpop.xlane.xlu1 %3470 }
 0xbb5   :  { %10382 = vst [vmem:[#allocation123_spill] sm:$0xff] %v8663_v56  ;;  %v3180_v56 = vpop.f32.mrf.mxu1 }
 0xbb6   :  { %v8677_v44 = vadd.f32 %v8352_v43, %v3180_v56  ;;  %v3241_v56 = vmul.f32 1.442695, %v8609_v33 }
 0xbb7   :  { %v8659_v45 = vpop.permute.xlu0 %3285 }
 0xbb8   :  { %v8669_v42 = vpop.permute.xlu1 %3289 }
 0xbbb   :  { %v3292_v40 = vpop.permute.xlu0 %3291 }
 0xbbc   :  { %v8671_v31 = vpop.xlane.xlu1 %3476 }
 0xbbd   :  { %10384 = vst [vmem:[#allocation125_spill] sm:$0xff] %v8671_v31 }
 0xbbf   :  { %v8666_v4 = vpop.xlane.xlu0 %3479 }
 0xbc0   :  { %10383 = vst [vmem:[#allocation124_spill] sm:$0xff] %v8666_v4  ;;  %v3294_v4 = vpop.permute.xlu1 %3293 }
 0xbc3   :  { %v3296_v41 = vpop.permute.xlu0 %3295 }
 0xbc4   :  { %3329 = vrot.lane.b32.xlu1 %v6682_v2, %s6823_s11  ;;  %v3239_v2 = vmul.f32 1.442695, %v8587_v11  ;;  %v8685_v31 = vpop.xlane.xlu1 %3482 }
 0xbc5   :  { %10386 = vst [vmem:[#allocation127_spill] sm:$0xff] %v8685_v31 }
 0xbc6   :  { %6683 = vpow2.f32 %v3239_v2 }
 0xbc7   :  { %6685 = vpow2.f32 %v3243_v30  ;;  %v8674_v2 = vpop.xlane.xlu0 %3485 }
 0xbc8   :  { %6687 = vpow2.f32 %v3247_v62  ;;  %10385 = vst [vmem:[#allocation126_spill] sm:$0xff] %v8674_v2 }
 0xbc9   :  { %3539 = vadd.xlane.f32.xlu0 %v3538_v5  ;;  %v3251_v5 = vmul.f32 1.442695, %v8643_v14 }
 0xbcb   :  { %6689 = vpow2.f32 %v3251_v5  ;;  %v3300_v14 = vpop.permute.xlu0 %3299  ;;  %v3535_v5 = vsel %vm71_vm1, %v8677_v44, 0.0 }
 0xbcc   :  { %6691 = vpow2.f32 %v3237_v51 }
 0xbcd   :  { %6693 = vpow2.f32 %v3241_v56  ;;  %v3386_v56 = vmul.f32 %v3296_v41, %v7428_v55 }
 0xbcf   :  { %v8687_v43 = vpop.xlane.xlu0 %3491 }
 0xbd0   :  { %10387 = vst [vmem:[#allocation128_spill] sm:$0xff] %v8687_v43  ;;  %v3249_v43 = vmul.f32 1.442695, %v8677_v44 }
 0xbd3   :  { %v6684_v11 = vpop.eup %6683 }
 0xbd4   :  { %v6686_v30 = vpop.eup %6685 }
 0xbd5   :  { %v6688_v62 = vpop.eup %6687 }
 0xbd8   :  { %v6690_v2 = vpop.eup %6689 }
 0xbdf   :  { %3335 = vrot.lane.b32.xlu0 %v6684_v11, %s6823_s11  ;;  %v3382_v11 = vmul.f32 %v3288_v8, %v7389_v18  ;;  %v3298_v18 = vpop.permute.xlu1 %3297  ;;  %v3304_v8 = vpop.permute.xlu0 %3303 }
 0xbe3   :  { %3339 = vrot.lane.b32.xlu0 %v6686_v30, %s6823_s11  ;;  %v8692_v30 = vadd.f32 %v3382_v11, %v8384_v10  ;;  %v8702_v10 = vpop.xlane.xlu1 %3488 }
 0xbe4   :  { %10388 = vst [vmem:[#allocation129_spill] sm:$0xff] %v8702_v10 }
 0xbe5   :  { %v4983_v51 = vmul.f32 %v8692_v30, %v8692_v30 }
 0xbe7   :  { %3343 = vrot.lane.b32.xlu0 %v6688_v62, %s6823_s11  ;;  %v3245_v62 = vmul.f32 1.442695, %v8625_v39 }
 0xbe8   :  { %3536 = vadd.xlane.f32.xlu1 %v3535_v5  ;;  %v3384_v5 = vmul.f32 %v3292_v40, %v7409_v37  ;;  %v6692_v37 = vpop.eup %6691  ;;  %v8713_v40 = vadd.f32 %v3386_v56, %v8400_v6 }
 0xbe9   :  { %6695 = vpow2.f32 %v3245_v62  ;;  %v3385_v62 = vmul.f32 %v3294_v4, %v7479_v35  ;;  %v6694_v55 = vpop.eup %6693  ;;  %v3390_v4 = vmul.f32 %v3304_v8, %v7472_v34 }
 0xbea   :  { %v8707_v11 = vadd.f32 %v3384_v5, %v8395_v48  ;;  %6697 = vpow2.f32 %v3249_v43 }
 0xbeb   :  { %3347 = vrot.lane.b32.xlu0 %v6690_v2, %s6823_s11  ;;  %v8704_v2 = vpop.xlane.xlu0 %3497  ;;  %v8721_v48 = vadd.f32 %v3385_v62, %v8379_v28 }
 0xbec   :  { %10389 = vst [vmem:[#allocation130_spill] sm:$0xff] %v8704_v2  ;;  %v3302_v2 = vpop.permute.xlu1 %3301 }
 0xbed   :  { %v4986_v28 = vmul.f32 %v8721_v48, %v8721_v48 }
 0xbef   :  { %3628 = vrot.lane.b32.xlu0 %v8692_v30, %s6824_s18  ;;  %v3308_v10 = vpop.permute.xlu0 %3307 }
 0xbf0   :  { %v8727_v6 = vpop.xlane.xlu1 %3494 }
 0xbf1   :  { %10390 = vst [vmem:[#allocation131_spill] sm:$0xff] %v8727_v6 }
 0xbf3   :  { %5048 = vrot.lane.b32.xlu0 %v4983_v51, %s6824_s18  ;;  %v3388_v51 = vmul.f32 %v3300_v14, %v7449_v59  ;;  %v8729_v35 = vpop.xlane.xlu0 %3503  ;;  %v3387_v14 = vmul.f32 %v3298_v18, %v7499_v0  ;;  %v8745_v0 = vadd.f32 %v3390_v4, %v8410_v16  ;;  %v3389_v18 = vmul.f32 %v3302_v2, %v7518_v9 }
 0xbf4   :  { %10391 = vst [vmem:[#allocation132_spill] sm:$0xff] %v8729_v35  ;;  %v3306_v5 = vpop.permute.xlu1 %3305 }
 0xbf5   :  { %v8724_v41 = vadd.f32 %v3388_v51, %v8405_v53  ;;  %v3381_v53 = vmul.f32 %v8659_v45, %v7442_v32  ;;  %v8769_v62 = vadd.f32 %v3389_v18, %v8446_v13 }
 0xbf6   :  { %v6696_v59 = vpop.eup %6695 }
 0xbf7   :  { %3632 = vrot.lane.b32.xlu0 %v8707_v11, %s6824_s18  ;;  %v6698_v43 = vpop.eup %6697  ;;  %v3312_v56 = vpop.permute.xlu0 %3311  ;;  %v8749_v34 = vadd.f32 %v3381_v53, %v8355_v29  ;;  %v3383_v29 = vmul.f32 %v8669_v42, %v7458_v47  ;;  %v3391_v47 = vmul.f32 %v3306_v5, %v7537_v36  ;;  %v4990_v13 = vmul.f32 %v8769_v62, %v8769_v62 }
 0xbf8   :  { %v8753_v32 = vpop.xlane.xlu1 %3500  ;;  %v3394_v42 = vmul.f32 %v3312_v56, %v7512_v19 }
 0xbf9   :  { %3333 = vrot.lane.b32.xlu1 %v6692_v37, %s6823_s11  ;;  %v8742_v37 = vadd.f32 %v3387_v14, %v8387_v7  ;;  %10392 = vst [vmem:[#allocation133_spill] sm:$0xff] %v8753_v32  ;;  %v3392_v7 = vmul.f32 %v3308_v10, %v7492_v12  ;;  %v4982_v8 = vmul.f32 %v8749_v34, %v8749_v34 }
 0xbfa   :  { %v8776_v2 = vadd.f32 %v3383_v29, %v8370_v20  ;;  %v4985_v20 = vmul.f32 %v8707_v11, %v8707_v11  ;;  %v8797_v19 = vadd.f32 %v3394_v42, %v8490_v23  ;;  %v4989_v29 = vmul.f32 %v8724_v41, %v8724_v41 }
 0xbfb   :  { %3636 = vrot.lane.b32.xlu0 %v8713_v40, %s6824_s18  ;;  %v8755_v45 = vpop.xlane.xlu0 %3509  ;;  %v4988_v16 = vmul.f32 %v8742_v37, %v8742_v37  ;;  %v8772_v9 = vadd.f32 %v3392_v7, %v8454_v1 }
 0xbfc   :  { %10393 = vst [vmem:[#allocation134_spill] sm:$0xff] %v8755_v45  ;;  %v3310_v12 = vpop.permute.xlu1 %3309  ;;  %v4984_v36 = vmul.f32 %v8776_v2, %v8776_v2 }
 0xbfd   :  { %3337 = vrot.lane.b32.xlu1 %v6694_v55, %s6823_s11  ;;  %v8794_v55 = vadd.f32 %v3391_v47, %v8484_v17  ;;  %v3393_v4 = vmul.f32 %v3310_v12, %v7555_v50 }
 0xbff   :  { %3640 = vrot.lane.b32.xlu0 %v8724_v41, %s6824_s18  ;;  %v3316_v10 = vpop.permute.xlu0 %3315  ;;  %v4992_v17 = vmul.f32 %v8794_v55, %v8794_v55 }
 0xc00   :  { %v8786_v1 = vpop.xlane.xlu1 %3506 }
 0xc01   :  { %3341 = vrot.lane.b32.xlu1 %v6696_v59, %s6823_s11  ;;  %10394 = vst [vmem:[#allocation135_spill] sm:$0xff] %v8786_v1 }
 0xc03   :  { %5054 = vrot.lane.b32.xlu0 %v4986_v28, %s6824_s18  ;;  %v8788_v51 = vpop.xlane.xlu0 %3515  ;;  %v3396_v28 = vmul.f32 %v3316_v10, %v7531_v27  ;;  %v4987_v27 = vmul.f32 %v8713_v40, %v8713_v40 }
 0xc04   :  { %10395 = vst [vmem:[#allocation136_spill] sm:$0xff] %v8788_v51  ;;  %v3314_v59 = vpop.permute.xlu1 %3313 }
 0xc05   :  { %3345 = vrot.lane.b32.xlu1 %v6698_v43, %s6823_s11  ;;  %v8815_v43 = vadd.f32 %v3393_v4, %v8502_v46  ;;  %v8818_v5 = vadd.f32 %v3396_v28, %v8508_v57  ;;  %v3395_v50 = vmul.f32 %v3314_v59, %v7571_v22 }
 0xc07   :  { %3644 = vrot.lane.b32.xlu0 %v8745_v0, %s6824_s18  ;;  %v3320_v14 = vpop.permute.xlu0 %3319  ;;  %v4994_v46 = vmul.f32 %v8815_v43, %v8815_v43  ;;  %v8833_v7 = vadd.f32 %v3395_v50, %v8521_v63 }
 0xc08   :  { %v8810_v23 = vpop.xlane.xlu1 %3512  ;;  %v3398_v56 = vmul.f32 %v3320_v14, %v7547_v38 }
 0xc09   :  { %3626 = vrot.lane.b32.xlu1 %v8749_v34, %s6824_s18  ;;  %10396 = vst [vmem:[#allocation137_spill] sm:$0xff] %v8810_v23 }
 0xc0b   :  { %5058 = vrot.lane.b32.xlu0 %v4988_v16, %s6824_s18  ;;  %v8812_v53 = vpop.xlane.xlu0 %3521  ;;  %v8836_v16 = vadd.f32 %v3398_v56, %v8527_v26  ;;  %v4996_v26 = vmul.f32 %v8833_v7, %v8833_v7  ;;  %v4997_v56 = vmul.f32 %v8818_v5, %v8818_v5 }
 0xc0c   :  { %10397 = vst [vmem:[#allocation138_spill] sm:$0xff] %v8812_v53  ;;  %v3318_v57 = vpop.permute.xlu1 %3317 }
 0xc0d   :  { %5046 = vrot.lane.b32.xlu1 %v4982_v8, %s6824_s18  ;;  %v3397_v8 = vmul.f32 %v3318_v57, %v7584_v60  ;;  %v4999_v57 = vmul.f32 %v8836_v16, %v8836_v16 }
 0xc0f   :  { %3648 = vrot.lane.b32.xlu0 %v8772_v9, %s6824_s18  ;;  %v3324_v18 = vpop.permute.xlu0 %3323  ;;  %v8855_v47 = vadd.f32 %v3397_v8, %v8537_v15  ;;  %v10406_v8 = vld [vmem:[#allocation35_spill] sm:$0xff] }
 0xc10   :  { %v8840_v22 = vpop.xlane.xlu1 %3518  ;;  %v3400_v63 = vmul.f32 %v3324_v18, %v7565_v52  ;;  %v4991_v52 = vmul.f32 %v8745_v0, %v8745_v0 }
 0xc11   :  { %3630 = vrot.lane.b32.xlu1 %v8776_v2, %s6824_s18  ;;  %10398 = vst [vmem:[#allocation139_spill] sm:$0xff] %v8840_v22 }
 0xc12   :  { %v8858_v42 = vadd.f32 %v3400_v63, %v8543_v61  ;;  %v4998_v61 = vmul.f32 %v8855_v47, %v8855_v47 }
 0xc13   :  { %5062 = vrot.lane.b32.xlu0 %v4990_v13, %s6824_s18  ;;  %v8842_v38 = vpop.xlane.xlu0 %3527 }
 0xc14   :  { %10399 = vst [vmem:[#allocation140_spill] sm:$0xff] %v8842_v38  ;;  %v3322_v12 = vpop.permute.xlu1 %3321 }
 0xc15   :  { %5052 = vrot.lane.b32.xlu1 %v4985_v20, %s6824_s18  ;;  %v3399_v20 = vmul.f32 %v3322_v12, %v7594_v25  ;;  %v10407_v12 = vld [vmem:[#allocation34_spill] sm:$0xff] }
 0xc17   :  { %3652 = vrot.lane.b32.xlu0 %v8797_v19, %s6824_s18  ;;  %v3328_v10 = vpop.permute.xlu0 %3327 }
 0xc18   :  { %v8866_v60 = vpop.xlane.xlu1 %3524  ;;  %v3402_v15 = vmul.f32 %v3328_v10, %v7581_v3  ;;  %v4993_v3 = vmul.f32 %v8772_v9, %v8772_v9 }
 0xc19   :  { %5050 = vrot.lane.b32.xlu1 %v4984_v36, %s6824_s18  ;;  %10400 = vst [vmem:[#allocation141_spill] sm:$0xff] %v8866_v60  ;;  %v8877_v36 = vadd.f32 %v3399_v20, %v8553_v49  ;;  %v10408_v20 = vld [vmem:[#allocation108_spill] sm:$0xff] }
 0xc1a   :  { %v8880_v59 = vadd.f32 %v3402_v15, %v8559_v54  ;;  %v10402_v54 = vld [vmem:[#allocation106_spill] sm:$0xff] }
 0xc1b   :  { %5066 = vrot.lane.b32.xlu0 %v4992_v17, %s6824_s18  ;;  %v5000_v49 = vmul.f32 %v8877_v36, %v8877_v36 }
 0xc1c   :  { %v3326_v14 = vpop.permute.xlu1 %3325 }
 0xc1d   :  { %3634 = vrot.lane.b32.xlu1 %v8721_v48, %s6824_s18  ;;  %v8868_v13 = vpop.xlane.xlu0 %3533  ;;  %v3401_v4 = vmul.f32 %v3326_v14, %v7612_v21 }
 0xc1e   :  { %10401 = vst [vmem:[#allocation142_spill] sm:$0xff] %v8868_v13 }
 0xc1f   :  { %3656 = vrot.lane.b32.xlu0 %v8818_v5, %s6824_s18  ;;  %v8895_v17 = vadd.f32 %v3401_v4, %v10402_v54  ;;  %v5003_v54 = vmul.f32 %v8880_v59, %v8880_v59 }
 0xc21   :  { %5056 = vrot.lane.b32.xlu1 %v4987_v27, %s6824_s18  ;;  %v3332_v25 = vpop.permute.xlu0 %3331  ;;  %v10403_v27 = vld [vmem:[#allocation107_spill] sm:$0xff]  ;;  %v5002_v21 = vmul.f32 %v8895_v17, %v8895_v17 }
 0xc22   :  { %v3404_v28 = vmul.f32 %v3332_v25, %v7609_v24  ;;  %v4995_v24 = vmul.f32 %v8797_v19, %v8797_v19 }
 0xc23   :  { %5070 = vrot.lane.b32.xlu0 %v4994_v46, %s6824_s18 }
 0xc24   :  { %v8898_v50 = vadd.f32 %v3404_v28, %v10403_v27  ;;  %v10411_v27 = vld [vmem:[#allocation110_spill] sm:$0xff] }
 0xc25   :  { %3638 = vrot.lane.b32.xlu1 %v8742_v37, %s6824_s18 }
 0xc27   :  { %3660 = vrot.lane.b32.xlu0 %v8836_v16, %s6824_s18 }
 0xc29   :  { %5060 = vrot.lane.b32.xlu1 %v4989_v29, %s6824_s18 }
 0xc2b   :  { %5074 = vrot.lane.b32.xlu0 %v4996_v26, %s6824_s18 }
 0xc2d   :  { %3642 = vrot.lane.b32.xlu1 %v8769_v62, %s6824_s18 }
 0xc2f   :  { %3664 = vrot.lane.b32.xlu0 %v8858_v42, %s6824_s18 }
 0xc31   :  { %5064 = vrot.lane.b32.xlu1 %v4991_v52, %s6824_s18  ;;  %v5001_v52 = vmul.f32 %v8858_v42, %v8858_v42 }
 0xc33   :  { %5078 = vrot.lane.b32.xlu0 %v4998_v61, %s6824_s18  ;;  %v10409_v61 = vld [vmem:[#allocation109_spill] sm:$0xff] }
 0xc35   :  { %3646 = vrot.lane.b32.xlu1 %v8794_v55, %s6824_s18 }
 0xc37   :  { %3668 = vrot.lane.b32.xlu0 %v8880_v59, %s6824_s18 }
 0xc39   :  { %5068 = vrot.lane.b32.xlu1 %v4993_v3, %s6824_s18  ;;  %v10410_v3 = vld [vmem:[#allocation36_spill] sm:$0xff] }
 0xc3b   :  { %5082 = vrot.lane.b32.xlu0 %v5000_v49, %s6824_s18 }
 0xc3c   :  { %v8915_v46 = vpop.xlane.xlu1 %3530 }
 0xc3d   :  { %3650 = vrot.lane.b32.xlu1 %v8815_v43, %s6824_s18  ;;  %10404 = vst [vmem:[#allocation106_spill] sm:$0xff] %v8915_v46 }
 0xc3f   :  { %3672 = vrot.lane.b32.xlu0 %v8898_v50, %s6824_s18 }
 0xc40   :  { %v3330_v18 = vpop.permute.xlu1 %3329 }
 0xc41   :  { %5072 = vrot.lane.b32.xlu1 %v4995_v24, %s6824_s18  ;;  %v3403_v63 = vmul.f32 %v3330_v18, %v10406_v8 }
 0xc43   :  { %5086 = vrot.lane.b32.xlu0 %v5002_v21, %s6824_s18  ;;  %v8931_v15 = vadd.f32 %v3403_v63, %v10408_v20 }
 0xc45   :  { %3654 = vrot.lane.b32.xlu1 %v8833_v7, %s6824_s18  ;;  %v5004_v28 = vmul.f32 %v8931_v15, %v8931_v15 }
 0xc49   :  { %5076 = vrot.lane.b32.xlu1 %v4997_v56, %s6824_s18 }
 0xc4d   :  { %3658 = vrot.lane.b32.xlu1 %v8855_v47, %s6824_s18 }
 0xc51   :  { %5080 = vrot.lane.b32.xlu1 %v4999_v57, %s6824_s18  ;;  %v5005_v57 = vmul.f32 %v8898_v50, %v8898_v50 }
 0xc52   :  { %v8922_v29 = vpop.xlane.xlu0 %3539 }
 0xc53   :  { %10405 = vst [vmem:[#allocation107_spill] sm:$0xff] %v8922_v29 }
 0xc55   :  { %3662 = vrot.lane.b32.xlu1 %v8877_v36, %s6824_s18 }
 0xc56   :  { %v3336_v26 = vpop.permute.xlu0 %3335 }
 0xc57   :  { %v3406_v10 = vmul.f32 %v3336_v26, %v10407_v12 }
 0xc59   :  { %v8934_v14 = vadd.f32 %v3406_v10, %v10409_v61  ;;  %5084 = vrot.lane.b32.xlu1 %v5001_v52, %s6824_s18  ;;  %v10413_v10 = vld [vmem:[#allocation37_spill] sm:$0xff] }
 0xc5a   :  { %v3340_v25 = vpop.permute.xlu0 %3339 }
 0xc5b   :  { %3676 = vrot.lane.b32.xlu0 %v8934_v14, %s6824_s18  ;;  %v3408_v4 = vmul.f32 %v3340_v25, %v10410_v3  ;;  %v10414_v3 = vld [vmem:[#allocation38_spill] sm:$0xff] }
 0xc5d   :  { %3666 = vrot.lane.b32.xlu1 %v8895_v17, %s6824_s18  ;;  %v8948_v24 = vadd.f32 %v3408_v4, %v10411_v27 }
 0xc5e   :  { %v3344_v49 = vpop.permute.xlu0 %3343 }
 0xc5f   :  { %5090 = vrot.lane.b32.xlu0 %v5004_v28, %s6824_s18  ;;  %v3410_v4 = vmul.f32 %v3344_v49, %v10414_v3  ;;  %v10415_v28 = vld [vmem:[#allocation39_spill] sm:$0xff] }
 0xc61   :  { %5088 = vrot.lane.b32.xlu1 %v5003_v54, %s6824_s18 }
 0xc62   :  { %v3348_v21 = vpop.permute.xlu0 %3347 }
 0xc63   :  { %3680 = vrot.lane.b32.xlu0 %v8948_v24, %s6824_s18 }
 0xc65   :  { %3670 = vrot.lane.b32.xlu1 %v8931_v15, %s6824_s18 }
 0xc66   :  { %v3629_v56 = vpop.permute.xlu0 %3628 }
 0xc69   :  { %5092 = vrot.lane.b32.xlu1 %v5005_v57, %s6824_s18 }
 0xc6a   :  { %v8958_v18 = vpop.permute.xlu0 %5048 }
 0xc6e   :  { %v3633_v8 = vpop.permute.xlu0 %3632 }
 0xc71   :  { %v8960_v63 = vpop.xlane.xlu1 %3536 }
 0xc72   :  { %10412 = vst [vmem:[#allocation35_spill] sm:$0xff] %v8960_v63  ;;  %v8962_v26 = vpop.permute.xlu0 %3636  ;;  %v10418_v63 = vld [vmem:[#allocation41_spill] sm:$0xff] }
 0xc75   :  { %v3334_v12 = vpop.permute.xlu1 %3333 }
 0xc76   :  { %v3405_v52 = vmul.f32 %v3334_v12, %v10413_v10  ;;  %v8965_v20 = vpop.permute.xlu0 %3640  ;;  %v5007_v12 = vmul.f32 %v8934_v14, %v8934_v14  ;;  %v10416_v10 = vld [vmem:[#allocation111_spill] sm:$0xff] }
 0xc78   :  { %v8968_v61 = vadd.f32 %v3405_v52, %v8595_v58  ;;  %v8982_v52 = vadd.f32 %v3410_v4, %v10416_v10  ;;  %v10419_v10 = vld [vmem:[#allocation119_spill] sm:$0xff] }
 0xc79   :  { %v3338_v25 = vpop.permute.xlu1 %3337 }
 0xc7a   :  { %v3407_v54 = vmul.f32 %v3338_v25, %v10415_v28  ;;  %3674 = vrot.lane.b32.xlu1 %v8968_v61, %s6824_s18  ;;  %v8974_v27 = vpop.permute.xlu0 %5054  ;;  %v5006_v57 = vmul.f32 %v8968_v61, %v8968_v61  ;;  %v10417_v28 = vld [vmem:[#allocation40_spill] sm:$0xff] }
 0xc7c   :  { %5094 = vrot.lane.b32.xlu0 %v5006_v57, %s6824_s18  ;;  %v8985_v49 = vadd.f32 %v3407_v54, %v8609_v33  ;;  %v3412_v57 = vmul.f32 %v3348_v21, %v10417_v28  ;;  %v5009_v54 = vmul.f32 %v8948_v24, %v8948_v24 }
 0xc7d   :  { %v3342_v58 = vpop.permute.xlu1 %3341 }
 0xc7e   :  { %5096 = vrot.lane.b32.xlu1 %v5007_v12, %s6824_s18  ;;  %v8988_v25 = vpop.permute.xlu0 %3644  ;;  %v3409_v29 = vmul.f32 %v3342_v58, %v10418_v63  ;;  %v5008_v33 = vmul.f32 %v8985_v49, %v8985_v49  ;;  %v9004_v13 = vadd.f32 %v3412_v57, %v10419_v10  ;;  %v10420_v63 = vld [vmem:[#allocation42_spill] sm:$0xff]  ;;  %v5640_v57 = vld [vmem:[%s10208_s3 + $0xf8] sm:$0xff] }
 0xc7f   :  { %6425 = vmatprep.subr.mxu1 %v5640_v57  ;;  %v5637_v10 = vld [vmem:[%s10208_s3 + $0xe0] sm:$0xff] }
 0xc80   :  { %3684 = vrot.lane.b32.xlu0 %v8982_v52, %s6824_s18  ;;  %v9007_v21 = vadd.f32 %v3409_v29, %v8625_v39  ;;  %v5639_v39 = vld [vmem:[%s10208_s3 + $0xf0] sm:$0xff]  ;;  %6426 = vmatpush3.msra.mxu1 %v5640_v57 }
 0xc81   :  { %v3346_v3 = vpop.permute.xlu1 %3345  ;;  %6427 = vmatprep.subr.mxu1 %v5639_v39 }
 0xc82   :  { %3678 = vrot.lane.b32.xlu1 %v8985_v49, %s6824_s18  ;;  %v8996_v4 = vpop.permute.xlu0 %5058  ;;  %v3411_v58 = vmul.f32 %v3346_v3, %v10420_v63  ;;  %6428 = vmatpush3.msra.mxu1 %v5639_v39  ;;  %v5635_v39 = vld [vmem:[%s10208_s3 + $0xd0] sm:$0xff] }
 0xc84   :  { %5098 = vrot.lane.b32.xlu0 %v5008_v33, %s6824_s18  ;;  %v9024_v3 = vadd.f32 %v3411_v58, %v8677_v44  ;;  %v5638_v33 = vld [vmem:[%s10208_s3 + $0xe8] sm:$0xff]  ;;  %v5011_v44 = vmul.f32 %v8982_v52, %v8982_v52  ;;  %v5636_v58 = vld [vmem:[%s10208_s3 + $0xd8] sm:$0xff] }
 0xc85   :  { %v3627_v12 = vpop.permute.xlu1 %3626  ;;  %6429 = vmatprep.subr.mxu1 %v5638_v33 }
 0xc86   :  { %6377 = vmatprep.mubr.msk.f32.mxu0 %vm71_vm1, %v3627_v12  ;;  %5100 = vrot.lane.b32.xlu1 %v5009_v54, %s6824_s18  ;;  %v9012_v28 = vpop.permute.xlu0 %3648  ;;  %v5012_v63 = vmul.f32 %v9024_v3, %v9024_v3 }
 0xc87   :  { %6378 = vmatmul.mubr.msk.f32.vlgmr.msra.gmra.mxu0 %vm71_vm1, %v3629_v56  ;;  %v5010_v56 = vmul.f32 %v9007_v21, %v9007_v21  ;;  %6430 = vmatpush3.msra.mxu1 %v5638_v33 }
 0xc88   :  { %3688 = vrot.lane.b32.xlu0 %v9004_v13, %s6824_s18  ;;  %6431 = vmatprep.subr.mxu1 %v5637_v10 }
 0xc89   :  { %v5047_v29 = vpop.permute.xlu1 %5046  ;;  %6432 = vmatpush3.msra.mxu1 %v5637_v10 }
 0xc8a   :  { %3682 = vrot.lane.b32.xlu1 %v9007_v21, %s6824_s18  ;;  %v9033_v54 = vpop.permute.xlu0 %5062  ;;  %6433 = vmatprep.subr.mxu1 %v5636_v58 }
 0xc8b   :  { %6434 = vmatpush3.msra.mxu1 %v5636_v58 }
 0xc8c   :  { %5102 = vrot.lane.b32.xlu0 %v5010_v56, %s6824_s18  ;;  %6435 = vmatprep.subr.mxu1 %v5635_v39 }
 0xc8d   :  { %v3631_v12 = vpop.permute.xlu1 %3630  ;;  %6436 = vmatpush3.msra.mxu1 %v5635_v39 }
 0xc8e   :  { %5104 = vrot.lane.b32.xlu1 %v5011_v44, %s6824_s18  ;;  %6380 = vmatprep.mubr.msk.f32.mxu0 %vm71_vm1, %v3631_v12  ;;  %v3653_v56 = vpop.permute.xlu0 %3652 }
 0xc8f   :  { %6381 = vmatmul.mubr.msk.f32.gmra.mxu0 %vm71_vm1, %v3633_v8  ;;  %v5013_v8 = vmul.f32 %v9004_v13, %v9004_v13 }
 0xc90   :  { %5106 = vrot.lane.b32.xlu0 %v5012_v63, %s6824_s18 }
 0xc91   :  { %v5053_v57 = vpop.permute.xlu1 %5052 }
 0xc92   :  { %3686 = vrot.lane.b32.xlu1 %v9024_v3, %s6824_s18  ;;  %v5067_v44 = vpop.permute.xlu0 %5066 }
 0xc95   :  { %v5051_v33 = vpop.permute.xlu1 %5050 }
 0xc96   :  { %5108 = vrot.lane.b32.xlu1 %v5013_v8, %s6824_s18  ;;  %v3657_v63 = vpop.permute.xlu0 %3656 }
 0xc99   :  { %v3635_v12 = vpop.permute.xlu1 %3634 }
 0xc9a   :  { %6383 = vmatprep.mubr.msk.f32.mxu0 %vm71_vm1, %v3635_v12  ;;  %v5071_v58 = vpop.permute.xlu0 %5070 }
 0xc9b   :  { %6384 = vmatmul.mubr.msk.f32.gmra.mxu0 %vm71_vm1, %v8962_v26  ;;  %v5142_v26 = vsel %vm71_vm1, %v5047_v29, 0.0  ;;  %v5145_v29 = vsel %vm71_vm1, %v8958_v18, 0.0 }
 0xc9d   :  { %v5057_v10 = vpop.permute.xlu1 %5056 }
 0xc9e   :  { %v3661_v51 = vpop.permute.xlu0 %3660 }
 0xca1   :  { %v3639_v38 = vpop.permute.xlu1 %3638 }
 0xca2   :  { %6386 = vmatprep.mubr.msk.f32.mxu0 %vm71_vm1, %v3639_v38  ;;  %v5075_v12 = vpop.permute.xlu0 %5074  ;;  %v5151_v38 = vsel %vm71_vm1, %v5053_v57, 0.0 }
 0xca3   :  { %6387 = vmatmul.mubr.msk.f32.gmra.mxu0 %vm71_vm1, %v8965_v20 }
 0xca5   :  { %v5061_v53 = vpop.permute.xlu1 %5060 }
 0xca6   :  { %v3665_v45 = vpop.permute.xlu0 %3664  ;;  %v5163_v18 = vsel %vm71_vm1, %v5061_v53, 0.0 }
 0xca9   :  { %v3643_v39 = vpop.permute.xlu1 %3642 }
 0xcaa   :  { %6389 = vmatprep.mubr.msk.f32.mxu0 %vm71_vm1, %v3643_v39  ;;  %v5148_v39 = vsel %vm71_vm1, %v5051_v33, 0.0  ;;  %v5079_v57 = vpop.permute.xlu0 %5078  ;;  %v5154_v33 = vsel %vm71_vm1, %v8974_v27, 0.0 }
 0xcab   :  { %6390 = vmatmul.mubr.msk.f32.gmra.mxu0 %vm71_vm1, %v8988_v25 }
 0xcad   :  { %v5065_v8 = vpop.permute.xlu1 %5064 }
 0xcaf   :  { %5143 = vadd.xlane.f32.xlu0 %v5142_v26 }
 0xcb1   :  { %v3647_v46 = vpop.permute.xlu1 %3646 }
 0xcb2   :  { %6392 = vmatprep.mubr.msk.f32.mxu0 %vm71_vm1, %v3647_v46  ;;  %v5157_v46 = vsel %vm71_vm1, %v5057_v10, 0.0  ;;  %v5160_v10 = vsel %vm71_vm1, %v8996_v4, 0.0  ;;  %v5172_v4 = vsel %vm71_vm1, %v5067_v44, 0.0 }
 0xcb3   :  { %5152 = vadd.xlane.f32.xlu0 %v5151_v38  ;;  %6393 = vmatmul.mubr.msk.f32.gmra.mxu0 %vm71_vm1, %v9012_v28  ;;  %v5634_v28 = vld [vmem:[%s10208_s3 + $0xc8] sm:$0xff] }
 0xcb4   :  { %6437 = vmatprep.subr.mxu1 %v5634_v28 }
 0xcb5   :  { %v5069_v20 = vpop.permute.xlu1 %5068  ;;  %6438 = vmatpush3.msra.mxu1 %v5634_v28 }
 0xcb6   :  { %v5175_v53 = vsel %vm71_vm1, %v5069_v20, 0.0  ;;  %v5178_v20 = vsel %vm71_vm1, %v5071_v58, 0.0 }
 0xcb7   :  { %5149 = vadd.xlane.f32.xlu0 %v5148_v39  ;;  %v5169_v39 = vsel %vm71_vm1, %v5065_v8, 0.0 }
 0xcb9   :  { %v3651_v25 = vpop.permute.xlu1 %3650 }
 0xcba   :  { %5146 = vadd.xlane.f32.xlu1 %v5145_v29  ;;  %6395 = vmatprep.mubr.msk.f32.mxu0 %vm71_vm1, %v3651_v25  ;;  %v5166_v25 = vsel %vm71_vm1, %v9033_v54, 0.0  ;;  %v5633_v54 = vld [vmem:[%s10208_s3 + $0xc0] sm:$0xff] }
 0xcbb   :  { %5158 = vadd.xlane.f32.xlu0 %v5157_v46  ;;  %6396 = vmatmul.mubr.msk.f32.gmra.mxu0 %vm71_vm1, %v3653_v56  ;;  %v3669_v56 = vpop.permute.xlu0 %3668 }
 0xcbc   :  { %6439 = vmatprep.subr.mxu1 %v5633_v54 }
 0xcbd   :  { %v5073_v26 = vpop.permute.xlu1 %5072  ;;  %6440 = vmatpush3.msra.mxu1 %v5633_v54 }
 0xcbe   :  { %5155 = vadd.xlane.f32.xlu1 %v5154_v33  ;;  %v5181_v8 = vsel %vm71_vm1, %v5073_v26, 0.0  ;;  %v5184_v26 = vsel %vm71_vm1, %v5075_v12, 0.0 }
 0xcbf   :  { %5164 = vadd.xlane.f32.xlu0 %v5163_v18  ;;  %v5083_v29 = vpop.permute.xlu0 %5082 }
 0xcc0   :  { %v5196_v12 = vsel %vm71_vm1, %v5083_v29, 0.0 }
 0xcc1   :  { %v3655_v38 = vpop.permute.xlu1 %3654 }
 0xcc2   :  { %5161 = vadd.xlane.f32.xlu1 %v5160_v10  ;;  %6398 = vmatprep.mubr.msk.f32.mxu0 %vm71_vm1, %v3655_v38  ;;  %v5190_v38 = vsel %vm71_vm1, %v5079_v57, 0.0 }
 0xcc3   :  { %5170 = vadd.xlane.f32.xlu0 %v5169_v39  ;;  %6399 = vmatmul.mubr.msk.f32.gmra.mxu0 %vm71_vm1, %v3657_v63  ;;  %v3673_v28 = vpop.permute.xlu0 %3672 }
 0xcc5   :  { %v5077_v27 = vpop.permute.xlu1 %5076 }
 0xcc6   :  { %5167 = vadd.xlane.f32.xlu1 %v5166_v25  ;;  %v5187_v44 = vsel %vm71_vm1, %v5077_v27, 0.0 }
 0xcc7   :  { %5176 = vadd.xlane.f32.xlu0 %v5175_v53  ;;  %v5087_v18 = vpop.permute.xlu0 %5086 }
 0xcc9   :  { %v3659_v46 = vpop.permute.xlu1 %3658 }
 0xcca   :  { %5173 = vadd.xlane.f32.xlu1 %v5172_v4  ;;  %6401 = vmatprep.mubr.msk.f32.mxu0 %vm71_vm1, %v3659_v46 }
 0xccb   :  { %5182 = vadd.xlane.f32.xlu0 %v5181_v8  ;;  %6402 = vmatmul.mubr.msk.f32.gmra.mxu0 %vm71_vm1, %v3661_v51 }
 0xccd   :  { %v5081_v63 = vpop.permute.xlu1 %5080  ;;  %v3677_v39 = vpop.permute.xlu0 %3676 }
 0xcce   :  { %5179 = vadd.xlane.f32.xlu1 %v5178_v20  ;;  %v5193_v51 = vsel %vm71_vm1, %v5081_v63, 0.0 }
 0xccf   :  { %5188 = vadd.xlane.f32.xlu0 %v5187_v44 }
 0xcd1   :  { %v3663_v33 = vpop.permute.xlu1 %3662  ;;  %v5091_v53 = vpop.permute.xlu0 %5090 }
 0xcd2   :  { %6404 = vmatprep.mubr.msk.f32.mxu0 %vm71_vm1, %v3663_v33  ;;  %5185 = vadd.xlane.f32.xlu1 %v5184_v26  ;;  %v5208_v4 = vsel %vm71_vm1, %v5091_v53, 0.0 }
 0xcd3   :  { %5194 = vadd.xlane.f32.xlu0 %v5193_v51  ;;  %6405 = vmatmul.mubr.msk.f32.gmra.mxu0 %vm71_vm1, %v3665_v45  ;;  %v5202_v45 = vsel %vm71_vm1, %v5087_v18, 0.0 }
 0xcd5   :  { %v5085_v58 = vpop.permute.xlu1 %5084 }
 0xcd6   :  { %5191 = vadd.xlane.f32.xlu1 %v5190_v38  ;;  %v5199_v10 = vsel %vm71_vm1, %v5085_v58, 0.0 }
 0xcd7   :  { %5200 = vadd.xlane.f32.xlu0 %v5199_v10 }
 0xcd9   :  { %v3667_v27 = vpop.permute.xlu1 %3666 }
 0xcda   :  { %6407 = vmatprep.mubr.msk.f32.mxu0 %vm71_vm1, %v3667_v27  ;;  %5197 = vadd.xlane.f32.xlu1 %v5196_v12 }
 0xcdb   :  { %6408 = vmatmul.mubr.msk.f32.gmra.mxu0 %vm71_vm1, %v3669_v56  ;;  %v3681_v56 = vpop.permute.xlu0 %3680 }
 0xcdd   :  { %v5089_v25 = vpop.permute.xlu1 %5088 }
 0xcde   :  { %5203 = vadd.xlane.f32.xlu1 %v5202_v45  ;;  %v5205_v57 = vsel %vm71_vm1, %v5089_v25, 0.0 }
 0xcdf   :  { %5206 = vadd.xlane.f32.xlu0 %v5205_v57  ;;  %v9133_v57 = vld [vmem:[%s10209_s2 + $0x3] ss:$0 sm:$0xff] }
 0xce1   :  { %v3671_v46 = vpop.permute.xlu1 %3670 }
 0xce2   :  { %6410 = vmatprep.mubr.msk.f32.mxu0 %vm71_vm1, %v3671_v46  ;;  %5209 = vadd.xlane.f32.xlu1 %v5208_v4 }
 0xce3   :  { %6411 = vmatmul.mubr.msk.f32.gmra.mxu0 %vm71_vm1, %v3673_v28 }
 0xce5   :  { %v5093_v29 = vpop.permute.xlu1 %5092 }
 0xce6   :  { %v5211_v8 = vsel %vm71_vm1, %v5093_v29, 0.0 }
 0xce7   :  { %5212 = vadd.xlane.f32.xlu0 %v5211_v8 }
 0xcec   :  { %v3675_v54 = vpop.permute.xlu1 %3674 }
 0xced   :  { %6413 = vmatprep.mubr.msk.f32.mxu0 %vm71_vm1, %v3675_v54 }
 0xcee   :  { %6414 = vmatmul.mubr.msk.f32.gmra.mxu0 %vm71_vm1, %v3677_v39  ;;  %v5095_v63 = vpop.permute.xlu0 %5094 }
 0xcef   :  { %v5214_v20 = vsel %vm71_vm1, %v5095_v63, 0.0 }
 0xcf0   :  { %v5097_v44 = vpop.permute.xlu1 %5096  ;;  %5215 = vadd.xlane.f32.xlu1 %v5214_v20 }
 0xcf1   :  { %v5217_v33 = vsel %vm71_vm1, %v5097_v44, 0.0 }
 0xcf2   :  { %5218 = vadd.xlane.f32.xlu0 %v5217_v33  ;;  %v3685_v26 = vpop.permute.xlu0 %3684 }
 0xcf4   :  { %v3679_v28 = vpop.permute.xlu1 %3678 }
 0xcf5   :  { %6416 = vmatprep.mubr.msk.f32.mxu0 %vm71_vm1, %v3679_v28 }
 0xcf6   :  { %6417 = vmatmul.mubr.msk.f32.gmra.mxu0 %vm71_vm1, %v3681_v56  ;;  %v5099_v51 = vpop.permute.xlu0 %5098 }
 0xcf7   :  { %v5220_v18 = vsel %vm71_vm1, %v5099_v51, 0.0 }
 0xcf8   :  { %v5101_v58 = vpop.permute.xlu1 %5100  ;;  %5221 = vadd.xlane.f32.xlu1 %v5220_v18 }
 0xcf9   :  { %v5223_v38 = vsel %vm71_vm1, %v5101_v58, 0.0 }
 0xcfa   :  { %5224 = vadd.xlane.f32.xlu0 %v5223_v38  ;;  %v3689_v10 = vpop.permute.xlu0 %3688 }
 0xcfc   :  { %v3683_v39 = vpop.permute.xlu1 %3682 }
 0xcfd   :  { %6419 = vmatprep.mubr.msk.f32.mxu0 %vm71_vm1, %v3683_v39 }
 0xcfe   :  { %6420 = vmatmul.mubr.msk.f32.gmra.mxu0 %vm71_vm1, %v3685_v26  ;;  %v5103_v27 = vpop.permute.xlu0 %5102 }
 0xcff   :  { %v5226_v12 = vsel %vm71_vm1, %v5103_v27, 0.0 }
 0xd00   :  { %v5105_v25 = vpop.permute.xlu1 %5104  ;;  %5227 = vadd.xlane.f32.xlu1 %v5226_v12 }
 0xd01   :  { %v5229_v45 = vsel %vm71_vm1, %v5105_v25, 0.0 }
 0xd02   :  { %5230 = vadd.xlane.f32.xlu0 %v5229_v45 }
 0xd04   :  { %v3687_v53 = vpop.permute.xlu1 %3686 }
 0xd05   :  { %6422 = vmatprep.mubr.msk.f32.mxu0 %vm71_vm1, %v3687_v53 }
 0xd06   :  { %6423 = vmatmul.mubr.msk.f32.gmra.mxu0 %vm71_vm1, %v3689_v10 }
 0xd47   :  { %v6379_v46 = vpop.f32.mrf.mxu0 }
 0xd48   :  { %v3829_v4 = vadd.f32 %v6379_v46, %v9133_v57 }
 0xd49   :  { %v3823_v29 = vpop.f32.mrf.mxu0 }
 0xd4a   :  { %v3824_v8 = vadd.f32 %v9133_v57, %v3823_v29  ;;  %v4015_v56 = vmul.f32 0.01, %v3829_v4  ;;  %vm3983_vm0 = vcmp.gt.f32.partialorder %v3829_v4, 0.0 }
 0xd4c   :  { %vm3982_vm8 = vcmp.gt.f32.partialorder %v3824_v8, 0.0  ;;  %v4014_v54 = vmul.f32 0.01, %v3824_v8  ;;  %v4047_v20 = vsel %vm3983_vm0, %v3829_v4, %v4015_v56 }
 0xd4e   :  { %v4046_v63 = vsel %vm3982_vm8, %v3824_v8, %v4014_v54 }
 0xd4f   :  { %v6382_v44 = vpop.f32.mrf.mxu0  ;;  %6441 = vmatprep.mubr.msk.f32.mxu1 %vm499_vm2, %v4046_v63 }
 0xd50   :  { %v3839_v33 = vadd.f32 %v6382_v44, %v9133_v57  ;;  %6442 = vmatmul.mubr.msk.f32.vlgmr.msra.gmra.mxu1 %vm499_vm2, %v4047_v20 }
 0xd51   :  { %v3833_v26 = vpop.f32.mrf.mxu0 }
 0xd52   :  { %v3834_v28 = vadd.f32 %v9133_v57, %v3833_v26  ;;  %v4017_v51 = vmul.f32 0.01, %v3839_v33  ;;  %vm3985_vm9 = vcmp.gt.f32.partialorder %v3839_v33, 0.0 }
 0xd54   :  { %vm3984_vm10 = vcmp.gt.f32.partialorder %v3834_v28, 0.0  ;;  %v4016_v18 = vmul.f32 0.01, %v3834_v28  ;;  %v4049_v38 = vsel %vm3985_vm9, %v3839_v33, %v4017_v51 }
 0xd56   :  { %v4048_v58 = vsel %vm3984_vm10, %v3834_v28, %v4016_v18 }
 0xd57   :  { %6444 = vmatprep.mubr.msk.f32.mxu1 %vm499_vm2, %v4048_v58 }
 0xd58   :  { %6445 = vmatmul.mubr.msk.f32.gmra.mxu1 %vm499_vm2, %v4049_v38 }
 0xd5b   :  { %v6385_v10 = vpop.f32.mrf.mxu0 }
 0xd5c   :  { %v3849_v39 = vadd.f32 %v6385_v10, %v9133_v57 }
 0xd5d   :  { %v3843_v27 = vpop.f32.mrf.mxu0 }
 0xd5e   :  { %v3844_v12 = vadd.f32 %v9133_v57, %v3843_v27  ;;  %v4019_v25 = vmul.f32 0.01, %v3849_v39  ;;  %vm3987_vm11 = vcmp.gt.f32.partialorder %v3849_v39, 0.0 }
 0xd60   :  { %vm3986_vm12 = vcmp.gt.f32.partialorder %v3844_v12, 0.0  ;;  %v4018_v45 = vmul.f32 0.01, %v3844_v12  ;;  %v4051_v4 = vsel %vm3987_vm11, %v3849_v39, %v4019_v25 }
 0xd62   :  { %v4050_v53 = vsel %vm3986_vm12, %v3844_v12, %v4018_v45 }
 0xd63   :  { %v6388_v46 = vpop.f32.mrf.mxu0  ;;  %6447 = vmatprep.mubr.msk.f32.mxu1 %vm499_vm2, %v4050_v53 }
 0xd64   :  { %v3859_v29 = vadd.f32 %v6388_v46, %v9133_v57  ;;  %6448 = vmatmul.mubr.msk.f32.gmra.mxu1 %vm499_vm2, %v4051_v4 }
 0xd65   :  { %v3853_v8 = vpop.f32.mrf.mxu0 }
 0xd66   :  { %v3854_v56 = vadd.f32 %v9133_v57, %v3853_v8  ;;  %v4021_v54 = vmul.f32 0.01, %v3859_v29  ;;  %vm3989_vm13 = vcmp.gt.f32.partialorder %v3859_v29, 0.0 }
 0xd68   :  { %vm3988_vm14 = vcmp.gt.f32.partialorder %v3854_v56, 0.0  ;;  %v4020_v63 = vmul.f32 0.01, %v3854_v56  ;;  %v4053_v33 = vsel %vm3989_vm13, %v3859_v29, %v4021_v54 }
 0xd6a   :  { %v4052_v20 = vsel %vm3988_vm14, %v3854_v56, %v4020_v63 }
 0xd6b   :  { %v6391_v44 = vpop.f32.mrf.mxu0  ;;  %6450 = vmatprep.mubr.msk.f32.mxu1 %vm499_vm2, %v4052_v20 }
 0xd6c   :  { %v3869_v26 = vadd.f32 %v6391_v44, %v9133_v57  ;;  %6451 = vmatmul.mubr.msk.f32.gmra.mxu1 %vm499_vm2, %v4053_v33 }
 0xd6d   :  { %v3863_v28 = vpop.f32.mrf.mxu0 }
 0xd6e   :  { %v3864_v51 = vadd.f32 %v9133_v57, %v3863_v28  ;;  %v4023_v18 = vmul.f32 0.01, %v3869_v26  ;;  %vm3991_vm15 = vcmp.gt.f32.partialorder %v3869_v26, 0.0 }
 0xd70   :  { %vm3990_vm3 = vcmp.gt.f32.partialorder %v3864_v51, 0.0  ;;  %v4022_v58 = vmul.f32 0.01, %v3864_v51  ;;  %v4055_v39 = vsel %vm3991_vm15, %v3869_v26, %v4023_v18 }
 0xd72   :  { %v4054_v38 = vsel %vm3990_vm3, %v3864_v51, %v4022_v58 }
 0xd73   :  { %v6394_v10 = vpop.f32.mrf.mxu0  ;;  %6453 = vmatprep.mubr.msk.f32.mxu1 %vm499_vm2, %v4054_v38 }
 0xd74   :  { %v3879_v27 = vadd.f32 %v6394_v10, %v9133_v57  ;;  %6454 = vmatmul.mubr.msk.f32.gmra.mxu1 %vm499_vm2, %v4055_v39 }
 0xd75   :  { %v3873_v12 = vpop.f32.mrf.mxu0 }
 0xd76   :  { %v3874_v25 = vadd.f32 %v9133_v57, %v3873_v12  ;;  %v4025_v45 = vmul.f32 0.01, %v3879_v27  ;;  %vm3993_vm4 = vcmp.gt.f32.partialorder %v3879_v27, 0.0 }
 0xd78   :  { %vm3992_vm5 = vcmp.gt.f32.partialorder %v3874_v25, 0.0  ;;  %v4024_v53 = vmul.f32 0.01, %v3874_v25  ;;  %v4057_v29 = vsel %vm3993_vm4, %v3879_v27, %v4025_v45 }
 0xd7a   :  { %v4056_v46 = vsel %vm3992_vm5, %v3874_v25, %v4024_v53 }
 0xd7b   :  { %v6397_v4 = vpop.f32.mrf.mxu0  ;;  %6456 = vmatprep.mubr.msk.f32.mxu1 %vm499_vm2, %v4056_v46 }
 0xd7c   :  { %v3889_v8 = vadd.f32 %v6397_v4, %v9133_v57  ;;  %6457 = vmatmul.mubr.msk.f32.gmra.mxu1 %vm499_vm2, %v4057_v29 }
 0xd7d   :  { %v3883_v56 = vpop.f32.mrf.mxu0 }
 0xd7e   :  { %v3884_v54 = vadd.f32 %v9133_v57, %v3883_v56  ;;  %v4027_v63 = vmul.f32 0.01, %v3889_v8  ;;  %vm3995_vm6 = vcmp.gt.f32.partialorder %v3889_v8, 0.0 }
 0xd80   :  { %vm3994_vm7 = vcmp.gt.f32.partialorder %v3884_v54, 0.0  ;;  %v4026_v20 = vmul.f32 0.01, %v3884_v54  ;;  %v4059_v26 = vsel %vm3995_vm6, %v3889_v8, %v4027_v63 }
 0xd82   :  { %v4058_v44 = vsel %vm3994_vm7, %v3884_v54, %v4026_v20 }
 0xd83   :  { %v6400_v33 = vpop.f32.mrf.mxu0  ;;  %6459 = vmatprep.mubr.msk.f32.mxu1 %vm499_vm2, %v4058_v44 }
 0xd84   :  { %v3899_v28 = vadd.f32 %v6400_v33, %v9133_v57  ;;  %6460 = vmatmul.mubr.msk.f32.gmra.mxu1 %vm499_vm2, %v4059_v26 }
 0xd85   :  { %v3893_v51 = vpop.f32.mrf.mxu0 }
 0xd86   :  { %v3894_v18 = vadd.f32 %v9133_v57, %v3893_v51  ;;  %v4029_v58 = vmul.f32 0.01, %v3899_v28  ;;  %vm3997_vm0 = vcmp.gt.f32.partialorder %v3899_v28, 0.0 }
 0xd88   :  { %vm3996_vm8 = vcmp.gt.f32.partialorder %v3894_v18, 0.0  ;;  %v4028_v38 = vmul.f32 0.01, %v3894_v18  ;;  %v4061_v27 = vsel %vm3997_vm0, %v3899_v28, %v4029_v58 }
 0xd8a   :  { %v4060_v10 = vsel %vm3996_vm8, %v3894_v18, %v4028_v38 }
 0xd8b   :  { %v6403_v39 = vpop.f32.mrf.mxu0  ;;  %6462 = vmatprep.mubr.msk.f32.mxu1 %vm499_vm2, %v4060_v10 }
 0xd8c   :  { %v3909_v12 = vadd.f32 %v6403_v39, %v9133_v57  ;;  %6463 = vmatmul.mubr.msk.f32.gmra.mxu1 %vm499_vm2, %v4061_v27 }
 0xd8d   :  { %v3903_v25 = vpop.f32.mrf.mxu0 }
 0xd8e   :  { %v3904_v45 = vadd.f32 %v9133_v57, %v3903_v25  ;;  %v4031_v53 = vmul.f32 0.01, %v3909_v12  ;;  %vm3999_vm9 = vcmp.gt.f32.partialorder %v3909_v12, 0.0 }
 0xd90   :  { %vm3998_vm10 = vcmp.gt.f32.partialorder %v3904_v45, 0.0  ;;  %v4030_v46 = vmul.f32 0.01, %v3904_v45  ;;  %v4063_v8 = vsel %vm3999_vm9, %v3909_v12, %v4031_v53 }
 0xd92   :  { %v4062_v4 = vsel %vm3998_vm10, %v3904_v45, %v4030_v46 }
 0xd93   :  { %v6406_v29 = vpop.f32.mrf.mxu0  ;;  %6465 = vmatprep.mubr.msk.f32.mxu1 %vm499_vm2, %v4062_v4 }
 0xd94   :  { %v3919_v56 = vadd.f32 %v6406_v29, %v9133_v57  ;;  %6466 = vmatmul.mubr.msk.f32.gmra.mxu1 %vm499_vm2, %v4063_v8 }
 0xd95   :  { %v3913_v54 = vpop.f32.mrf.mxu0 }
 0xd96   :  { %v3914_v63 = vadd.f32 %v9133_v57, %v3913_v54  ;;  %v4033_v20 = vmul.f32 0.01, %v3919_v56  ;;  %vm4001_vm11 = vcmp.gt.f32.partialorder %v3919_v56, 0.0 }
 0xd98   :  { %vm4000_vm12 = vcmp.gt.f32.partialorder %v3914_v63, 0.0  ;;  %v4032_v44 = vmul.f32 0.01, %v3914_v63  ;;  %v4065_v26 = vsel %vm4001_vm11, %v3919_v56, %v4033_v20  ;;  %vm5334_vm11 = vcmask 7168  }
 0xd9a   :  { %v4064_v33 = vsel %vm4000_vm12, %v3914_v63, %v4032_v44 }
 0xd9b   :  { %v6409_v28 = vpop.f32.mrf.mxu0  ;;  %6468 = vmatprep.mubr.msk.f32.mxu1 %vm499_vm2, %v4064_v33 }
 0xd9c   :  { %v3929_v51 = vadd.f32 %v6409_v28, %v9133_v57  ;;  %6469 = vmatmul.mubr.msk.f32.gmra.mxu1 %vm499_vm2, %v4065_v26 }
 0xd9d   :  { %v3923_v18 = vpop.f32.mrf.mxu0 }
 0xd9e   :  { %v3924_v58 = vadd.f32 %v9133_v57, %v3923_v18  ;;  %v4035_v38 = vmul.f32 0.01, %v3929_v51  ;;  %vm4003_vm13 = vcmp.gt.f32.partialorder %v3929_v51, 0.0 }
 0xda0   :  { %vm4002_vm14 = vcmp.gt.f32.partialorder %v3924_v58, 0.0  ;;  %v4034_v10 = vmul.f32 0.01, %v3924_v58  ;;  %v4067_v27 = vsel %vm4003_vm13, %v3929_v51, %v4035_v38 }
 0xda2   :  { %v4066_v39 = vsel %vm4002_vm14, %v3924_v58, %v4034_v10 }
 0xda3   :  { %v6412_v12 = vpop.f32.mrf.mxu0  ;;  %6471 = vmatprep.mubr.msk.f32.mxu1 %vm499_vm2, %v4066_v39 }
 0xda4   :  { %v3939_v25 = vadd.f32 %v6412_v12, %v9133_v57  ;;  %6472 = vmatmul.mubr.msk.f32.gmra.mxu1 %vm499_vm2, %v4067_v27 }
 0xda5   :  { %v3933_v45 = vpop.f32.mrf.mxu0 }
 0xda6   :  { %v3934_v53 = vadd.f32 %v9133_v57, %v3933_v45  ;;  %v4037_v46 = vmul.f32 0.01, %v3939_v25  ;;  %vm4005_vm15 = vcmp.gt.f32.partialorder %v3939_v25, 0.0 }
 0xda8   :  { %vm4004_vm3 = vcmp.gt.f32.partialorder %v3934_v53, 0.0  ;;  %v4036_v4 = vmul.f32 0.01, %v3934_v53  ;;  %v4069_v8 = vsel %vm4005_vm15, %v3939_v25, %v4037_v46 }
 0xdaa   :  { %v4068_v29 = vsel %vm4004_vm3, %v3934_v53, %v4036_v4 }
 0xdab   :  { %6474 = vmatprep.mubr.msk.f32.mxu1 %vm499_vm2, %v4068_v29 }
 0xdac   :  { %6475 = vmatmul.mubr.msk.f32.gmra.mxu1 %vm499_vm2, %v4069_v8 }
 0xdae   :  { %v6415_v56 = vpop.f32.mrf.mxu0 }
 0xdaf   :  { %v3949_v54 = vadd.f32 %v6415_v56, %v9133_v57 }
 0xdb0   :  { %v3943_v63 = vpop.f32.mrf.mxu0 }
 0xdb1   :  { %v3944_v20 = vadd.f32 %v9133_v57, %v3943_v63  ;;  %v4039_v44 = vmul.f32 0.01, %v3949_v54  ;;  %vm4007_vm4 = vcmp.gt.f32.partialorder %v3949_v54, 0.0 }
 0xdb3   :  { %vm4006_vm5 = vcmp.gt.f32.partialorder %v3944_v20, 0.0  ;;  %v4038_v33 = vmul.f32 0.01, %v3944_v20  ;;  %v4071_v28 = vsel %vm4007_vm4, %v3949_v54, %v4039_v44 }
 0xdb5   :  { %v4070_v26 = vsel %vm4006_vm5, %v3944_v20, %v4038_v33 }
 0xdb6   :  { %v6418_v51 = vpop.f32.mrf.mxu0  ;;  %6477 = vmatprep.mubr.msk.f32.mxu1 %vm499_vm2, %v4070_v26 }
 0xdb7   :  { %v3959_v18 = vadd.f32 %v6418_v51, %v9133_v57  ;;  %6478 = vmatmul.mubr.msk.f32.gmra.mxu1 %vm499_vm2, %v4071_v28 }
 0xdb8   :  { %v3953_v58 = vpop.f32.mrf.mxu0 }
 0xdb9   :  { %v3954_v38 = vadd.f32 %v9133_v57, %v3953_v58  ;;  %v4041_v10 = vmul.f32 0.01, %v3959_v18  ;;  %vm4009_vm6 = vcmp.gt.f32.partialorder %v3959_v18, 0.0 }
 0xdbb   :  { %vm4008_vm7 = vcmp.gt.f32.partialorder %v3954_v38, 0.0  ;;  %v4040_v39 = vmul.f32 0.01, %v3954_v38  ;;  %v4073_v12 = vsel %vm4009_vm6, %v3959_v18, %v4041_v10  ;;  %v9202_v18 = vld [vmem:[%s10210_s4 + $0x3] ss:$0 sm:$0xff] }
 0xdbd   :  { %v4072_v27 = vsel %vm4008_vm7, %v3954_v38, %v4040_v39 }
 0xdbe   :  { %v6421_v25 = vpop.f32.mrf.mxu0  ;;  %6480 = vmatprep.mubr.msk.f32.mxu1 %vm499_vm2, %v4072_v27 }
 0xdbf   :  { %v3969_v45 = vadd.f32 %v6421_v25, %v9133_v57  ;;  %6481 = vmatmul.mubr.msk.f32.gmra.mxu1 %vm499_vm2, %v4073_v12 }
 0xdc0   :  { %v3963_v53 = vpop.f32.mrf.mxu0 }
 0xdc1   :  { %v3964_v46 = vadd.f32 %v9133_v57, %v3963_v53  ;;  %v4043_v4 = vmul.f32 0.01, %v3969_v45  ;;  %vm4011_vm0 = vcmp.gt.f32.partialorder %v3969_v45, 0.0 }
 0xdc3   :  { %vm4010_vm8 = vcmp.gt.f32.partialorder %v3964_v46, 0.0  ;;  %v4042_v29 = vmul.f32 0.01, %v3964_v46  ;;  %v4075_v56 = vsel %vm4011_vm0, %v3969_v45, %v4043_v4 }
 0xdc5   :  { %v4074_v8 = vsel %vm4010_vm8, %v3964_v46, %v4042_v29  ;;  %v9220_v46 = vpop.permute.xlu0 %5106 }
 0xdc6   :  { %v6424_v54 = vpop.f32.mrf.mxu0  ;;  %6483 = vmatprep.mubr.msk.f32.mxu1 %vm499_vm2, %v4074_v8 }
 0xdc7   :  { %v3979_v63 = vadd.f32 %v6424_v54, %v9133_v57  ;;  %6484 = vmatmul.mubr.msk.f32.gmra.mxu1 %vm499_vm2, %v4075_v56 }
 0xdc8   :  { %v3973_v20 = vpop.f32.mrf.mxu0 }
 0xdc9   :  { %v3974_v44 = vadd.f32 %v9133_v57, %v3973_v20  ;;  %v4045_v33 = vmul.f32 0.01, %v3979_v63  ;;  %vm4013_vm9 = vcmp.gt.f32.partialorder %v3979_v63, 0.0  ;;  %v9227_v29 = vpop.xlane.xlu0 %5143 }
 0xdcb   :  { %vm4012_vm10 = vcmp.gt.f32.partialorder %v3974_v44, 0.0  ;;  %v4044_v26 = vmul.f32 0.01, %v3974_v44  ;;  %v4077_v51 = vsel %vm4013_vm9, %v3979_v63, %v4045_v33 }
 0xdcd   :  { %v4076_v28 = vsel %vm4012_vm10, %v3974_v44, %v4044_v26  ;;  %v9235_v54 = vpop.xlane.xlu0 %5152 }
 0xdce   :  { %6486 = vmatprep.mubr.msk.f32.mxu1 %vm499_vm2, %v4076_v28  ;;  %10421 = vst [vmem:[#allocation34_spill] sm:$0xff] %v9235_v54  ;;  %v9247_v28 = vpop.permute.xlu1 %5108 }
 0xdcf   :  { %6487 = vmatmul.mubr.msk.f32.gmra.mxu1 %vm499_vm2, %v4077_v51  ;;  %vm4821_vm2 = vcmask 64512  }
 0xdd1   :  { %v9239_v20 = vpop.xlane.xlu0 %5149 }
 0xdd5   :  { %v9243_v33 = vpop.xlane.xlu0 %5158 }
 0xdd6   :  { %10422 = vst [vmem:[#allocation108_spill] sm:$0xff] %v9243_v33  ;;  %v10439_v33 = vld [vmem:[#allocation45_spill] sm:$0xff] }
 0xdd9   :  { %v9245_v26 = vpop.xlane.xlu0 %5164 }
 0xdda   :  { %10423 = vst [vmem:[#allocation109_spill] sm:$0xff] %v9245_v26 }
 0xe10   :  { %v6443_v58 = vpop.f32.mrf.mxu1 }
 0xe11   :  { %v4252_v38 = vadd.f32 %v6443_v58, %v9202_v18  ;;  %v9249_v58 = vpop.xlane.xlu0 %5170 }
 0xe12   :  { %v4246_v10 = vpop.f32.mrf.mxu1  ;;  %10424 = vst [vmem:[#allocation36_spill] sm:$0xff] %v9249_v58 }
 0xe13   :  { %4535 = vrot.lane.b32.xlu0 %v4252_v38, %s6824_s18  ;;  %v4664_v57 = vsel %vm71_vm1, %v4252_v38, 0.0  ;;  %v9208_v39 = vadd.f32 %v9202_v18, %v4246_v10  ;;  %v9254_v10 = vpop.xlane.xlu1 %5146 }
 0xe14   :  { %4665 = vadd.xlane.f32.xlu1 %v4664_v57  ;;  %10425 = vst [vmem:[#allocation110_spill] sm:$0xff] %v9254_v10 }
 0xe15   :  { %v4661_v8 = vsel %vm71_vm1, %v9208_v39, 0.0 }
 0xe18   :  { %v6446_v27 = vpop.f32.mrf.mxu1 }
 0xe19   :  { %v9213_v12 = vadd.f32 %v6446_v27, %v9202_v18 }
 0xe1a   :  { %v4256_v25 = vpop.f32.mrf.mxu1 }
 0xe1b   :  { %v9218_v45 = vadd.f32 %v9202_v18, %v4256_v25  ;;  %v4670_v56 = vsel %vm71_vm1, %v9213_v12, 0.0  ;;  %v9260_v25 = vpop.xlane.xlu0 %5176 }
 0xe1c   :  { %10426 = vst [vmem:[#allocation37_spill] sm:$0xff] %v9260_v25  ;;  %v4407_v25 = vmul.f32 1.442695, %v4252_v38 }
 0xe1d   :  { %v4667_v63 = vsel %vm71_vm1, %v9218_v45, 0.0 }
 0xe1e   :  { %6699 = vpow2.f32 %v4407_v25 }
 0xe24   :  { %v6449_v53 = vpop.f32.mrf.mxu1 }
 0xe25   :  { %4533 = vrot.lane.b32.xlu1 %v9208_v39, %s6824_s18  ;;  %v9225_v4 = vadd.f32 %v6449_v53, %v9202_v18  ;;  %v9262_v53 = vpop.xlane.xlu1 %5155 }
 0xe26   :  { %v4266_v51 = vpop.f32.mrf.mxu1 }
 0xe27   :  { %v4676_v44 = vsel %vm71_vm1, %v9225_v4, 0.0  ;;  %v9252_v57 = vadd.f32 %v9202_v18, %v4266_v51 }
 0xe29   :  { %4539 = vrot.lane.b32.xlu1 %v9213_v12, %s6824_s18  ;;  %v4673_v27 = vsel %vm71_vm1, %v9252_v57, 0.0 }
 0xe2d   :  { %4537 = vrot.lane.b32.xlu1 %v9218_v45, %s6824_s18 }
 0xe31   :  { %4543 = vrot.lane.b32.xlu1 %v9225_v4, %s6824_s18 }
 0xe32   :  { %4662 = vadd.xlane.f32.xlu0 %v4661_v8  ;;  %v9264_v8 = vpop.xlane.xlu0 %5182 }
 0xe33   :  { %10427 = vst [vmem:[#allocation38_spill] sm:$0xff] %v9264_v8 }
 0xe36   :  { %4671 = vadd.xlane.f32.xlu0 %v4670_v56  ;;  %v9266_v56 = vpop.xlane.xlu1 %5161 }
 0xe3a   :  { %4668 = vadd.xlane.f32.xlu0 %v4667_v63  ;;  %v9268_v63 = vpop.xlane.xlu0 %5188  ;;  %v9270_v51 = vpop.xlane.xlu1 %5167 }
 0xe3b   :  { %10428 = vst [vmem:[#allocation39_spill] sm:$0xff] %v9268_v63 }
 0xe3e   :  { %4677 = vadd.xlane.f32.xlu0 %v4676_v44  ;;  %v6452_v44 = vpop.f32.mrf.mxu1  ;;  %v9277_v60 = vpop.xlane.xlu0 %5194 }
 0xe3f   :  { %v9273_v35 = vadd.f32 %v6452_v44, %v9202_v18  ;;  %10429 = vst [vmem:[#allocation111_spill] sm:$0xff] %v9277_v60 }
 0xe41   :  { %v4682_v63 = vsel %vm71_vm1, %v9273_v35, 0.0 }
 0xe42   :  { %v9281_v22 = vpop.xlane.xlu0 %5200 }
 0xe43   :  { %10430 = vst [vmem:[#allocation40_spill] sm:$0xff] %v9281_v22  ;;  %v6700_v22 = vpop.eup %6699 }
 0xe44   :  { %v4470_v6 = vmul.f32 %v6700_v22, %v10439_v33  ;;  %v4411_v33 = vmul.f32 1.442695, %v9213_v12 }
 0xe46   :  { %v9285_v23 = vpop.xlane.xlu0 %5206 }
 0xe47   :  { %10431 = vst [vmem:[#allocation41_spill] sm:$0xff] %v9285_v23  ;;  %v4276_v23 = vpop.f32.mrf.mxu1 }
 0xe48   :  { %v9305_v25 = vadd.f32 %v9202_v18, %v4276_v23 }
 0xe4a   :  { %v9291_v58 = vpop.xlane.xlu0 %5212  ;;  %v4679_v23 = vsel %vm71_vm1, %v9305_v25, 0.0 }
 0xe4b   :  { %10433 = vst [vmem:[#allocation42_spill] sm:$0xff] %v9291_v58 }
 0xe4e   :  { %v9293_v1 = vpop.xlane.xlu0 %5218 }
 0xe4f   :  { %10434 = vst [vmem:[#allocation143_spill] sm:$0xff] %v9293_v1 }
 0xe52   :  { %v9297_v26 = vpop.xlane.xlu0 %5224 }
 0xe53   :  { %10436 = vst [vmem:[#allocation145_spill] sm:$0xff] %v9297_v26 }
 0xe54   :  { %4541 = vrot.lane.b32.xlu0 %v9252_v57, %s6824_s18 }
 0xe55   :  { %4674 = vadd.xlane.f32.xlu1 %v4673_v27  ;;  %v9279_v27 = vpop.xlane.xlu1 %5173 }
 0xe56   :  { %v9301_v38 = vpop.xlane.xlu0 %5230 }
 0xe57   :  { %10438 = vst [vmem:[#allocation147_spill] sm:$0xff] %v9301_v38  ;;  %v6455_v38 = vpop.f32.mrf.mxu1 }
 0xe59   :  { %v9283_v8 = vpop.xlane.xlu1 %5179 }
 0xe5d   :  { %v9289_v44 = vpop.xlane.xlu1 %5185 }
 0xe5e   :  { %10432 = vst [vmem:[#allocation119_spill] sm:$0xff] %v9289_v44 }
 0xe61   :  { %v9295_v60 = vpop.xlane.xlu1 %5191 }
 0xe62   :  { %10435 = vst [vmem:[#allocation144_spill] sm:$0xff] %v9295_v60 }
 0xe65   :  { %v9299_v32 = vpop.xlane.xlu1 %5197 }
 0xe66   :  { %4547 = vrot.lane.b32.xlu1 %v9273_v35, %s6824_s18  ;;  %10437 = vst [vmem:[#allocation146_spill] sm:$0xff] %v9299_v32 }
 0xe69   :  { %v9309_v1 = vpop.xlane.xlu1 %5203 }
 0xe6a   :  { %10440 = vst [vmem:[#allocation45_spill] sm:$0xff] %v9309_v1  ;;  %v4415_v1 = vmul.f32 1.442695, %v9225_v4 }
 0xe6d   :  { %v9323_v22 = vpop.xlane.xlu1 %5209 }
 0xe6e   :  { %10441 = vst [vmem:[#allocation148_spill] sm:$0xff] %v9323_v22 }
 0xe73   :  { %4683 = vadd.xlane.f32.xlu0 %v4682_v63 }
 0xe85   :  { %v4536_v63 = vpop.permute.xlu0 %4535 }
 0xe86   :  { %v9307_v58 = vadd.f32 %v4536_v63, %v4470_v6  ;;  %v4405_v6 = vmul.f32 1.442695, %v9208_v39  ;;  %v4409_v63 = vmul.f32 1.442695, %v9218_v45  ;;  %v9335_v39 = vadd.f32 %v6455_v38, %v9202_v18 }
 0xe88   :  { %v4790_v26 = vsel %vm71_vm1, %v9307_v58, %v8692_v30  ;;  %6701 = vpow2.f32 %v4405_v6  ;;  %v9326_v30 = vpop.xlane.xlu1 %5215  ;;  %v10446_v6 = vld [vmem:[#allocation44_spill] sm:$0xff] }
 0xe89   :  { %4823 = vst.msk [vmem:[%s10211_s5 + $0x8] sm:$0xff] %vm4821_vm2, %v4790_v26  ;;  %4545 = vrot.lane.b32.xlu0 %v9305_v25, %s6824_s18  ;;  %10442 = vst [vmem:[#allocation149_spill] sm:$0xff] %v9326_v30  ;;  %6703 = vpow2.f32 %v4411_v33 }
 0xe8a   :  { %4680 = vadd.xlane.f32.xlu1 %v4679_v23  ;;  %6705 = vpow2.f32 %v4409_v63  ;;  %v10447_v63 = vld [vmem:[#allocation49_spill] sm:$0xff] }
 0xe8b   :  { %6707 = vpow2.f32 %v4415_v1 }
 0xe8c   :  { %v9329_v26 = vpop.xlane.xlu1 %5221 }
 0xe8d   :  { %10443 = vst [vmem:[#allocation150_spill] sm:$0xff] %v9329_v26 }
 0xe90   :  { %v9332_v32 = vpop.xlane.xlu1 %5227 }
 0xe91   :  { %10444 = vst [vmem:[#allocation151_spill] sm:$0xff] %v9332_v32 }
 0xe95   :  { %v6702_v12 = vpop.eup %6701 }
 0xe96   :  { %v4469_v45 = vmul.f32 %v6702_v12, %v10446_v6  ;;  %v6704_v33 = vpop.eup %6703  ;;  %v4688_v12 = vsel %vm71_vm1, %v9335_v39, 0.0 }
 0xe97   :  { %v4472_v38 = vmul.f32 %v6704_v33, %v10447_v63  ;;  %v6706_v32 = vpop.eup %6705 }
 0xe9b   :  { %4551 = vrot.lane.b32.xlu1 %v9335_v39, %s6824_s18 }
 0xe9d   :  { %v9339_v23 = vpop.xlane.xlu1 %4665 }
 0xe9e   :  { %10445 = vst [vmem:[#allocation152_spill] sm:$0xff] %v9339_v23 }
 0xea1   :  { %v4534_v26 = vpop.permute.xlu1 %4533 }
 0xea2   :  { %v9342_v30 = vadd.f32 %v4534_v26, %v4469_v45  ;;  %v6708_v45 = vpop.eup %6707 }
 0xea4   :  { %v4789_v4 = vsel %vm71_vm1, %v9342_v30, %v8749_v34  ;;  %v10448_v34 = vld [vmem:[#allocation48_spill] sm:$0xff] }
 0xea5   :  { %4822 = vst.msk [vmem:[%s10211_s5] sm:$0xff] %vm4821_vm2, %v4789_v4  ;;  %v4540_v1 = vpop.permute.xlu1 %4539  ;;  %v4471_v6 = vmul.f32 %v6706_v32, %v10448_v34 }
 0xea6   :  { %v9352_v22 = vadd.f32 %v4540_v1, %v4472_v38  ;;  %v10449_v38 = vld [vmem:[#allocation53_spill] sm:$0xff] }
 0xea7   :  { %v4474_v1 = vmul.f32 %v6708_v45, %v10449_v38 }
 0xea8   :  { %v4792_v26 = vsel %vm71_vm1, %v9352_v22, %v8707_v11  ;;  %4689 = vadd.xlane.f32.xlu0 %v4688_v12 }
 0xea9   :  { %4825 = vst.msk [vmem:[%s10211_s5 + $0x18] sm:$0xff] %vm4821_vm2, %v4792_v26  ;;  %v4538_v33 = vpop.permute.xlu1 %4537  ;;  %v4286_v26 = vpop.f32.mrf.mxu1 }
 0xeaa   :  { %v9364_v4 = vadd.f32 %v4538_v33, %v4471_v6  ;;  %v4287_v34 = vadd.f32 %v9202_v18, %v4286_v26  ;;  %v4419_v26 = vmul.f32 1.442695, %v9273_v35  ;;  %v10453_v35 = vld [vmem:[#allocation57_spill] sm:$0xff] }
 0xeac   :  { %v4791_v63 = vsel %vm71_vm1, %v9364_v4, %v8776_v2  ;;  %v4413_v2 = vmul.f32 1.442695, %v9252_v57  ;;  %v4685_v45 = vsel %vm71_vm1, %v4287_v34, 0.0 }
 0xead   :  { %4824 = vst.msk [vmem:[%s10211_s5 + $0x10] sm:$0xff] %vm4821_vm2, %v4791_v63  ;;  %v4544_v11 = vpop.permute.xlu1 %4543 }
 0xeae   :  { %v9374_v32 = vadd.f32 %v4544_v11, %v4474_v1  ;;  %6709 = vpow2.f32 %v4413_v2  ;;  %v10452_v1 = vld [vmem:[#allocation52_spill] sm:$0xff]  ;;  %v6458_v11 = vpop.f32.mrf.mxu1 }
 0xeaf   :  { %v4302_v60 = vadd.f32 %v6458_v11, %v9202_v18  ;;  %6711 = vpow2.f32 %v4419_v26  ;;  %v4417_v26 = vmul.f32 1.442695, %v9305_v25  ;;  %v4423_v25 = vmul.f32 1.442695, %v9335_v39  ;;  %v10456_v39 = vld [vmem:[#allocation61_spill] sm:$0xff] }
 0xeb0   :  { %v4794_v12 = vsel %vm71_vm1, %v9374_v32, %v8713_v40 }
 0xeb1   :  { %4827 = vst.msk [vmem:[%s10211_s5 + $0x28] sm:$0xff] %vm4821_vm2, %v4794_v12  ;;  %6713 = vpow2.f32 %v4417_v26 }
 0xeb2   :  { %6715 = vpow2.f32 %v4423_v25 }
 0xebb   :  { %v9385_v6 = vpop.xlane.xlu0 %4662  ;;  %v6710_v63 = vpop.eup %6709 }
 0xebc   :  { %v4473_v57 = vmul.f32 %v6710_v63, %v10452_v1  ;;  %v4694_v63 = vsel %vm71_vm1, %v4302_v60, 0.0  ;;  %v6712_v1 = vpop.eup %6711 }
 0xebd   :  { %v4476_v11 = vmul.f32 %v6712_v1, %v10453_v35 }
 0xebe   :  { %4549 = vrot.lane.b32.xlu0 %v4287_v34, %s6824_s18  ;;  %v6714_v35 = vpop.eup %6713 }
 0xebf   :  { %4686 = vadd.xlane.f32.xlu1 %v4685_v45  ;;  %v9389_v33 = vpop.xlane.xlu0 %4671 }
 0xec0   :  { %10450 = vst [vmem:[#allocation44_spill] sm:$0xff] %v9389_v33 }
 0xec3   :  { %v9391_v40 = vpop.xlane.xlu0 %4668 }
 0xec7   :  { %v9393_v38 = vpop.xlane.xlu0 %4677 }
 0xec8   :  { %10451 = vst [vmem:[#allocation49_spill] sm:$0xff] %v9393_v38 }
 0xecb   :  { %v4542_v12 = vpop.permute.xlu0 %4541 }
 0xecc   :  { %v9396_v2 = vadd.f32 %v4542_v12, %v4473_v57 }
 0xece   :  { %v4793_v45 = vsel %vm71_vm1, %v9396_v2, %v8721_v48 }
 0xecf   :  { %4826 = vst.msk [vmem:[%s10211_s5 + $0x20] sm:$0xff] %vm4821_vm2, %v4793_v45  ;;  %v4296_v45 = vpop.f32.mrf.mxu1 }
 0xed0   :  { %4555 = vrot.lane.b32.xlu1 %v4302_v60, %s6824_s18 }
 0xed1   :  { %v6461_v33 = vpop.f32.mrf.mxu1 }
 0xed3   :  { %v4306_v25 = vpop.f32.mrf.mxu1 }
 0xedd   :  { %4695 = vadd.xlane.f32.xlu0 %v4694_v63  ;;  %v4297_v63 = vadd.f32 %v9202_v18, %v4296_v45 }
 0xede   :  { %v9409_v57 = vpop.xlane.xlu1 %4674 }
 0xedf   :  { %v4691_v1 = vsel %vm71_vm1, %v4297_v63, 0.0 }
 0xee2   :  { %v4548_v12 = vpop.permute.xlu1 %4547 }
 0xee3   :  { %v9412_v38 = vadd.f32 %v4548_v12, %v4476_v11 }
 0xee5   :  { %v4796_v48 = vsel %vm71_vm1, %v9412_v38, %v8724_v41  ;;  %v10455_v41 = vld [vmem:[#allocation56_spill] sm:$0xff] }
 0xee6   :  { %4829 = vst.msk [vmem:[%s10211_s5 + $0x38] sm:$0xff] %vm4821_vm2, %v4796_v48  ;;  %v4475_v12 = vmul.f32 %v6714_v35, %v10455_v41  ;;  %v4312_v48 = vadd.f32 %v6461_v33, %v9202_v18 }
 0xee8   :  { %v4700_v45 = vsel %vm71_vm1, %v4312_v48, 0.0 }
 0xef3   :  { %4553 = vrot.lane.b32.xlu0 %v4297_v63, %s6824_s18 }
 0xef4   :  { %4692 = vadd.xlane.f32.xlu1 %v4691_v1 }
 0xefc   :  { %v9425_v11 = vpop.xlane.xlu0 %4683 }
 0xefd   :  { %10454 = vst [vmem:[#allocation48_spill] sm:$0xff] %v9425_v11 }
 0xf00   :  { %v4546_v54 = vpop.permute.xlu0 %4545 }
 0xf01   :  { %v9428_v23 = vadd.f32 %v4546_v54, %v4475_v12  ;;  %v6716_v54 = vpop.eup %6715  ;;  %v4421_v12 = vmul.f32 1.442695, %v4287_v34 }
 0xf02   :  { %v4478_v33 = vmul.f32 %v6716_v54, %v10456_v39 }
 0xf03   :  { %v4795_v26 = vsel %vm71_vm1, %v9428_v23, %v8742_v37  ;;  %6717 = vpow2.f32 %v4421_v12 }
 0xf04   :  { %4828 = vst.msk [vmem:[%s10211_s5 + $0x30] sm:$0xff] %vm4821_vm2, %v4795_v26  ;;  %v4307_v26 = vadd.f32 %v9202_v18, %v4306_v25 }
 0xf05   :  { %4559 = vrot.lane.b32.xlu1 %v4312_v48, %s6824_s18 }
 0xf10   :  { %v6718_v54 = vpop.eup %6717 }
 0xf12   :  { %4701 = vadd.xlane.f32.xlu0 %v4700_v45  ;;  %v4697_v45 = vsel %vm71_vm1, %v4307_v26, 0.0 }
 0xf13   :  { %v9441_v1 = vpop.xlane.xlu1 %4680 }
 0xf17   :  { %v4552_v35 = vpop.permute.xlu1 %4551 }
 0xf18   :  { %v9444_v41 = vadd.f32 %v4552_v35, %v4478_v33  ;;  %v10458_v33 = vld [vmem:[#allocation60_spill] sm:$0xff]  ;;  %v6464_v35 = vpop.f32.mrf.mxu1 }
 0xf19   :  { %v4322_v34 = vadd.f32 %v6464_v35, %v9202_v18  ;;  %v4425_v35 = vmul.f32 1.442695, %v4297_v63 }
 0xf1a   :  { %v4798_v37 = vsel %vm71_vm1, %v9444_v41, %v8745_v0  ;;  %v4477_v0 = vmul.f32 %v6718_v54, %v10458_v33 }
 0xf1b   :  { %4831 = vst.msk [vmem:[%s10211_s5 + $0x48] sm:$0xff] %vm4821_vm2, %v4798_v37  ;;  %v4427_v37 = vmul.f32 1.442695, %v4302_v60  ;;  %v4706_v25 = vsel %vm71_vm1, %v4322_v34, 0.0  ;;  %v10459_v60 = vld [vmem:[#allocation65_spill] sm:$0xff] }
 0xf1d   :  { %6719 = vpow2.f32 %v4427_v37  ;;  %v4316_v37 = vpop.f32.mrf.mxu1 }
 0xf1e   :  { %6721 = vpow2.f32 %v4425_v35 }
 0xf28   :  { %4557 = vrot.lane.b32.xlu0 %v4307_v26, %s6824_s18 }
 0xf29   :  { %4698 = vadd.xlane.f32.xlu1 %v4697_v45 }
 0xf31   :  { %v9456_v39 = vpop.xlane.xlu0 %4689 }
 0xf32   :  { %10457 = vst [vmem:[#allocation53_spill] sm:$0xff] %v9456_v39 }
 0xf35   :  { %v4550_v11 = vpop.permute.xlu0 %4549 }
 0xf36   :  { %v9459_v44 = vadd.f32 %v4550_v11, %v4477_v0  ;;  %v6720_v11 = vpop.eup %6719 }
 0xf37   :  { %v4480_v54 = vmul.f32 %v6720_v11, %v10459_v60  ;;  %v6722_v11 = vpop.eup %6721 }
 0xf38   :  { %v4797_v12 = vsel %vm71_vm1, %v9459_v44, %v8769_v62 }
 0xf39   :  { %4830 = vst.msk [vmem:[%s10211_s5 + $0x40] sm:$0xff] %vm4821_vm2, %v4797_v12  ;;  %v4317_v12 = vadd.f32 %v9202_v18, %v4316_v37 }
 0xf3a   :  { %4563 = vrot.lane.b32.xlu1 %v4322_v34, %s6824_s18 }
 0xf47   :  { %4707 = vadd.xlane.f32.xlu0 %v4706_v25  ;;  %v4703_v25 = vsel %vm71_vm1, %v4317_v12, 0.0 }
 0xf48   :  { %v9471_v45 = vpop.xlane.xlu1 %4686 }
 0xf4c   :  { %v4556_v33 = vpop.permute.xlu1 %4555 }
 0xf4d   :  { %v9474_v0 = vadd.f32 %v4556_v33, %v4480_v54  ;;  %v10461_v54 = vld [vmem:[#allocation64_spill] sm:$0xff]  ;;  %v6467_v33 = vpop.f32.mrf.mxu1 }
 0xf4e   :  { %v4332_v63 = vadd.f32 %v6467_v33, %v9202_v18  ;;  %v4429_v33 = vmul.f32 1.442695, %v4307_v26 }
 0xf4f   :  { %v4800_v62 = vsel %vm71_vm1, %v9474_v0, %v8772_v9  ;;  %v4479_v9 = vmul.f32 %v6722_v11, %v10461_v54 }
 0xf50   :  { %4833 = vst.msk [vmem:[%s10211_s5 + $0x58] sm:$0xff] %vm4821_vm2, %v4800_v62  ;;  %v4431_v62 = vmul.f32 1.442695, %v4312_v48  ;;  %v4712_v37 = vsel %vm71_vm1, %v4332_v63, 0.0  ;;  %v10462_v48 = vld [vmem:[#allocation69_spill] sm:$0xff] }
 0xf52   :  { %6723 = vpow2.f32 %v4431_v62  ;;  %v4326_v62 = vpop.f32.mrf.mxu1 }
 0xf53   :  { %6725 = vpow2.f32 %v4429_v33 }
 0xf5d   :  { %4561 = vrot.lane.b32.xlu0 %v4317_v12, %s6824_s18 }
 0xf5e   :  { %4704 = vadd.xlane.f32.xlu1 %v4703_v25 }
 0xf66   :  { %v9486_v60 = vpop.xlane.xlu0 %4695 }
 0xf67   :  { %10460 = vst [vmem:[#allocation52_spill] sm:$0xff] %v9486_v60 }
 0xf6a   :  { %v4554_v39 = vpop.permute.xlu0 %4553 }
 0xf6b   :  { %v9489_v10 = vadd.f32 %v4554_v39, %v4479_v9  ;;  %v6724_v39 = vpop.eup %6723 }
 0xf6c   :  { %v4482_v11 = vmul.f32 %v6724_v39, %v10462_v48  ;;  %v6726_v39 = vpop.eup %6725 }
 0xf6d   :  { %v4799_v35 = vsel %vm71_vm1, %v9489_v10, %v8794_v55 }
 0xf6e   :  { %4832 = vst.msk [vmem:[%s10211_s5 + $0x50] sm:$0xff] %vm4821_vm2, %v4799_v35  ;;  %v4327_v35 = vadd.f32 %v9202_v18, %v4326_v62 }
 0xf6f   :  { %4567 = vrot.lane.b32.xlu1 %v4332_v63, %s6824_s18 }
 0xf7c   :  { %4713 = vadd.xlane.f32.xlu0 %v4712_v37  ;;  %v4709_v37 = vsel %vm71_vm1, %v4327_v35, 0.0 }
 0xf7d   :  { %v9501_v25 = vpop.xlane.xlu1 %4692 }
 0xf81   :  { %v4560_v54 = vpop.permute.xlu1 %4559 }
 0xf82   :  { %v9504_v9 = vadd.f32 %v4560_v54, %v4482_v11  ;;  %v10464_v11 = vld [vmem:[#allocation68_spill] sm:$0xff]  ;;  %v6470_v54 = vpop.f32.mrf.mxu1 }
 0xf83   :  { %v4342_v26 = vadd.f32 %v6470_v54, %v9202_v18  ;;  %v4433_v54 = vmul.f32 1.442695, %v4317_v12 }
 0xf84   :  { %v4802_v55 = vsel %vm71_vm1, %v9504_v9, %v8797_v19  ;;  %v4481_v19 = vmul.f32 %v6726_v39, %v10464_v11 }
 0xf85   :  { %4835 = vst.msk [vmem:[%s10211_s5 + $0x68] sm:$0xff] %vm4821_vm2, %v4802_v55  ;;  %v4435_v55 = vmul.f32 1.442695, %v4322_v34  ;;  %v4718_v62 = vsel %vm71_vm1, %v4342_v26, 0.0  ;;  %v10466_v34 = vld [vmem:[#allocation73_spill] sm:$0xff] }
 0xf87   :  { %6727 = vpow2.f32 %v4435_v55  ;;  %v4336_v55 = vpop.f32.mrf.mxu1 }
 0xf88   :  { %6729 = vpow2.f32 %v4433_v54 }
 0xf92   :  { %4565 = vrot.lane.b32.xlu0 %v4327_v35, %s6824_s18 }
 0xf93   :  { %4710 = vadd.xlane.f32.xlu1 %v4709_v37 }
 0xf9b   :  { %v9516_v48 = vpop.xlane.xlu0 %4701 }
 0xf9c   :  { %10463 = vst [vmem:[#allocation57_spill] sm:$0xff] %v9516_v48 }
 0xf9f   :  { %v4558_v60 = vpop.permute.xlu0 %4557 }
 0xfa0   :  { %v9519_v31 = vadd.f32 %v4558_v60, %v4481_v19  ;;  %v6728_v60 = vpop.eup %6727 }
 0xfa1   :  { %v4484_v39 = vmul.f32 %v6728_v60, %v10466_v34  ;;  %v6730_v60 = vpop.eup %6729 }
 0xfa2   :  { %v4801_v33 = vsel %vm71_vm1, %v9519_v31, %v8815_v43 }
 0xfa3   :  { %4834 = vst.msk [vmem:[%s10211_s5 + $0x60] sm:$0xff] %vm4821_vm2, %v4801_v33  ;;  %v4337_v33 = vadd.f32 %v9202_v18, %v4336_v55 }
 0xfa4   :  { %4571 = vrot.lane.b32.xlu1 %v4342_v26, %s6824_s18 }
 0xfb1   :  { %4719 = vadd.xlane.f32.xlu0 %v4718_v62  ;;  %v4715_v62 = vsel %vm71_vm1, %v4337_v33, 0.0 }
 0xfb2   :  { %v9531_v37 = vpop.xlane.xlu1 %4698 }
 0xfb3   :  { %10465 = vst [vmem:[#allocation56_spill] sm:$0xff] %v9531_v37 }
 0xfb6   :  { %v4564_v11 = vpop.permute.xlu1 %4563 }
 0xfb7   :  { %v9534_v19 = vadd.f32 %v4564_v11, %v4484_v39  ;;  %v10468_v39 = vld [vmem:[#allocation72_spill] sm:$0xff]  ;;  %v6473_v11 = vpop.f32.mrf.mxu1 }
 0xfb8   :  { %v4352_v12 = vadd.f32 %v6473_v11, %v9202_v18  ;;  %v4437_v11 = vmul.f32 1.442695, %v4327_v35 }
 0xfb9   :  { %v4804_v43 = vsel %vm71_vm1, %v9534_v19, %v8818_v5  ;;  %v4483_v5 = vmul.f32 %v6730_v60, %v10468_v39 }
 0xfba   :  { %4837 = vst.msk [vmem:[%s10211_s5 + $0x78] sm:$0xff] %vm4821_vm2, %v4804_v43  ;;  %v4439_v43 = vmul.f32 1.442695, %v4332_v63  ;;  %v4724_v55 = vsel %vm71_vm1, %v4352_v12, 0.0  ;;  %v10470_v63 = vld [vmem:[#allocation77_spill] sm:$0xff] }
 0xfbc   :  { %6731 = vpow2.f32 %v4439_v43  ;;  %v4346_v43 = vpop.f32.mrf.mxu1 }
 0xfbd   :  { %6733 = vpow2.f32 %v4437_v11 }
 0xfc7   :  { %4569 = vrot.lane.b32.xlu0 %v4337_v33, %s6824_s18 }
 0xfc8   :  { %4716 = vadd.xlane.f32.xlu1 %v4715_v62 }
 0xfd0   :  { %v9546_v34 = vpop.xlane.xlu0 %4707 }
 0xfd1   :  { %10467 = vst [vmem:[#allocation61_spill] sm:$0xff] %v9546_v34 }
 0xfd4   :  { %v4562_v48 = vpop.permute.xlu0 %4561 }
 0xfd5   :  { %v9549_v37 = vadd.f32 %v4562_v48, %v4483_v5  ;;  %v6732_v48 = vpop.eup %6731 }
 0xfd6   :  { %v4486_v60 = vmul.f32 %v6732_v48, %v10470_v63  ;;  %v6734_v48 = vpop.eup %6733 }
 0xfd7   :  { %v4803_v54 = vsel %vm71_vm1, %v9549_v37, %v8833_v7 }
 0xfd8   :  { %4836 = vst.msk [vmem:[%s10211_s5 + $0x70] sm:$0xff] %vm4821_vm2, %v4803_v54  ;;  %v4347_v54 = vadd.f32 %v9202_v18, %v4346_v43 }
 0xfd9   :  { %4575 = vrot.lane.b32.xlu1 %v4352_v12, %s6824_s18 }
 0xfe6   :  { %4725 = vadd.xlane.f32.xlu0 %v4724_v55  ;;  %v4721_v55 = vsel %vm71_vm1, %v4347_v54, 0.0 }
 0xfe7   :  { %v9561_v62 = vpop.xlane.xlu1 %4704 }
 0xfe8   :  { %10469 = vst [vmem:[#allocation60_spill] sm:$0xff] %v9561_v62 }
 0xfeb   :  { %v4568_v39 = vpop.permute.xlu1 %4567 }
 0xfec   :  { %v9564_v5 = vadd.f32 %v4568_v39, %v4486_v60  ;;  %v10472_v60 = vld [vmem:[#allocation76_spill] sm:$0xff]  ;;  %v6476_v39 = vpop.f32.mrf.mxu1 }
 0xfed   :  { %v4362_v35 = vadd.f32 %v6476_v39, %v9202_v18  ;;  %v4441_v39 = vmul.f32 1.442695, %v4337_v33 }
 0xfee   :  { %v4806_v7 = vsel %vm71_vm1, %v9564_v5, %v8836_v16  ;;  %v4485_v16 = vmul.f32 %v6734_v48, %v10472_v60 }
 0xfef   :  { %4839 = vst.msk [vmem:[%s10211_s5 + $0x88] sm:$0xff] %vm4821_vm2, %v4806_v7  ;;  %v4443_v7 = vmul.f32 1.442695, %v4342_v26  ;;  %v4730_v43 = vsel %vm71_vm1, %v4362_v35, 0.0  ;;  %v10474_v26 = vld [vmem:[#allocation81_spill] sm:$0xff] }
 0xff1   :  { %6735 = vpow2.f32 %v4443_v7  ;;  %v4356_v7 = vpop.f32.mrf.mxu1 }
 0xff2   :  { %6737 = vpow2.f32 %v4441_v39 }
 0xffc   :  { %4573 = vrot.lane.b32.xlu0 %v4347_v54, %s6824_s18 }
 0xffd   :  { %4722 = vadd.xlane.f32.xlu1 %v4721_v55 }
0x1005   :  { %v9576_v63 = vpop.xlane.xlu0 %4713 }
0x1006   :  { %10471 = vst [vmem:[#allocation65_spill] sm:$0xff] %v9576_v63 }
0x1009   :  { %v4566_v34 = vpop.permute.xlu0 %4565 }
0x100a   :  { %v9579_v62 = vadd.f32 %v4566_v34, %v4485_v16  ;;  %v6736_v34 = vpop.eup %6735 }
0x100b   :  { %v4488_v48 = vmul.f32 %v6736_v34, %v10474_v26  ;;  %v6738_v34 = vpop.eup %6737 }
0x100c   :  { %v4805_v11 = vsel %vm71_vm1, %v9579_v62, %v8855_v47 }
0x100d   :  { %4838 = vst.msk [vmem:[%s10211_s5 + $0x80] sm:$0xff] %vm4821_vm2, %v4805_v11  ;;  %v4357_v11 = vadd.f32 %v9202_v18, %v4356_v7 }
0x100e   :  { %4579 = vrot.lane.b32.xlu1 %v4362_v35, %s6824_s18 }
0x101b   :  { %4731 = vadd.xlane.f32.xlu0 %v4730_v43  ;;  %v4727_v43 = vsel %vm71_vm1, %v4357_v11, 0.0 }
0x101c   :  { %v9591_v55 = vpop.xlane.xlu1 %4710 }
0x101d   :  { %10473 = vst [vmem:[#allocation64_spill] sm:$0xff] %v9591_v55 }
0x1020   :  { %v4572_v60 = vpop.permute.xlu1 %4571 }
0x1021   :  { %v9594_v16 = vadd.f32 %v4572_v60, %v4488_v48  ;;  %v10476_v48 = vld [vmem:[#allocation80_spill] sm:$0xff]  ;;  %v6479_v60 = vpop.f32.mrf.mxu1 }
0x1022   :  { %v4372_v33 = vadd.f32 %v6479_v60, %v9202_v18  ;;  %v4445_v60 = vmul.f32 1.442695, %v4347_v54 }
0x1023   :  { %v4808_v47 = vsel %vm71_vm1, %v9594_v16, %v8858_v42  ;;  %v4487_v42 = vmul.f32 %v6738_v34, %v10476_v48 }
0x1024   :  { %4841 = vst.msk [vmem:[%s10211_s5 + $0x98] sm:$0xff] %vm4821_vm2, %v4808_v47  ;;  %v4447_v47 = vmul.f32 1.442695, %v4352_v12  ;;  %v4736_v7 = vsel %vm71_vm1, %v4372_v33, 0.0  ;;  %v10478_v12 = vld [vmem:[#allocation85_spill] sm:$0xff] }
0x1026   :  { %6739 = vpow2.f32 %v4447_v47  ;;  %v4366_v47 = vpop.f32.mrf.mxu1 }
0x1027   :  { %6741 = vpow2.f32 %v4445_v60 }
0x1031   :  { %4577 = vrot.lane.b32.xlu0 %v4357_v11, %s6824_s18 }
0x1032   :  { %4728 = vadd.xlane.f32.xlu1 %v4727_v43 }
0x103a   :  { %v9606_v26 = vpop.xlane.xlu0 %4719 }
0x103b   :  { %10475 = vst [vmem:[#allocation69_spill] sm:$0xff] %v9606_v26 }
0x103e   :  { %v4570_v63 = vpop.permute.xlu0 %4569 }
0x103f   :  { %v9609_v55 = vadd.f32 %v4570_v63, %v4487_v42  ;;  %v6740_v63 = vpop.eup %6739 }
0x1040   :  { %v4490_v34 = vmul.f32 %v6740_v63, %v10478_v12  ;;  %v6742_v63 = vpop.eup %6741 }
0x1041   :  { %v4807_v39 = vsel %vm71_vm1, %v9609_v55, %v8877_v36 }
0x1042   :  { %4840 = vst.msk [vmem:[%s10211_s5 + $0x90] sm:$0xff] %vm4821_vm2, %v4807_v39  ;;  %v4367_v39 = vadd.f32 %v9202_v18, %v4366_v47 }
0x1043   :  { %4583 = vrot.lane.b32.xlu1 %v4372_v33, %s6824_s18 }
0x1050   :  { %4737 = vadd.xlane.f32.xlu0 %v4736_v7  ;;  %v4733_v7 = vsel %vm71_vm1, %v4367_v39, 0.0 }
0x1051   :  { %v9621_v43 = vpop.xlane.xlu1 %4716 }
0x1052   :  { %10477 = vst [vmem:[#allocation68_spill] sm:$0xff] %v9621_v43 }
0x1055   :  { %v4576_v48 = vpop.permute.xlu1 %4575 }
0x1056   :  { %v9624_v42 = vadd.f32 %v4576_v48, %v4490_v34  ;;  %v10480_v34 = vld [vmem:[#allocation84_spill] sm:$0xff]  ;;  %v6482_v48 = vpop.f32.mrf.mxu1 }
0x1057   :  { %v4382_v54 = vadd.f32 %v6482_v48, %v9202_v18  ;;  %v4449_v48 = vmul.f32 1.442695, %v4357_v11 }
0x1058   :  { %v4810_v36 = vsel %vm71_vm1, %v9624_v42, %v8880_v59  ;;  %v4489_v59 = vmul.f32 %v6742_v63, %v10480_v34 }
0x1059   :  { %4843 = vst.msk [vmem:[%s10211_s5 + $0xa8] sm:$0xff] %vm4821_vm2, %v4810_v36  ;;  %v4451_v36 = vmul.f32 1.442695, %v4362_v35  ;;  %v4742_v47 = vsel %vm71_vm1, %v4382_v54, 0.0  ;;  %v10482_v35 = vld [vmem:[#allocation89_spill] sm:$0xff] }
0x105b   :  { %6743 = vpow2.f32 %v4451_v36  ;;  %v4376_v36 = vpop.f32.mrf.mxu1 }
0x105c   :  { %6745 = vpow2.f32 %v4449_v48 }
0x1066   :  { %4581 = vrot.lane.b32.xlu0 %v4367_v39, %s6824_s18 }
0x1067   :  { %4734 = vadd.xlane.f32.xlu1 %v4733_v7 }
0x106f   :  { %v9636_v12 = vpop.xlane.xlu0 %4725 }
0x1070   :  { %10479 = vst [vmem:[#allocation73_spill] sm:$0xff] %v9636_v12 }
0x1073   :  { %v4574_v26 = vpop.permute.xlu0 %4573 }
0x1074   :  { %v9639_v43 = vadd.f32 %v4574_v26, %v4489_v59  ;;  %v6744_v26 = vpop.eup %6743 }
0x1075   :  { %v4492_v63 = vmul.f32 %v6744_v26, %v10482_v35  ;;  %v6746_v26 = vpop.eup %6745 }
0x1076   :  { %v4809_v60 = vsel %vm71_vm1, %v9639_v43, %v8895_v17 }
0x1077   :  { %4842 = vst.msk [vmem:[%s10211_s5 + $0xa0] sm:$0xff] %vm4821_vm2, %v4809_v60  ;;  %v4377_v60 = vadd.f32 %v9202_v18, %v4376_v36 }
0x1078   :  { %4587 = vrot.lane.b32.xlu1 %v4382_v54, %s6824_s18 }
0x1085   :  { %4743 = vadd.xlane.f32.xlu0 %v4742_v47  ;;  %v4739_v47 = vsel %vm71_vm1, %v4377_v60, 0.0 }
0x1086   :  { %v9651_v7 = vpop.xlane.xlu1 %4722 }
0x1087   :  { %10481 = vst [vmem:[#allocation72_spill] sm:$0xff] %v9651_v7 }
0x108a   :  { %v4580_v34 = vpop.permute.xlu1 %4579 }
0x108b   :  { %v9654_v59 = vadd.f32 %v4580_v34, %v4492_v63  ;;  %v10484_v63 = vld [vmem:[#allocation88_spill] sm:$0xff]  ;;  %v6485_v34 = vpop.f32.mrf.mxu1 }
0x108c   :  { %v9672_v11 = vadd.f32 %v6485_v34, %v9202_v18  ;;  %v4453_v34 = vmul.f32 1.442695, %v4367_v39 }
0x108d   :  { %v4812_v17 = vsel %vm71_vm1, %v9654_v59, %v8898_v50  ;;  %v4491_v50 = vmul.f32 %v6746_v26, %v10484_v63 }
0x108e   :  { %4845 = vst.msk [vmem:[%s10211_s5 + $0xb8] sm:$0xff] %vm4821_vm2, %v4812_v17  ;;  %v4455_v17 = vmul.f32 1.442695, %v4372_v33 }
0x1090   :  { %6747 = vpow2.f32 %v4455_v17  ;;  %v4386_v17 = vpop.f32.mrf.mxu1 }
0x1091   :  { %6749 = vpow2.f32 %v4453_v34  ;;  %v4459_v34 = vmul.f32 1.442695, %v4382_v54 }
0x1093   :  { %6751 = vpow2.f32 %v4459_v34 }
0x109b   :  { %4585 = vrot.lane.b32.xlu0 %v4377_v60, %s6824_s18 }
0x109c   :  { %4740 = vadd.xlane.f32.xlu1 %v4739_v47  ;;  %v10485_v47 = vld [vmem:[#allocation93_spill] sm:$0xff] }
0x109d   :  { %v6748_v33 = vpop.eup %6747 }
0x109e   :  { %v4494_v26 = vmul.f32 %v6748_v33, %v10485_v47  ;;  %v6750_v33 = vpop.eup %6749  ;;  %v10486_v47 = vld [vmem:[#allocation92_spill] sm:$0xff] }
0x10a0   :  { %v6752_v54 = vpop.eup %6751 }
0x10a4   :  { %v9666_v35 = vpop.xlane.xlu0 %4731 }
0x10a5   :  { %10483 = vst [vmem:[#allocation77_spill] sm:$0xff] %v9666_v35 }
0x10a8   :  { %v4578_v12 = vpop.permute.xlu0 %4577 }
0x10a9   :  { %v9669_v7 = vadd.f32 %v4578_v12, %v4491_v50  ;;  %v4748_v12 = vsel %vm71_vm1, %v9672_v11, 0.0 }
0x10ab   :  { %v4811_v48 = vsel %vm71_vm1, %v9669_v7, %v8931_v15 }
0x10ac   :  { %4844 = vst.msk [vmem:[%s10211_s5 + $0xb0] sm:$0xff] %vm4821_vm2, %v4811_v48  ;;  %v9698_v48 = vadd.f32 %v9202_v18, %v4386_v17 }
0x10ad   :  { %4591 = vrot.lane.b32.xlu1 %v9672_v11, %s6824_s18 }
0x10ba   :  { %4749 = vadd.xlane.f32.xlu0 %v4748_v12  ;;  %v4745_v12 = vsel %vm71_vm1, %v9698_v48, 0.0 }
0x10bb   :  { %v9685_v36 = vpop.xlane.xlu1 %4728 }
0x10bf   :  { %v4584_v63 = vpop.permute.xlu1 %4583 }
0x10c0   :  { %v9688_v15 = vadd.f32 %v4584_v63, %v4494_v26  ;;  %v4493_v26 = vmul.f32 %v6750_v33, %v10486_v47  ;;  %v6488_v63 = vpop.f32.mrf.mxu1  ;;  %v10487_v47 = vld [vmem:[#allocation97_spill] sm:$0xff] }
0x10c1   :  { %v9710_v17 = vadd.f32 %v6488_v63, %v9202_v18 }
0x10c2   :  { %v4814_v50 = vsel %vm71_vm1, %v9688_v15, %v8934_v14  ;;  %v4396_v34 = vpop.f32.mrf.mxu1 }
0x10c3   :  { %4847 = vst.msk [vmem:[%s10211_s5 + $0xc8] sm:$0xff] %vm4821_vm2, %v4814_v50 }
0x10d0   :  { %4589 = vrot.lane.b32.xlu0 %v9698_v48, %s6824_s18 }
0x10d1   :  { %4746 = vadd.xlane.f32.xlu1 %v4745_v12  ;;  %v4754_v12 = vsel %vm71_vm1, %v9710_v17, 0.0 }
0x10d9   :  { %v9704_v14 = vpop.xlane.xlu0 %4737 }
0x10dd   :  { %v4582_v50 = vpop.permute.xlu0 %4581 }
0x10de   :  { %v9707_v39 = vadd.f32 %v4582_v50, %v4493_v26  ;;  %v4496_v26 = vmul.f32 %v6752_v54, %v10487_v47  ;;  %v4457_v50 = vmul.f32 1.442695, %v4377_v60  ;;  %v4854_v54 = vmul.f32 %v9342_v30, %v9342_v30 }
0x10df   :  { %v4856_v47 = vmul.f32 %v9364_v4, %v9364_v4 }
0x10e0   :  { %v4813_v35 = vsel %vm71_vm1, %v9707_v39, %v8968_v61  ;;  %6753 = vpow2.f32 %v4457_v50  ;;  %v4886_v60 = vsel %vm71_vm1, %v4854_v54, 0.0 }
0x10e1   :  { %4846 = vst.msk [vmem:[%s10211_s5 + $0xc0] sm:$0xff] %vm4821_vm2, %v4813_v35 }
0x10e2   :  { %4595 = vrot.lane.b32.xlu1 %v9710_v17, %s6824_s18 }
0x10ef   :  { %4755 = vadd.xlane.f32.xlu0 %v4754_v12  ;;  %v9736_v12 = vadd.f32 %v9202_v18, %v4396_v34  ;;  %v4858_v18 = vmul.f32 %v9396_v2, %v9396_v2  ;;  %v10488_v34 = vld [vmem:[#allocation96_spill] sm:$0xff]  ;;  %v4862_v2 = vmul.f32 %v9459_v44, %v9459_v44  ;;  %v4866_v44 = vmul.f32 %v9519_v31, %v9519_v31 }
0x10f0   :  { %v9723_v33 = vpop.xlane.xlu1 %4734  ;;  %v4870_v31 = vmul.f32 %v9579_v62, %v9579_v62 }
0x10f1   :  { %v4898_v50 = vsel %vm71_vm1, %v4858_v18, 0.0  ;;  %v4855_v18 = vmul.f32 %v9307_v58, %v9307_v58 }
0x10f4   :  { %v4588_v63 = vpop.permute.xlu1 %4587 }
0x10f5   :  { %v9726_v61 = vadd.f32 %v4588_v63, %v4496_v26  ;;  %v4892_v26 = vsel %vm71_vm1, %v4856_v47, 0.0  ;;  %v6754_v63 = vpop.eup %6753 }
0x10f7   :  { %v4816_v35 = vsel %vm71_vm1, %v9726_v61, %v8948_v24  ;;  %v4751_v24 = vsel %vm71_vm1, %v9736_v12, 0.0 }
0x10f8   :  { %4849 = vst.msk [vmem:[%s10211_s5 + $0xd8] sm:$0xff] %vm4821_vm2, %v4816_v35  ;;  %v4860_v35 = vmul.f32 %v9428_v23, %v9428_v23  ;;  %v4864_v23 = vmul.f32 %v9489_v10, %v9489_v10  ;;  %v4857_v10 = vmul.f32 %v9352_v22, %v9352_v22 }
0x1105   :  { %4593 = vrot.lane.b32.xlu0 %v9736_v12, %s6824_s18 }
0x1106   :  { %4752 = vadd.xlane.f32.xlu1 %v4751_v24  ;;  %v4495_v24 = vmul.f32 %v6754_v63, %v10488_v34  ;;  %v4868_v63 = vmul.f32 %v9549_v37, %v9549_v37  ;;  %v4859_v37 = vmul.f32 %v9374_v32, %v9374_v32 }
0x1108   :  { %v4928_v58 = vsel %vm71_vm1, %v4868_v63, 0.0  ;;  %v4865_v63 = vmul.f32 %v9474_v0, %v9474_v0  ;;  %v4869_v0 = vmul.f32 %v9534_v19, %v9534_v19 }
0x110a   :  { %4887 = vadd.xlane.f32.xlu1 %v4886_v60  ;;  %v4463_v60 = vmul.f32 1.442695, %v9672_v11  ;;  %v4910_v11 = vsel %vm71_vm1, %v4862_v2, 0.0  ;;  %v4872_v2 = vmul.f32 %v9609_v55, %v9609_v55 }
0x110c   :  { %6755 = vpow2.f32 %v4463_v60  ;;  %v10489_v60 = vld [vmem:[#allocation101_spill] sm:$0xff]  ;;  %v4940_v55 = vsel %vm71_vm1, %v4872_v2, 0.0  ;;  %v4875_v2 = vmul.f32 %v9624_v42, %v9624_v42 }
0x110e   :  { %4893 = vadd.xlane.f32.xlu1 %v4892_v26  ;;  %v9750_v30 = vpop.xlane.xlu0 %4743  ;;  %v4904_v26 = vsel %vm71_vm1, %v4860_v35, 0.0  ;;  %v4922_v35 = vsel %vm71_vm1, %v4866_v44, 0.0  ;;  %v4874_v44 = vmul.f32 %v9639_v43, %v9639_v43  ;;  %v4461_v43 = vmul.f32 1.442695, %v9698_v48 }
0x110f   :  { %v4949_v42 = vsel %vm71_vm1, %v4875_v2, 0.0  ;;  %v10495_v2 = vld [vmem:[#allocation115_spill] sm:$0xff] }
0x1110   :  { %6757 = vpow2.f32 %v4461_v43  ;;  %v10491_v43 = vld [vmem:[#allocation105_spill] sm:$0xff] }
0x1112   :  { %4899 = vadd.xlane.f32.xlu1 %v4898_v50  ;;  %v4586_v4 = vpop.permute.xlu0 %4585  ;;  %v4889_v50 = vsel %vm71_vm1, %v4855_v18, 0.0  ;;  %v4946_v18 = vsel %vm71_vm1, %v4874_v44, 0.0 }
0x1113   :  { %v4655_v54 = vadd.f32 %v4586_v4, %v4495_v24  ;;  %v4895_v4 = vsel %vm71_vm1, %v4857_v10, 0.0 }
0x1115   :  { %v4815_v47 = vsel %vm71_vm1, %v4655_v54, %v8985_v49  ;;  %v4916_v49 = vsel %vm71_vm1, %v4864_v23, 0.0  ;;  %v4861_v23 = vmul.f32 %v9412_v38, %v9412_v38  ;;  %v4863_v38 = vmul.f32 %v9444_v41, %v9444_v41 }
0x1116   :  { %4848 = vst.msk [vmem:[%s10211_s5 + $0xd0] sm:$0xff] %vm4821_vm2, %v4815_v47  ;;  %4905 = vadd.xlane.f32.xlu1 %v4904_v26  ;;  %v4934_v26 = vsel %vm71_vm1, %v4870_v31, 0.0  ;;  %v4878_v41 = vmul.f32 %v9707_v39, %v9707_v39  ;;  %v4880_v48 = vmul.f32 %v4655_v54, %v4655_v54  ;;  %v4873_v54 = vmul.f32 %v9594_v16, %v9594_v16 }
0x1118   :  { %v4964_v39 = vsel %vm71_vm1, %v4880_v48, 0.0 }
0x1119   :  { %v6756_v34 = vpop.eup %6755 }
0x111a   :  { %4911 = vadd.xlane.f32.xlu1 %v4910_v11  ;;  %v4498_v22 = vmul.f32 %v6756_v34, %v10489_v60  ;;  %v4901_v11 = vsel %vm71_vm1, %v4859_v37, 0.0  ;;  %v4958_v34 = vsel %vm71_vm1, %v4878_v41, 0.0  ;;  %v10490_v60 = vld [vmem:[#allocation100_spill] sm:$0xff] }
0x111d   :  { %v6758_v37 = vpop.eup %6757 }
0x111e   :  { %4917 = vadd.xlane.f32.xlu1 %v4916_v49  ;;  %v4907_v49 = vsel %vm71_vm1, %v4861_v23, 0.0  ;;  %v4467_v23 = vmul.f32 1.442695, %v9710_v17  ;;  %v4879_v17 = vmul.f32 %v9688_v15, %v9688_v15 }
0x1120   :  { %6759 = vpow2.f32 %v4467_v23  ;;  %v10497_v23 = vld [vmem:[#allocation50_spill] sm:$0xff] }
0x1122   :  { %4923 = vadd.xlane.f32.xlu1 %v4922_v35  ;;  %v4913_v35 = vsel %vm71_vm1, %v4863_v38, 0.0 }
0x1124   :  { %4890 = vadd.xlane.f32.xlu0 %v4889_v50  ;;  %v4919_v50 = vsel %vm71_vm1, %v4865_v63, 0.0 }
0x1125   :  { %v9782_v24 = vpop.xlane.xlu1 %4740 }
0x1126   :  { %4929 = vadd.xlane.f32.xlu1 %v4928_v58  ;;  %v4871_v58 = vmul.f32 %v9564_v5, %v9564_v5  ;;  %v4943_v5 = vsel %vm71_vm1, %v4873_v54, 0.0 }
0x1128   :  { %4896 = vadd.xlane.f32.xlu0 %v4895_v4  ;;  %v4937_v19 = vsel %vm71_vm1, %v4871_v58, 0.0 }
0x1129   :  { %v4592_v47 = vpop.permute.xlu1 %4591 }
0x112a   :  { %v9792_v62 = vadd.f32 %v4592_v47, %v4498_v22  ;;  %4935 = vadd.xlane.f32.xlu1 %v4934_v26  ;;  %v4497_v22 = vmul.f32 %v6758_v37, %v10490_v60  ;;  %v10494_v60 = vld [vmem:[#allocation46_spill] sm:$0xff] }
0x112c   :  { %v4818_v32 = vsel %vm71_vm1, %v9792_v62, %v8982_v52  ;;  %4902 = vadd.xlane.f32.xlu0 %v4901_v11  ;;  %v4876_v52 = vmul.f32 %v9669_v7, %v9669_v7  ;;  %v4867_v7 = vmul.f32 %v9504_v9, %v9504_v9  ;;  %v4931_v9 = vsel %vm71_vm1, %v4869_v0, 0.0 }
0x112d   :  { %4851 = vst.msk [vmem:[%s10211_s5 + $0xe8] sm:$0xff] %vm4821_vm2, %v4818_v32  ;;  %v4877_v32 = vmul.f32 %v9654_v59, %v9654_v59  ;;  %v4881_v59 = vmul.f32 %v9726_v61, %v9726_v61  ;;  %v4883_v38 = vmul.f32 %v9792_v62, %v9792_v62 }
0x112e   :  { %4941 = vadd.xlane.f32.xlu1 %v4940_v55  ;;  %v4952_v10 = vsel %vm71_vm1, %v4876_v52, 0.0  ;;  %v4925_v31 = vsel %vm71_vm1, %v4867_v7, 0.0  ;;  %v4961_v55 = vsel %vm71_vm1, %v4879_v17, 0.0  ;;  %v6760_v52 = vpop.eup %6759  ;;  %v4465_v7 = vmul.f32 1.442695, %v9736_v12 }
0x112f   :  { %v4973_v15 = vsel %vm71_vm1, %v4883_v38, 0.0  ;;  %v4500_v63 = vmul.f32 %v6760_v52, %v10491_v43  ;;  %v5232_v12 = vsel %vm71_vm1, %v9220_v46, 0.0  ;;  %v10500_v38 = vld [vmem:[#allocation54_spill] sm:$0xff] }
0x1130   :  { %4908 = vadd.xlane.f32.xlu0 %v4907_v49  ;;  %v4967_v49 = vsel %vm71_vm1, %v4881_v59, 0.0  ;;  %6761 = vpow2.f32 %v4465_v7 }
0x1132   :  { %4947 = vadd.xlane.f32.xlu1 %v4946_v18 }
0x1134   :  { %4914 = vadd.xlane.f32.xlu0 %v4913_v35 }
0x1136   :  { %4953 = vadd.xlane.f32.xlu1 %v4952_v10 }
0x1138   :  { %4920 = vadd.xlane.f32.xlu0 %v4919_v50  ;;  %v5235_v50 = vsel %vm71_vm1, %v9247_v28, 0.0 }
0x113a   :  { %4959 = vadd.xlane.f32.xlu1 %v4958_v34 }
0x113c   :  { %4926 = vadd.xlane.f32.xlu0 %v4925_v31 }
0x113d   :  { %v6762_v48 = vpop.eup %6761 }
0x113e   :  { %4965 = vadd.xlane.f32.xlu1 %v4964_v39 }
0x1140   :  { %4932 = vadd.xlane.f32.xlu0 %v4931_v9 }
0x1143   :  { %v9833_v4 = vpop.xlane.xlu0 %4749 }
0x1144   :  { %4938 = vadd.xlane.f32.xlu0 %v4937_v19  ;;  %v10493_v19 = vld [vmem:[#allocation2_spill] sm:$0xff] }
0x1147   :  { %v4590_v47 = vpop.permute.xlu0 %4589 }
0x1148   :  { %v4657_v26 = vadd.f32 %v4590_v47, %v4497_v22  ;;  %4944 = vadd.xlane.f32.xlu0 %v4943_v5  ;;  %v2389_v22 = vadd.f32 %v10494_v60, %v10493_v19 }
0x114a   :  { %v4817_v16 = vsel %vm71_vm1, %v4657_v26, %v9007_v21  ;;  %v4882_v11 = vmul.f32 %v4657_v26, %v4657_v26  ;;  %v4955_v21 = vsel %vm71_vm1, %v4877_v32, 0.0  ;;  %v3541_v47 = vadd.f32 %v10495_v2, %v2389_v22  ;;  %v10496_v26 = vld [vmem:[#allocation6_spill] sm:$0xff] }
0x114b   :  { %4850 = vst.msk [vmem:[%s10211_s5 + $0xe0] sm:$0xff] %vm4821_vm2, %v4817_v16  ;;  %v2391_v16 = vadd.f32 %v10497_v23, %v10496_v26  ;;  %v10509_v2 = vld [vmem:[#allocation66_spill] sm:$0xff] }
0x114c   :  { %4950 = vadd.xlane.f32.xlu0 %v4949_v42  ;;  %v4970_v44 = vsel %vm71_vm1, %v4882_v11, 0.0  ;;  %v4757_v32 = vadd.f32 %v9385_v6, %v3541_v47 }
0x114d   :  { %4971 = vadd.xlane.f32.xlu1 %v4970_v44  ;;  %v10498_v44 = vld [vmem:[#allocation117_spill] sm:$0xff] }
0x114e   :  { %v3543_v17 = vadd.f32 %v10498_v44, %v2391_v16 }
0x1150   :  { %4956 = vadd.xlane.f32.xlu0 %v4955_v21  ;;  %v4759_v6 = vadd.f32 %v9391_v40, %v3543_v17 }
0x1154   :  { %4962 = vadd.xlane.f32.xlu0 %v4961_v55  ;;  %v10499_v55 = vld [vmem:[#allocation5_spill] sm:$0xff] }
0x1158   :  { %4968 = vadd.xlane.f32.xlu0 %v4967_v49  ;;  %v2393_v49 = vadd.f32 %v10500_v38, %v10499_v55  ;;  %v10515_v38 = vld [vmem:[#allocation127_spill] sm:$0xff] }
0x115a   :  { %v9860_v18 = vpop.xlane.xlu1 %4746 }
0x115c   :  { %4974 = vadd.xlane.f32.xlu0 %v4973_v15 }
0x115e   :  { %v4596_v35 = vpop.permute.xlu1 %4595 }
0x115f   :  { %v4660_v41 = vadd.f32 %v4596_v35, %v4500_v63 }
0x1161   :  { %v4820_v61 = vsel %vm71_vm1, %v4660_v41, %v9004_v13  ;;  %v4885_v10 = vmul.f32 %v4660_v41, %v4660_v41  ;;  %v10492_v13 = vld [vmem:[#allocation104_spill] sm:$0xff] }
0x1162   :  { %4853 = vst.msk [vmem:[%s10211_s5 + $0xf8] sm:$0xff] %vm4821_vm2, %v4820_v61  ;;  %v4499_v0 = vmul.f32 %v6762_v48, %v10492_v13  ;;  %v10502_v61 = vld [vmem:[#allocation9_spill] sm:$0xff] }
0x1163   :  { %v4979_v62 = vsel %vm71_vm1, %v4885_v10, 0.0  ;;  %v10503_v10 = vld [vmem:[#allocation58_spill] sm:$0xff] }
0x1164   :  { %4980 = vadd.xlane.f32.xlu0 %v4979_v62  ;;  %v2395_v62 = vadd.f32 %v10503_v10, %v10502_v61 }
0x1168   :  { %5236 = vadd.xlane.f32.xlu0 %v5235_v50 }
0x1178   :  { %v9874_v34 = vpop.xlane.xlu0 %4755 }
0x117c   :  { %v4594_v31 = vpop.permute.xlu0 %4593 }
0x117d   :  { %v4659_v39 = vadd.f32 %v4594_v31, %v4499_v0 }
0x117f   :  { %v4819_v58 = vsel %vm71_vm1, %v4659_v39, %v9024_v3  ;;  %v4884_v9 = vmul.f32 %v4659_v39, %v4659_v39  ;;  %v10505_v39 = vld [vmem:[#allocation12_spill] sm:$0xff] }
0x1180   :  { %4852 = vst.msk [vmem:[%s10211_s5 + $0xf0] sm:$0xff] %vm4821_vm2, %v4819_v58  ;;  %v10506_v58 = vld [vmem:[#allocation62_spill] sm:$0xff] }
0x1181   :  { %v4976_v28 = vsel %vm71_vm1, %v4884_v9, 0.0  ;;  %vm5367_vm1 = vcmask 15360   ;;  %v2397_v9 = vadd.f32 %v10506_v58, %v10505_v39  ;;  %v10525_v39 = vld [vmem:[#allocation152_spill] sm:$0xff] }
0x1182   :  { %4977 = vadd.xlane.f32.xlu1 %v4976_v28 }
0x1186   :  { %5233 = vadd.xlane.f32.xlu1 %v5232_v12 }
0x118f   :  { %v9886_v37 = vpop.xlane.xlu1 %4752 }
0x1193   :  { %v4888_v54 = vpop.xlane.xlu1 %4887 }
0x1194   :  { %v5238_v3 = vadd.f32 %v9227_v29, %v4888_v54 }
0x1196   :  { %v5270_v5 = vmul.f32 -0.5, %v5238_v3  ;;  %v10508_v3 = vld [vmem:[#allocation11_spill] sm:$0xff] }
0x1197   :  { %v4894_v11 = vpop.xlane.xlu1 %4893  ;;  %v2399_v47 = vadd.f32 %v10509_v2, %v10508_v3  ;;  %v10529_v3 = vld [vmem:[#allocation114_spill] sm:$0xff] }
0x1198   :  { %v5709_v46 = vadd.f32 -7.351508, %v5270_v5  ;;  %v5240_v42 = vadd.f32 %v9239_v20, %v4894_v11  ;;  %v10501_v20 = vld [vmem:[#allocation120_spill] sm:$0xff] }
0x1199   :  { %v3545_v43 = vadd.f32 %v10501_v20, %v2393_v49 }
0x119a   :  { %v5335_v21 = vsel %vm5334_vm11, %v5709_v46, %v4757_v32  ;;  %v5272_v59 = vmul.f32 -0.5, %v5240_v42  ;;  %v10511_v46 = vld [vmem:[#allocation14_spill] sm:$0xff] }
0x119b   :  { %5368 = vst.msk [vmem:[%s10212_s6] sm:$0xff] %vm5367_vm1, %v5335_v21  ;;  %v4900_v29 = vpop.xlane.xlu1 %4899  ;;  %v4761_v7 = vadd.f32 %v9409_v57, %v3545_v43  ;;  %v10512_v42 = vld [vmem:[#allocation70_spill] sm:$0xff]  ;;  %v10517_v43 = vld [vmem:[#allocation16_spill] sm:$0xff] }
0x119c   :  { %v5711_v52 = vadd.f32 -7.351508, %v5272_v59  ;;  %v5242_v15 = vadd.f32 %v9262_v53, %v4900_v29  ;;  %v10504_v53 = vld [vmem:[#allocation122_spill] sm:$0xff]  ;;  %v2401_v44 = vadd.f32 %v10512_v42, %v10511_v46  ;;  %v10514_v59 = vld [vmem:[#allocation43_spill] sm:$0xff] }
0x119d   :  { %v3547_v48 = vadd.f32 %v10504_v53, %v2395_v62  ;;  %v10522_v53 = vld [vmem:[#allocation4_spill] sm:$0xff]  ;;  %v10533_v46 = vld [vmem:[#allocation51_spill] sm:$0xff] }
0x119e   :  { %v5337_v63 = vsel %vm5334_vm11, %v5711_v52, %v4759_v6  ;;  %v5274_v35 = vmul.f32 -0.5, %v5242_v15  ;;  %v3553_v49 = vadd.f32 %v10515_v38, %v2401_v44  ;;  %v10516_v15 = vld [vmem:[#allocation110_spill] sm:$0xff]  ;;  %v10534_v44 = vld [vmem:[#allocation131_spill] sm:$0xff]  ;;  %v10536_v38 = vld [vmem:[#allocation108_spill] sm:$0xff] }
0x119f   :  { %5370 = vst.msk [vmem:[%s10212_s6 + $0x10] sm:$0xff] %vm5367_vm1, %v5337_v63  ;;  %v4906_v41 = vpop.xlane.xlu1 %4905  ;;  %v4763_v28 = vadd.f32 %v9441_v1, %v3547_v48  ;;  %v10518_v63 = vld [vmem:[#allocation74_spill] sm:$0xff]  ;;  %v10523_v48 = vld [vmem:[#allocation47_spill] sm:$0xff] }
0x11a0   :  { %v5713_v40 = vadd.f32 -7.351508, %v5274_v35  ;;  %v5244_v50 = vadd.f32 %v9266_v56, %v4906_v41  ;;  %v10507_v56 = vld [vmem:[#allocation123_spill] sm:$0xff]  ;;  %v2403_v35 = vadd.f32 %v10518_v63, %v10517_v43  ;;  %v10519_v41 = vld [vmem:[#allocation112_spill] sm:$0xff] }
0x11a1   :  { %v3549_v54 = vadd.f32 %v10507_v56, %v2397_v9  ;;  %v10526_v56 = vld [vmem:[#allocation34_spill] sm:$0xff]  ;;  %v10540_v63 = vld [vmem:[#allocation64_spill] sm:$0xff] }
0x11a2   :  { %v5339_v13 = vsel %vm5334_vm11, %v5713_v40, %v4761_v7  ;;  %v5276_v0 = vmul.f32 -0.5, %v5244_v50  ;;  %v10521_v40 = vld [vmem:[#allocation119_spill] sm:$0xff] }
0x11a3   :  { %5372 = vst.msk [vmem:[%s10212_s6 + $0x20] sm:$0xff] %vm5367_vm1, %v5339_v13  ;;  %v4912_v31 = vpop.xlane.xlu1 %4911  ;;  %v4765_v5 = vadd.f32 %v9471_v45, %v3549_v54  ;;  %v2392_v13 = vadd.f32 %v10523_v48, %v10522_v53  ;;  %v10544_v53 = vld [vmem:[#allocation133_spill] sm:$0xff] }
0x11a4   :  { %v5715_v57 = vadd.f32 -7.351508, %v5276_v0  ;;  %v5246_v12 = vadd.f32 %v9270_v51, %v4912_v31  ;;  %v10510_v51 = vld [vmem:[#allocation125_spill] sm:$0xff] }
0x11a5   :  { %v3551_v23 = vadd.f32 %v10510_v51, %v2399_v47  ;;  %v10524_v0 = vld [vmem:[#allocation129_spill] sm:$0xff]  ;;  %v3544_v2 = vadd.f32 %v10529_v3, %v2392_v13  ;;  %v10530_v47 = vld [vmem:[#allocation60_spill] sm:$0xff] }
0x11a6   :  { %v5341_v19 = vsel %vm5334_vm11, %v5715_v57, %v4763_v28  ;;  %v5278_v60 = vmul.f32 -0.5, %v5246_v12  ;;  %v3555_v31 = vadd.f32 %v10524_v0, %v2403_v35  ;;  %v10545_v13 = vld [vmem:[#allocation49_spill] sm:$0xff] }
0x11a7   :  { %5374 = vst.msk [vmem:[%s10212_s6 + $0x30] sm:$0xff] %vm5367_vm1, %v5341_v19  ;;  %v4918_v22 = vpop.xlane.xlu1 %4917  ;;  %v4767_v17 = vadd.f32 %v9501_v25, %v3551_v23  ;;  %v10520_v25 = vld [vmem:[#allocation56_spill] sm:$0xff]  ;;  %v10527_v19 = vld [vmem:[#allocation18_spill] sm:$0xff] }
0x11a8   :  { %v5717_v1 = vadd.f32 -7.351508, %v5278_v60  ;;  %v5248_v26 = vadd.f32 %v9279_v27, %v4918_v22  ;;  %v10513_v27 = vld [vmem:[#allocation3_spill] sm:$0xff]  ;;  %v4769_v10 = vadd.f32 %v10520_v25, %v3553_v49  ;;  %v10528_v60 = vld [vmem:[#allocation78_spill] sm:$0xff] }
0x11a9   :  { %v2390_v29 = vadd.f32 %v10514_v59, %v10513_v27  ;;  %v2405_v22 = vadd.f32 %v10528_v60, %v10527_v19  ;;  %v10549_v19 = vld [vmem:[#allocation118_spill] sm:$0xff] }
0x11aa   :  { %v5343_v16 = vsel %vm5334_vm11, %v5717_v1, %v4765_v5  ;;  %v5280_v11 = vmul.f32 -0.5, %v5248_v26  ;;  %v4771_v5 = vadd.f32 %v10530_v47, %v3555_v31 }
0x11ab   :  { %5376 = vst.msk [vmem:[%s10212_s6 + $0x40] sm:$0xff] %vm5367_vm1, %v5343_v16  ;;  %v4924_v32 = vpop.xlane.xlu1 %4923  ;;  %v3542_v61 = vadd.f32 %v10519_v41, %v2390_v29  ;;  %v10531_v16 = vld [vmem:[#allocation144_spill] sm:$0xff] }
0x11ac   :  { %v5719_v45 = vadd.f32 -7.351508, %v5280_v11  ;;  %v5250_v21 = vadd.f32 %v9283_v8, %v4924_v32  ;;  %v10532_v32 = vld [vmem:[#allocation8_spill] sm:$0xff] }
0x11ad   :  { %v4891_v55 = vpop.xlane.xlu0 %4890  ;;  %v4758_v58 = vadd.f32 %v10525_v39, %v3542_v61  ;;  %v2394_v42 = vadd.f32 %v10533_v46, %v10532_v32  ;;  %v10554_v32 = vld [vmem:[#allocation135_spill] sm:$0xff] }
0x11ae   :  { %v5345_v6 = vsel %vm5334_vm11, %v5719_v45, %v4767_v17  ;;  %v5282_v52 = vmul.f32 -0.5, %v5250_v21  ;;  %v5239_v20 = vadd.f32 %v10516_v15, %v4891_v55  ;;  %v3557_v17 = vadd.f32 %v10534_v44, %v2405_v22  ;;  %v10535_v45 = vld [vmem:[#allocation44_spill] sm:$0xff] }
0x11af   :  { %5378 = vst.msk [vmem:[%s10212_s6 + $0x50] sm:$0xff] %vm5367_vm1, %v5345_v6  ;;  %v4930_v8 = vpop.xlane.xlu1 %4929  ;;  %v4760_v21 = vadd.f32 %v10535_v45, %v3544_v2  ;;  %v10537_v6 = vld [vmem:[#allocation20_spill] sm:$0xff] }
0x11b0   :  { %v5721_v62 = vadd.f32 -7.351508, %v5282_v52  ;;  %v5271_v7 = vmul.f32 -0.5, %v5239_v20  ;;  %v5252_v50 = vadd.f32 %v10521_v40, %v4930_v8  ;;  %v10538_v52 = vld [vmem:[#allocation82_spill] sm:$0xff]  ;;  %v10539_v20 = vld [vmem:[#allocation116_spill] sm:$0xff]  ;;  %v4773_v35 = vadd.f32 %v10540_v63, %v3557_v17  ;;  %v10543_v40 = vld [vmem:[#allocation55_spill] sm:$0xff] }
0x11b1   :  { %v4897_v9 = vpop.xlane.xlu0 %4896  ;;  %v2407_v15 = vadd.f32 %v10538_v52, %v10537_v6  ;;  %v3546_v43 = vadd.f32 %v10539_v20, %v2394_v42  ;;  %v10550_v22 = vld [vmem:[#allocation68_spill] sm:$0xff]  ;;  %v10559_v6 = vld [vmem:[#allocation121_spill] sm:$0xff] }
0x11b2   :  { %v5347_v28 = vsel %vm5334_vm11, %v5721_v62, %v4769_v10  ;;  %v5710_v57 = vadd.f32 -7.351508, %v5271_v7  ;;  %v5284_v12 = vmul.f32 -0.5, %v5252_v50  ;;  %v5241_v54 = vadd.f32 %v10526_v56, %v4897_v9  ;;  %v10541_v10 = vld [vmem:[#allocation146_spill] sm:$0xff]  ;;  %v10542_v7 = vld [vmem:[#allocation7_spill] sm:$0xff]  ;;  %v10555_v42 = vld [vmem:[#allocation48_spill] sm:$0xff] }
0x11b3   :  { %5380 = vst.msk [vmem:[%s10212_s6 + $0x60] sm:$0xff] %vm5367_vm1, %v5347_v28  ;;  %v4936_v1 = vpop.xlane.xlu1 %4935  ;;  %v2396_v50 = vadd.f32 %v10543_v40, %v10542_v7  ;;  %v3559_v48 = vadd.f32 %v10544_v53, %v2407_v15  ;;  %v4762_v0 = vadd.f32 %v10545_v13, %v3546_v43  ;;  %v10546_v28 = vld [vmem:[#allocation109_spill] sm:$0xff]  ;;  %v10548_v56 = vld [vmem:[#allocation86_spill] sm:$0xff]  ;;  %v10560_v15 = vld [vmem:[#allocation72_spill] sm:$0xff] }
0x11b4   :  { %v5336_v26 = vsel %vm5334_vm11, %v5710_v57, %v4758_v58  ;;  %v5723_v51 = vadd.f32 -7.351508, %v5284_v12  ;;  %v5273_v23 = vmul.f32 -0.5, %v5241_v54  ;;  %v5254_v11 = vadd.f32 %v10531_v16, %v4936_v1  ;;  %v10547_v12 = vld [vmem:[#allocation22_spill] sm:$0xff]  ;;  %v10553_v16 = vld [vmem:[#allocation59_spill] sm:$0xff]  ;;  %v10564_v7 = vld [vmem:[#allocation137_spill] sm:$0xff] }
0x11b5   :  { %5369 = vst.msk [vmem:[%s10212_s6 + $0x8] sm:$0xff] %vm5367_vm1, %v5336_v26  ;;  %v4903_v27 = vpop.xlane.xlu0 %4902  ;;  %v2409_v54 = vadd.f32 %v10548_v56, %v10547_v12  ;;  %v3548_v60 = vadd.f32 %v10549_v19, %v2396_v50  ;;  %v4775_v3 = vadd.f32 %v10550_v22, %v3559_v48  ;;  %v10551_v26 = vld [vmem:[#allocation45_spill] sm:$0xff]  ;;  %v10569_v12 = vld [vmem:[#allocation124_spill] sm:$0xff] }
0x11b6   :  { %v5349_v59 = vsel %vm5334_vm11, %v5723_v51, %v4771_v5  ;;  %v5712_v29 = vadd.f32 -7.351508, %v5273_v23  ;;  %v5286_v55 = vmul.f32 -0.5, %v5254_v11  ;;  %v5243_v49 = vadd.f32 %v10536_v38, %v4903_v27  ;;  %v10552_v23 = vld [vmem:[#allocation10_spill] sm:$0xff]  ;;  %v10565_v50 = vld [vmem:[#allocation53_spill] sm:$0xff] }
0x11b7   :  { %5382 = vst.msk [vmem:[%s10212_s6 + $0x70] sm:$0xff] %vm5367_vm1, %v5349_v59  ;;  %v4942_v41 = vpop.xlane.xlu1 %4941  ;;  %v2398_v11 = vadd.f32 %v10553_v16, %v10552_v23  ;;  %v3561_v46 = vadd.f32 %v10554_v32, %v2409_v54  ;;  %v4764_v44 = vadd.f32 %v10555_v42, %v3548_v60  ;;  %v10556_v59 = vld [vmem:[#allocation36_spill] sm:$0xff]  ;;  %v10558_v38 = vld [vmem:[#allocation90_spill] sm:$0xff] }
0x11b8   :  { %v5338_v61 = vsel %vm5334_vm11, %v5712_v29, %v4760_v21  ;;  %v5725_v8 = vadd.f32 -7.351508, %v5286_v55  ;;  %v5275_v25 = vmul.f32 -0.5, %v5243_v49  ;;  %v5256_v62 = vadd.f32 %v10541_v10, %v4942_v41  ;;  %v10557_v55 = vld [vmem:[#allocation24_spill] sm:$0xff]  ;;  %v10563_v10 = vld [vmem:[#allocation63_spill] sm:$0xff] }
0x11b9   :  { %5371 = vst.msk [vmem:[%s10212_s6 + $0x18] sm:$0xff] %vm5367_vm1, %v5338_v61  ;;  %v4909_v31 = vpop.xlane.xlu0 %4908  ;;  %v2411_v49 = vadd.f32 %v10558_v38, %v10557_v55  ;;  %v3550_v52 = vadd.f32 %v10559_v6, %v2398_v11  ;;  %v4777_v20 = vadd.f32 %v10560_v15, %v3561_v46  ;;  %v10561_v61 = vld [vmem:[#allocation148_spill] sm:$0xff]  ;;  %v10579_v15 = vld [vmem:[#allocation150_spill] sm:$0xff] }
0x11ba   :  { %v5351_v39 = vsel %vm5334_vm11, %v5725_v8, %v4773_v35  ;;  %v5714_v58 = vadd.f32 -7.351508, %v5275_v25  ;;  %v5288_v9 = vmul.f32 -0.5, %v5256_v62  ;;  %v5245_v57 = vadd.f32 %v10546_v28, %v4909_v31  ;;  %v10562_v25 = vld [vmem:[#allocation13_spill] sm:$0xff]  ;;  %v10568_v28 = vld [vmem:[#allocation94_spill] sm:$0xff]  ;;  %v10574_v16 = vld [vmem:[#allocation52_spill] sm:$0xff] }
0x11bb   :  { %5384 = vst.msk [vmem:[%s10212_s6 + $0x80] sm:$0xff] %vm5367_vm1, %v5351_v39  ;;  %v4948_v2 = vpop.xlane.xlu1 %4947  ;;  %v2400_v62 = vadd.f32 %v10563_v10, %v10562_v25  ;;  %v3563_v40 = vadd.f32 %v10564_v7, %v2411_v49  ;;  %v4766_v53 = vadd.f32 %v10565_v50, %v3550_v52  ;;  %v10566_v39 = vld [vmem:[#allocation37_spill] sm:$0xff] }
0x11bc   :  { %v5340_v47 = vsel %vm5334_vm11, %v5714_v58, %v4762_v0  ;;  %v5727_v5 = vadd.f32 -7.351508, %v5288_v9  ;;  %v5277_v1 = vmul.f32 -0.5, %v5245_v57  ;;  %v5258_v51 = vadd.f32 %v10551_v26, %v4948_v2  ;;  %v10567_v9 = vld [vmem:[#allocation26_spill] sm:$0xff]  ;;  %v10570_v2 = vld [vmem:[#allocation149_spill] sm:$0xff] }
0x11bd   :  { %5373 = vst.msk [vmem:[%s10212_s6 + $0x28] sm:$0xff] %vm5367_vm1, %v5340_v47  ;;  %v4915_v17 = vpop.xlane.xlu0 %4914  ;;  %v2413_v57 = vadd.f32 %v10568_v28, %v10567_v9  ;;  %v3552_v56 = vadd.f32 %v10569_v12, %v2400_v62  ;;  %v4779_v54 = vadd.f32 %v9685_v36, %v3563_v40  ;;  %v10584_v40 = vld [vmem:[#allocation39_spill] sm:$0xff]  ;;  %v10588_v12 = vld [vmem:[#allocation61_spill] sm:$0xff] }
0x11be   :  { %v5353_v45 = vsel %vm5334_vm11, %v5727_v5, %v4775_v3  ;;  %v5716_v21 = vadd.f32 -7.351508, %v5277_v1  ;;  %v5290_v27 = vmul.f32 -0.5, %v5258_v51  ;;  %v5247_v29 = vadd.f32 %v10556_v59, %v4915_v17  ;;  %v10571_v5 = vld [vmem:[#allocation15_spill] sm:$0xff]  ;;  %v10578_v59 = vld [vmem:[#allocation126_spill] sm:$0xff] }
0x11bf   :  { %5386 = vst.msk [vmem:[%s10212_s6 + $0x90] sm:$0xff] %vm5367_vm1, %v5353_v45  ;;  %v4954_v43 = vpop.xlane.xlu1 %4953  ;;  %v10572_v1 = vld [vmem:[#allocation67_spill] sm:$0xff]  ;;  %v4768_v11 = vadd.f32 %v10574_v16, %v3552_v56  ;;  %v10576_v45 = vld [vmem:[#allocation28_spill] sm:$0xff] }
0x11c0   :  { %v5342_v63 = vsel %vm5334_vm11, %v5716_v21, %v4764_v44  ;;  %v5729_v35 = vadd.f32 -7.351508, %v5290_v27  ;;  %v5279_v41 = vmul.f32 -0.5, %v5247_v29  ;;  %v5260_v8 = vadd.f32 %v10561_v61, %v4954_v43  ;;  %v10573_v51 = vld [vmem:[#allocation139_spill] sm:$0xff]  ;;  %v10575_v44 = vld [vmem:[#allocation38_spill] sm:$0xff]  ;;  %v10580_v43 = vld [vmem:[#allocation17_spill] sm:$0xff] }
0x11c1   :  { %5375 = vst.msk [vmem:[%s10212_s6 + $0x38] sm:$0xff] %vm5367_vm1, %v5342_v63  ;;  %v4921_v48 = vpop.xlane.xlu0 %4920  ;;  %v2402_v26 = vadd.f32 %v10572_v1, %v10571_v5  ;;  %v3565_v23 = vadd.f32 %v10573_v51, %v2413_v57  ;;  %v10577_v21 = vld [vmem:[#allocation98_spill] sm:$0xff]  ;;  %v10581_v63 = vld [vmem:[#allocation71_spill] sm:$0xff]  ;;  %v10591_v1 = vld [vmem:[#allocation21_spill] sm:$0xff] }
0x11c2   :  { %v5355_v13 = vsel %vm5334_vm11, %v5729_v35, %v4777_v20  ;;  %v5718_v0 = vadd.f32 -7.351508, %v5279_v41  ;;  %v5292_v31 = vmul.f32 -0.5, %v5260_v8  ;;  %v5249_v58 = vadd.f32 %v10566_v39, %v4921_v48  ;;  %v10582_v41 = vld [vmem:[#allocation141_spill] sm:$0xff]  ;;  %v10587_v9 = vld [vmem:[#allocation75_spill] sm:$0xff] }
0x11c3   :  { %5388 = vst.msk [vmem:[%s10212_s6 + $0xa0] sm:$0xff] %vm5367_vm1, %v5355_v13  ;;  %v4960_v19 = vpop.xlane.xlu1 %4959  ;;  %v2415_v27 = vadd.f32 %v10577_v21, %v10576_v45  ;;  %v3554_v29 = vadd.f32 %v10578_v59, %v2402_v26  ;;  %v4781_v55 = vadd.f32 %v9723_v33, %v3565_v23  ;;  %v2404_v35 = vadd.f32 %v10581_v63, %v10580_v43  ;;  %v10583_v8 = vld [vmem:[#allocation57_spill] sm:$0xff]  ;;  %v10592_v26 = vld [vmem:[#allocation79_spill] sm:$0xff] }
0x11c4   :  { %v5344_v60 = vsel %vm5334_vm11, %v5718_v0, %v4766_v53  ;;  %v5731_v22 = vadd.f32 -7.351508, %v5292_v31  ;;  %v5281_v3 = vmul.f32 -0.5, %v5249_v58  ;;  %v5262_v47 = vadd.f32 %v10570_v2, %v4960_v19  ;;  %v10585_v53 = vld [vmem:[#allocation128_spill] sm:$0xff]  ;;  %v10586_v58 = vld [vmem:[#allocation19_spill] sm:$0xff]  ;;  %v10593_v23 = vld [vmem:[#allocation65_spill] sm:$0xff] }
0x11c5   :  { %5377 = vst.msk [vmem:[%s10212_s6 + $0x48] sm:$0xff] %vm5367_vm1, %v5344_v60  ;;  %v4927_v36 = vpop.xlane.xlu0 %4926  ;;  %v3567_v61 = vadd.f32 %v10582_v41, %v2415_v27  ;;  %v4770_v25 = vadd.f32 %v10583_v8, %v3554_v29  ;;  %v3556_v48 = vadd.f32 %v10585_v53, %v2404_v35  ;;  %v2406_v28 = vadd.f32 %v10587_v9, %v10586_v58  ;;  %v10589_v60 = vld [vmem:[#allocation111_spill] sm:$0xff]  ;;  %v10598_v29 = vld [vmem:[#allocation69_spill] sm:$0xff]  ;;  %v10603_v41 = vld [vmem:[#allocation134_spill] sm:$0xff] }
0x11c6   :  { %v5357_v32 = vsel %vm5334_vm11, %v5731_v22, %v4779_v54  ;;  %v5720_v46 = vadd.f32 -7.351508, %v5281_v3  ;;  %v5294_v42 = vmul.f32 -0.5, %v5262_v47  ;;  %v5251_v17 = vadd.f32 %v10575_v44, %v4927_v36  ;;  %v10590_v22 = vld [vmem:[#allocation130_spill] sm:$0xff]  ;;  %v10594_v36 = vld [vmem:[#allocation40_spill] sm:$0xff]  ;;  %v10596_v21 = vld [vmem:[#allocation23_spill] sm:$0xff] }
0x11c7   :  { %5390 = vst.msk [vmem:[%s10212_s6 + $0xb0] sm:$0xff] %vm5367_vm1, %v5357_v32  ;;  %v4966_v38 = vpop.xlane.xlu1 %4965  ;;  %v4783_v13 = vadd.f32 %v9782_v24, %v3567_v61  ;;  %v4772_v56 = vadd.f32 %v10588_v12, %v3556_v48  ;;  %v3558_v3 = vadd.f32 %v10590_v22, %v2406_v28  ;;  %v2408_v51 = vadd.f32 %v10592_v26, %v10591_v1  ;;  %v10597_v27 = vld [vmem:[#allocation83_spill] sm:$0xff]  ;;  %v10607_v48 = vld [vmem:[#allocation73_spill] sm:$0xff]  ;;  %v10609_v28 = vld [vmem:[#allocation136_spill] sm:$0xff] }
0x11c8   :  { %v5346_v49 = vsel %vm5334_vm11, %v5720_v46, %v4768_v11  ;;  %v5733_v6 = vadd.f32 -7.351508, %v5294_v42  ;;  %v5283_v52 = vmul.f32 -0.5, %v5251_v17  ;;  %v5264_v20 = vadd.f32 %v10579_v15, %v4966_v38  ;;  %v10595_v46 = vld [vmem:[#allocation132_spill] sm:$0xff]  ;;  %v10600_v15 = vld [vmem:[#allocation30_spill] sm:$0xff]  ;;  %v10602_v63 = vld [vmem:[#allocation151_spill] sm:$0xff] }
0x11c9   :  { %5379 = vst.msk [vmem:[%s10212_s6 + $0x58] sm:$0xff] %vm5367_vm1, %v5346_v49  ;;  %v4933_v33 = vpop.xlane.xlu0 %4932  ;;  %v4774_v16 = vadd.f32 %v10593_v23, %v3558_v3  ;;  %v3560_v42 = vadd.f32 %v10595_v46, %v2408_v51  ;;  %v2410_v59 = vadd.f32 %v10597_v27, %v10596_v21  ;;  %v10599_v49 = vld [vmem:[#allocation41_spill] sm:$0xff]  ;;  %v10614_v1 = vld [vmem:[#allocation138_spill] sm:$0xff] }
0x11ca   :  { %v5359_v10 = vsel %vm5334_vm11, %v5733_v6, %v4781_v55  ;;  %v5722_v62 = vadd.f32 -7.351508, %v5283_v52  ;;  %v5296_v7 = vmul.f32 -0.5, %v5264_v20  ;;  %v5253_v50 = vadd.f32 %v10584_v40, %v4933_v33  ;;  %v10601_v20 = vld [vmem:[#allocation102_spill] sm:$0xff]  ;;  %v10605_v40 = vld [vmem:[#allocation25_spill] sm:$0xff] }
0x11cb   :  { %5392 = vst.msk [vmem:[%s10212_s6 + $0xc0] sm:$0xff] %vm5367_vm1, %v5359_v10  ;;  %v4776_v55 = vadd.f32 %v10598_v29, %v3560_v42  ;;  %v2417_v43 = vadd.f32 %v10601_v20, %v10600_v15  ;;  %v3562_v61 = vadd.f32 %v10603_v41, %v2410_v59  ;;  %v10604_v33 = vld [vmem:[#allocation106_spill] sm:$0xff]  ;;  %v10612_v3 = vld [vmem:[#allocation77_spill] sm:$0xff] }
0x11cc   :  { %v5348_v0 = vsel %vm5334_vm11, %v5722_v62, %v4770_v25  ;;  %v5735_v31 = vadd.f32 -7.351508, %v5296_v7  ;;  %v5285_v39 = vmul.f32 -0.5, %v5253_v50  ;;  %v10606_v50 = vld [vmem:[#allocation87_spill] sm:$0xff]  ;;  %v10622_v20 = vld [vmem:[#allocation142_spill] sm:$0xff] }
0x11cd   :  { %5381 = vst.msk [vmem:[%s10212_s6 + $0x68] sm:$0xff] %vm5367_vm1, %v5348_v0  ;;  %v4939_v57 = vpop.xlane.xlu0 %4938  ;;  %v3569_v10 = vadd.f32 %v10604_v33, %v2417_v43  ;;  %v2412_v53 = vadd.f32 %v10606_v50, %v10605_v40  ;;  %v10623_v33 = vld [vmem:[#allocation33_spill] sm:$0xff]  ;;  %v10625_v40 = vld [vmem:[#allocation107_spill] sm:$0xff] }
0x11ce   :  { %v5361_v54 = vsel %vm5334_vm11, %v5735_v31, %v4783_v13  ;;  %v5724_v19 = vadd.f32 -7.351508, %v5285_v39  ;;  %v5255_v24 = vadd.f32 %v10589_v60, %v4939_v57  ;;  %v4778_v13 = vadd.f32 %v10607_v48, %v3562_v61  ;;  %v10608_v31 = vld [vmem:[#allocation42_spill] sm:$0xff]  ;;  %v10610_v60 = vld [vmem:[#allocation27_spill] sm:$0xff] }
0x11cf   :  { %5394 = vst.msk [vmem:[%s10212_s6 + $0xd0] sm:$0xff] %vm5367_vm1, %v5361_v54  ;;  %v4785_v58 = vadd.f32 %v9860_v18, %v3569_v10  ;;  %v3564_v57 = vadd.f32 %v10609_v28, %v2412_v53  ;;  %v10624_v10 = vld [vmem:[#allocation103_spill] sm:$0xff] }
0x11d0   :  { %v5350_v2 = vsel %vm5334_vm11, %v5724_v19, %v4772_v56  ;;  %v5287_v47 = vmul.f32 -0.5, %v5255_v24  ;;  %v10611_v24 = vld [vmem:[#allocation91_spill] sm:$0xff] }
0x11d1   :  { %5383 = vst.msk [vmem:[%s10212_s6 + $0x78] sm:$0xff] %vm5367_vm1, %v5350_v2  ;;  %v4945_v5 = vpop.xlane.xlu0 %4944  ;;  %v2414_v22 = vadd.f32 %v10611_v24, %v10610_v60  ;;  %v4780_v2 = vadd.f32 %v10612_v3, %v3564_v57  ;;  %v10628_v57 = vld [vmem:[#allocation35_spill] sm:$0xff] }
0x11d2   :  { %v5726_v11 = vadd.f32 -7.351508, %v5287_v47  ;;  %v5257_v32 = vadd.f32 %v10594_v36, %v4945_v5  ;;  %v10613_v47 = vld [vmem:[#allocation143_spill] sm:$0xff] }
0x11d3   :  { %v3566_v26 = vadd.f32 %v10614_v1, %v2414_v22  ;;  %v10616_v36 = vld [vmem:[#allocation95_spill] sm:$0xff] }
0x11d4   :  { %v5352_v44 = vsel %vm5334_vm11, %v5726_v11, %v4774_v16  ;;  %v5289_v17 = vmul.f32 -0.5, %v5257_v32  ;;  %v10615_v11 = vld [vmem:[#allocation29_spill] sm:$0xff] }
0x11d5   :  { %5385 = vst.msk [vmem:[%s10212_s6 + $0x88] sm:$0xff] %vm5367_vm1, %v5352_v44  ;;  %v4951_v45 = vpop.xlane.xlu0 %4950  ;;  %v2416_v32 = vadd.f32 %v10616_v36, %v10615_v11  ;;  %v4782_v46 = vadd.f32 %v9704_v14, %v3566_v26  ;;  %v10617_v44 = vld [vmem:[#allocation145_spill] sm:$0xff] }
0x11d6   :  { %v5728_v38 = vadd.f32 -7.351508, %v5289_v17  ;;  %v5259_v6 = vadd.f32 %v10599_v49, %v4951_v45  ;;  %v4972_v52 = vpop.xlane.xlu1 %4971  ;;  %v10618_v45 = vld [vmem:[#allocation140_spill] sm:$0xff] }
0x11d7   :  { %v5266_v35 = vadd.f32 %v10602_v63, %v4972_v52  ;;  %v3568_v21 = vadd.f32 %v10618_v45, %v2416_v32  ;;  %v10621_v52 = vld [vmem:[#allocation147_spill] sm:$0xff] }
0x11d8   :  { %v5354_v8 = vsel %vm5334_vm11, %v5728_v38, %v4776_v55  ;;  %v5291_v25 = vmul.f32 -0.5, %v5259_v6  ;;  %v10619_v55 = vld [vmem:[#allocation31_spill] sm:$0xff] }
0x11d9   :  { %5387 = vst.msk [vmem:[%s10212_s6 + $0x98] sm:$0xff] %vm5367_vm1, %v5354_v8  ;;  %v5298_v62 = vmul.f32 -0.5, %v5266_v35  ;;  %v4957_v7 = vpop.xlane.xlu0 %4956  ;;  %v10620_v38 = vld [vmem:[#allocation99_spill] sm:$0xff]  ;;  %v4784_v6 = vadd.f32 %v9750_v30, %v3568_v21 }
0x11da   :  { %v5730_v0 = vadd.f32 -7.351508, %v5291_v25  ;;  %v5261_v39 = vadd.f32 %v10608_v31, %v4957_v7  ;;  %v2418_v49 = vadd.f32 %v10620_v38, %v10619_v55 }
0x11db   :  { %v5737_v9 = vadd.f32 -7.351508, %v5298_v62  ;;  %v2420_v62 = vadd.f32 %v10624_v10, %v10623_v33 }
0x11dc   :  { %v5356_v12 = vsel %vm5334_vm11, %v5730_v0, %v4778_v13  ;;  %v5293_v56 = vmul.f32 -0.5, %v5261_v39  ;;  %v3570_v43 = vadd.f32 %v10622_v20, %v2418_v49  ;;  %v10626_v39 = vld [vmem:[#allocation32_spill] sm:$0xff] }
0x11dd   :  { %5389 = vst.msk [vmem:[%s10212_s6 + $0xa8] sm:$0xff] %vm5367_vm1, %v5356_v12  ;;  %v5363_v54 = vsel %vm5334_vm11, %v5737_v9, %v4785_v58  ;;  %v4963_v19 = vpop.xlane.xlu0 %4962  ;;  %v3572_v50 = vadd.f32 %v10625_v40, %v2420_v62  ;;  %v10627_v58 = vld [vmem:[#allocation113_spill] sm:$0xff] }
0x11de   :  { %5396 = vst.msk [vmem:[%s10212_s6 + $0xe0] sm:$0xff] %vm5367_vm1, %v5363_v54  ;;  %v5732_v18 = vadd.f32 -7.351508, %v5293_v56  ;;  %v5263_v5 = vadd.f32 %v10613_v47, %v4963_v19  ;;  %v4786_v41 = vadd.f32 %v9833_v4, %v3570_v43  ;;  %v2419_v9 = vadd.f32 %v10627_v58, %v10626_v39 }
0x11df   :  { %v4788_v48 = vadd.f32 %v9874_v34, %v3572_v50 }
0x11e0   :  { %v5358_v51 = vsel %vm5334_vm11, %v5732_v18, %v4780_v2  ;;  %v5295_v23 = vmul.f32 -0.5, %v5263_v5  ;;  %v3571_v12 = vadd.f32 %v10628_v57, %v2419_v9 }
0x11e1   :  { %5391 = vst.msk [vmem:[%s10212_s6 + $0xb8] sm:$0xff] %vm5367_vm1, %v5358_v51  ;;  %v4969_v16 = vpop.xlane.xlu0 %4968 }
0x11e2   :  { %v5734_v42 = vadd.f32 -7.351508, %v5295_v23  ;;  %v5265_v17 = vadd.f32 %v10617_v44, %v4969_v16  ;;  %v4787_v54 = vadd.f32 %v9886_v37, %v3571_v12 }
0x11e4   :  { %v5360_v27 = vsel %vm5334_vm11, %v5734_v42, %v4782_v46  ;;  %v5297_v59 = vmul.f32 -0.5, %v5265_v17 }
0x11e5   :  { %5393 = vst.msk [vmem:[%s10212_s6 + $0xc8] sm:$0xff] %vm5367_vm1, %v5360_v27  ;;  %v4975_v29 = vpop.xlane.xlu0 %4974 }
0x11e6   :  { %v5736_v14 = vadd.f32 -7.351508, %v5297_v59  ;;  %v5267_v15 = vadd.f32 %v10621_v52, %v4975_v29 }
0x11e8   :  { %v5362_v63 = vsel %vm5334_vm11, %v5736_v14, %v4784_v6  ;;  %v5299_v35 = vmul.f32 -0.5, %v5267_v15 }
0x11e9   :  { %5395 = vst.msk [vmem:[%s10212_s6 + $0xd8] sm:$0xff] %vm5367_vm1, %v5362_v63 }
0x11ea   :  { %v5738_v61 = vadd.f32 -7.351508, %v5299_v35 }
0x11ec   :  { %v5364_v8 = vsel %vm5334_vm11, %v5738_v61, %v4786_v41 }
0x11ed   :  { %5397 = vst.msk [vmem:[%s10212_s6 + $0xe8] sm:$0xff] %vm5367_vm1, %v5364_v8  ;;  %v4981_v30 = vpop.xlane.xlu0 %4980 }
0x11f1   :  { %v5237_v25 = vpop.xlane.xlu0 %5236 }
0x11f2   :  { %v5269_v7 = vadd.f32 %v5237_v25, %v4981_v30 }
0x11f4   :  { %v5301_v53 = vmul.f32 -0.5, %v5269_v7 }
0x11f6   :  { %v5740_v4 = vadd.f32 -7.351508, %v5301_v53 }
0x11f8   :  { %v5366_v13 = vsel %vm5334_vm11, %v5740_v4, %v4788_v48 }
0x11f9   :  { %5399 = vst.msk [vmem:[%s10212_s6 + $0xf8] sm:$0xff] %vm5367_vm1, %v5366_v13 }
0x120b   :  { %v4978_v0 = vpop.xlane.xlu1 %4977 }
0x120f   :  { %v5234_v31 = vpop.xlane.xlu1 %5233 }
0x1210   :  { %v5268_v28 = vadd.f32 %v5234_v31, %v4978_v0 }
0x1212   :  { %v5300_v56 = vmul.f32 -0.5, %v5268_v28 }
0x1214   :  { %v5739_v34 = vadd.f32 -7.351508, %v5300_v56 }
0x1216   :  { %v5365_v19 = vsel %vm5334_vm11, %v5739_v34, %v4787_v54 }
0x1217   :  { %5398 = vst.msk [vmem:[%s10212_s6 + $0xf0] sm:$0xff] %vm5367_vm1, %v5365_v19 }

</bundles_post_ra>
